<compile_context>
chip_gen: v5e
topology: v5e:2x2
jax: 0.10.0
libtpu: 0.0.40
codegen_flags: <defaults>
</compile_context>

<pallas_src>
import math

import numpy as np

import jax
import jax.numpy as jnp
from jax.experimental import pallas as pl
from jax.experimental.pallas import tpu as pltpu


# ----------------------------- in-kernel math --------------------------------

def _gelu_erf(x):
    """Exact (erf-form) GELU matching PyTorch nn.GELU() defaults.

    erf via Abramowitz & Stegun 7.1.26 (max abs err ~1.5e-7).  Only mul / add /
    select / exp / exact divide, all of which lower on every TPU generation.
    """
    a1, a2, a3, a4, a5 = (0.254829592, -0.284496736, 1.421413741,
                          -1.453152027, 1.061405429)
    p = 0.3275911
    z = x * (1.0 / math.sqrt(2.0))
    s = jnp.where(z >= 0.0, 1.0, -1.0)
    az = jnp.abs(z)
    t = 1.0 / (1.0 + p * az)
    poly = ((((a5 * t + a4) * t + a3) * t + a2) * t + a1) * t
    erf = s * (1.0 - poly * jnp.exp(-az * az))
    return 0.5 * x * (1.0 + erf)


# ----------------------------- fused kernel ----------------------------------

def _make_mfac_kernel(Cin, Cout, H, W, atrous_rates, Nb, pad):
    """Per-grid-step fused MFAC kernel processing Nb samples."""
    M = H * W
    n_dil = len(atrous_rates)
    d_max = max(atrous_rates)
    inv_hw = 1.0 / float(M)

    def kernel(x_ref, mask_ref, wk_ref, wpp_ref, wsm_ref, o_ref, xhalo_ref):
        # x_ref    : (Nb, Cin, M)            f32  unpadded NCHW input (H*W flat)
        # mask_ref : (2*d_max+1, M)          f32  horizontal validity per dx
        # wk_ref   : (1+9*n_dil, Cout, Cin)  bf16 BN-folded conv weights
        # wpp_ref  : (n_dil+2, Cout, Cout)   f32  per-branch projection weights
        # wsm_ref  : (Cout, Cin + n_dil+3)   f32  [pool 1x1 weight | BN shifts]
        # xhalo_ref: (Cin, M + 2*pad)        bf16 scratch: zero halo + sample

        # Zero halo once per grid step (the middle M lanes are overwritten per
        # sample before being read, so a full clear is the simplest form).
        xhalo_ref[...] = jnp.zeros(xhalo_ref.shape, xhalo_ref.dtype)

        def shift(j):                                   # BN shift column j
            return wsm_ref[:, Cin + j:Cin + j + 1]      # (Cout, 1) f32

        wpool = wsm_ref[:, :Cin]                        # (Cout, Cin) f32

        for s in range(Nb):
            x_f32 = x_ref[s]                            # (Cin, M) f32
            x_bf = x_f32.astype(jnp.bfloat16)
            xhalo_ref[:, pad:pad + M] = x_bf            # in-kernel halo build

            # ---- pooling branch: per-sample global mean, all f32 -----------
            pooled = jnp.sum(x_f32, axis=1, keepdims=True) * inv_hw   # (Cin,1)
            g = _gelu_erf(jnp.dot(wpool, pooled,
                                  preferred_element_type=jnp.float32)
                          + shift(n_dil + 1))                          # (Cout,1)
            pool_contrib = jnp.dot(wpp_ref[n_dil + 1], g,
                                   preferred_element_type=jnp.float32)  # (Cout,1)

            # ---- branch 0: 1x1 conv + folded BN + GELU, then its projection
            y0 = jnp.dot(wk_ref[0], x_bf, preferred_element_type=jnp.float32)
            y0 = _gelu_erf(y0 + shift(0))                              # (Cout,M)
            acc = jnp.dot(wpp_ref[0], y0,
                          preferred_element_type=jnp.float32)          # (Cout,M)

            # ---- dilated 3x3 branches: 9 small matmuls each, f32 accumulate
            for bi, d in enumerate(atrous_rates):
                yd = None
                for kx, dx in enumerate((-d, 0, d)):
                    part = None
                    for ky, dy in enumerate((-d, 0, d)):
                        w_t = wk_ref[1 + 9 * bi + 3 * ky + kx]   # (Cout, Cin)
                        if dy == 0 and dx == 0:
                            tap = x_bf                           # (Cin, M)
                        else:
                            off = pad + dy * W + dx
                            tap = xhalo_ref[:, off:off + M]      # (Cin, M)
                        prod = jnp.dot(w_t, tap,
                                       preferred_element_type=jnp.float32)
                        part = prod if part is None else part + prod
                    if dx != 0:
                        # matmul doesn't mix lanes, so the horizontal-wrap mask
                        # can be applied once per dx group on the f32 partial.
                        part = part * mask_ref[d_max + dx:d_max + dx + 1, :]
                    yd = part if yd is None else yd + part
                yd = _gelu_erf(yd + shift(1 + bi))
                acc = acc + jnp.dot(wpp_ref[1 + bi], yd,
                                    preferred_element_type=jnp.float32)

            # ---- projection epilogue: pooled contribution + BN + GELU ------
            # Dropout(0.5) is the identity under eval-mode semantics.
            acc = acc + pool_contrib + shift(n_dil + 2)
            o_ref[s] = _gelu_erf(acc).astype(o_ref.dtype)

    return kernel


# ----------------------------- parameters ------------------------------------

def fold_bn(gamma, beta, mean, var, eps=1e-5):
    scale = gamma / jnp.sqrt(var + eps)
    shift = beta - mean * scale
    return scale.astype(jnp.float32), shift.astype(jnp.float32)


def init_params(key, Cin, Cout, atrous_rates):
    n_dil = len(atrous_rates)
    keys = jax.random.split(key, 8 * (n_dil + 4))
    ki = iter(range(len(keys)))

    def nrm(shape, s=0.1):
        return s * jax.random.normal(keys[next(ki)], shape, jnp.float32)

    def bn(C):
        gamma = 1.0 + 0.1 * jax.random.normal(keys[next(ki)], (C,), jnp.float32)
        beta = 0.1 * jax.random.normal(keys[next(ki)], (C,), jnp.float32)
        mean = 0.1 * jax.random.normal(keys[next(ki)], (C,), jnp.float32)
        var = jnp.abs(jax.random.normal(keys[next(ki)], (C,), jnp.float32)) + 0.5
        return fold_bn(gamma, beta, mean, var)

    params = {"w0": nrm((Cin, Cout)), "bn0": bn(Cout)}           # 1x1 branch
    for i, _ in enumerate(atrous_rates):                         # dilated 3x3
        params[f"w{i + 1}"] = nrm((3, 3, Cin, Cout))             # (ky,kx,Cin,Cout)
        params[f"bn{i + 1}"] = bn(Cout)
    params["w_pool"] = nrm((Cin, Cout))                          # pooling 1x1
    params["bn_pool"] = bn(Cout)
    params["w_proj"] = nrm(((2 + n_dil) * Cout, Cout))           # projection 1x1
    params["bn_proj"] = bn(Cout)
    return params


# ----------------------------- forward pass ----------------------------------

def _pick_samples_per_step(N, cap=8):
    """Samples per grid step: amortize the ~0.35us/step overhead while keeping
    >=2 grid steps whenever N>=2 (so both v7x TensorCores get work)."""
    if N <= 2:
        return 1
    best = 1
    for nb in range(1, min(N // 2, cap) + 1):
        if N % nb == 0:
            best = nb
    return best


def mfac_forward(x_nchw, params, atrous_rates, out_dtype=jnp.float32):
    """MFAC forward (eval-mode BN, Dropout == identity).  NCHW in, NCHW out.

    out_dtype defaults to f32 to match the PyTorch module; downstream consumers
    can pass jnp.bfloat16 to halve HBM writeback for free.
    """
    N, Cin, H, W = x_nchw.shape
    Cout = params["w0"].shape[1]
    n_dil = len(atrous_rates)
    d_max = max(atrous_rates)
    M = H * W
    n_shift = n_dil + 3
    n_br = n_dil + 2

    # Halo size for the in-kernel zero-padded flat row; rounded to a lane tile
    # so the per-sample store into the scratch is 128-aligned.
    pad = ((d_max * (W + 1) + 127) // 128) * 128
    Ls = M + 2 * pad

    Nb = _pick_samples_per_step(N)
    grid = (N // Nb,)

    # ---- the ONLY wrapper-side touch of x: a free reshape.  No pad / cast /
    #      transpose passes over HBM; the bf16 cast and the zero halo are both
    #      built inside the kernel. ------------------------------------------
    x_flat = x_nchw.reshape(N, Cin, M)

    # ---- horizontal-wrap masks (host-side constants, zero runtime cost) -----
    w_idx = np.arange(M) % W
    masks_np = np.stack(
        [((w_idx + dx >= 0) & (w_idx + dx < W)).astype(np.float32)
         for dx in range(-d_max, d_max + 1)], axis=0)              # (2*d_max+1, M)
    masks = jnp.asarray(masks_np)

    # ---- fold BN scales into weights; pack the small operands ---------------
    s0, b0 = params["bn0"]
    wk_list = [s0[:, None] * params["w0"].T]                       # (Cout, Cin)
    shifts = [b0]
    for i in range(n_dil):
        si, bdi = params[f"bn{i + 1}"]
        w = params[f"w{i + 1}"]                                    # (3,3,Cin,Cout)
        for ky in range(3):
            for kx in range(3):
                wk_list.append(si[:, None] * w[ky, kx].T)          # (Cout, Cin)
        shifts.append(bdi)
    wk = jnp.stack(wk_list, axis=0).astype(jnp.bfloat16)           # (1+9*n_dil, Cout, Cin)

    sp, bp = params["bn_pool"]
    wpoolf = sp[:, None] * params["w_pool"].T                      # (Cout, Cin) f32
    shifts.append(bp)

    sj, bj = params["bn_proj"]
    wprojt = sj[:, None] * params["w_proj"].T                      # (Cout, n_br*Cout)
    wpp = wprojt.reshape(Cout, n_br, Cout).transpose(1, 0, 2)      # (n_br, Cout, Cout)
    wpp = wpp.astype(jnp.float32)
    shifts.append(bj)

    # pool 1x1 weight + all BN shifts in one lane-dense f32 slab.
    wsm = jnp.concatenate(
        [wpoolf, jnp.stack(shifts, axis=1)], axis=1).astype(jnp.float32)

    kernel = _make_mfac_kernel(Cin, Cout, H, W, atrous_rates, Nb, pad)

    out = pl.pallas_call(
        kernel,
        out_shape=jax.ShapeDtypeStruct((N, Cout, M), out_dtype),
        grid_spec=pltpu.PrefetchScalarGridSpec(
            num_scalar_prefetch=0,
            grid=grid,
            in_specs=[
                pl.BlockSpec((Nb, Cin, M), lambda n: (n, 0, 0)),               # x (f32)
                pl.BlockSpec((2 * d_max + 1, M), lambda n: (0, 0)),            # w-masks
                pl.BlockSpec((1 + 9 * n_dil, Cout, Cin), lambda n: (0, 0, 0)),  # conv w
                pl.BlockSpec((n_br, Cout, Cout), lambda n: (0, 0, 0)),         # proj w
                pl.BlockSpec((Cout, Cin + n_shift), lambda n: (0, 0)),         # pool w + shifts
            ],
            out_specs=pl.BlockSpec((Nb, Cout, M), lambda n: (n, 0, 0)),
            scratch_shapes=[pltpu.VMEM((Cin, Ls), jnp.bfloat16)],
        ),
        compiler_params=pltpu.CompilerParams(
            dimension_semantics=("parallel",)),
    )(x_flat, masks, wk, wpp, wsm)

    # (N, Cout, H*W) -> (N, Cout, H, W): free reshape, already NCHW.
    return out.reshape(N, Cout, H, W)


# ----------------------------- main -------------------------------------------

if __name__ == "__main__":
    N, Cin, H, W = 2, 4, 16, 16
    Cout = 8
    atrous_rates = (1, 2, 3)   # 1x1 branch + 3 dilated branches + pooling = 5

    key = jax.random.PRNGKey(0)
    kx, kp = jax.random.split(key)
    x = jax.random.normal(kx, (N, Cin, H, W), jnp.float32)
    params = init_params(kp, Cin, Cout, atrous_rates)

    fwd = jax.jit(lambda xx, pp: mfac_forward(xx, pp, atrous_rates))
    out = jax.block_until_ready(fwd(x, params))

    assert out.shape == (N, Cout, H, W), out.shape
    assert bool(jnp.all(jnp.isfinite(out)))
    print("KERNEL_OK")
</pallas_src>

<mosaic_0001>
module attributes {stable_mosaic.version = 11 : i64} {
  func.func @kernel(%arg0: i32, %arg1: memref<1x4x256xf32, #tpu.memory_space<vmem>>, %arg2: memref<7x256xf32, #tpu.memory_space<vmem>>, %arg3: memref<28x8x4xbf16, #tpu.memory_space<vmem>>, %arg4: memref<5x8x8xf32, #tpu.memory_space<vmem>>, %arg5: memref<8x10xf32, #tpu.memory_space<vmem>>, %arg6: memref<1x8x256xf32, #tpu.memory_space<vmem>>, %arg7: memref<4x512xbf16, #tpu.memory_space<vmem>>) attributes {dimension_semantics = [#tpu.dimension_semantics<parallel>], iteration_bounds = array<i64: 2>, scalar_prefetch = 0 : i64, scratch_operands = 1 : i64, tpu.core_type = #tpu.core_type<tc>, window_params = [{transform_indices = @transform_0, window_bounds = array<i64: 1, 4, 256>}, {pipeline_mode = #tpu.pipeline_mode<synchronous>, transform_indices = @transform_1, window_bounds = array<i64: 7, 256>}, {pipeline_mode = #tpu.pipeline_mode<synchronous>, transform_indices = @transform_2, window_bounds = array<i64: 28, 8, 4>}, {pipeline_mode = #tpu.pipeline_mode<synchronous>, transform_indices = @transform_3, window_bounds = array<i64: 5, 8, 8>}, {pipeline_mode = #tpu.pipeline_mode<synchronous>, transform_indices = @transform_4, window_bounds = array<i64: 8, 10>}, {transform_indices = @transform_5, window_bounds = array<i64: 1, 8, 256>}]} {
    %cst = arith.constant 0.000000e+00 : bf16
    %0 = vector.broadcast %cst : bf16 to vector<4x512xbf16>
    %c0 = arith.constant 0 : index
    %c0_0 = arith.constant 0 : index
    %1 = vector.load %arg7[%c0, %c0_0] : memref<4x512xbf16, #tpu.memory_space<vmem>>, vector<4x512xbf16>
    tpu.vector_store %arg7[%c0, %c0_0], %0 {strides = array<i32>} : memref<4x512xbf16, #tpu.memory_space<vmem>>, vector<4x512xbf16>,
    %c0_1 = arith.constant 0 : index
    %c0_2 = arith.constant 0 : index
    %2 = vector.load %arg5[%c0_1, %c0_2] : memref<8x10xf32, #tpu.memory_space<vmem>>, vector<8x4xf32>
    %c0_3 = arith.constant 0 : index
    %c0_4 = arith.constant 0 : index
    %c0_5 = arith.constant 0 : index
    %3 = vector.load %arg1[%c0_3, %c0_4, %c0_5] : memref<1x4x256xf32, #tpu.memory_space<vmem>>, vector<1x4x256xf32>
    %4 = vector.shape_cast %3 : vector<1x4x256xf32> to vector<4x256xf32>
    %5 = arith.truncf %4 : vector<4x256xf32> to vector<4x256xbf16>
    %c0_6 = arith.constant 0 : index
    %c128 = arith.constant 128 : index
    %6 = vector.load %arg7[%c0_6, %c128] : memref<4x512xbf16, #tpu.memory_space<vmem>>, vector<4x256xbf16>
    tpu.vector_store %arg7[%c0_6, %c128], %5 {strides = array<i32>} : memref<4x512xbf16, #tpu.memory_space<vmem>>, vector<4x256xbf16>,
    %cst_7 = arith.constant dense<0.000000e+00> : vector<4xf32>
    %7 = vector.multi_reduction <add>, %4, %cst_7 [1] : vector<4x256xf32> to vector<4xf32>
    %8 = vector.shape_cast %7 : vector<4xf32> to vector<4x1xf32>
    %cst_8 = arith.constant 3.906250e-03 : f32
    %9 = vector.broadcast %cst_8 : f32 to vector<4x1xf32>
    %10 = arith.mulf %8, %9 : vector<4x1xf32>
    %cst_9 = arith.constant dense<0.000000e+00> : vector<8x1xf32>
    %11 = tpu.matmul %2, %10, %cst_9 {dimension_numbers = #tpu.dot_dimension_numbers<[1], [0], [0], [1], [0, 0, 1, 1], [], []>} : vector<8x4xf32>, vector<4x1xf32>, vector<8x1xf32> -> vector<8x1xf32>
    %c0_10 = arith.constant 0 : index
    %c8 = arith.constant 8 : index
    %12 = vector.load %arg5[%c0_10, %c8] : memref<8x10xf32, #tpu.memory_space<vmem>>, vector<8x1xf32>
    %13 = arith.addf %11, %12 : vector<8x1xf32>
    %cst_11 = arith.constant 0.707106769 : f32
    %14 = vector.broadcast %cst_11 : f32 to vector<8x1xf32>
    %15 = arith.mulf %13, %14 : vector<8x1xf32>
    %cst_12 = arith.constant 0.000000e+00 : f32
    %16 = vector.broadcast %cst_12 : f32 to vector<8x1xf32>
    %17 = arith.cmpf oge, %15, %16 : vector<8x1xf32>
    %cst_13 = arith.constant 1.000000e+00 : f32
    %cst_14 = arith.constant -1.000000e+00 : f32
    %18 = vector.broadcast %cst_13 : f32 to vector<8x1xf32>
    %19 = vector.broadcast %cst_14 : f32 to vector<8x1xf32>
    %20 = arith.select %17, %18, %19 : vector<8x1xi1>, vector<8x1xf32>
    %21 = math.absf %15 : vector<8x1xf32>
    %cst_15 = arith.constant 0.327591091 : f32
    %22 = vector.broadcast %cst_15 : f32 to vector<8x1xf32>
    %23 = arith.mulf %22, %21 : vector<8x1xf32>
    %cst_16 = arith.constant 1.000000e+00 : f32
    %24 = vector.broadcast %cst_16 : f32 to vector<8x1xf32>
    %25 = arith.addf %24, %23 : vector<8x1xf32>
    %cst_17 = arith.constant 1.000000e+00 : f32
    %26 = vector.broadcast %cst_17 : f32 to vector<8x1xf32>
    %27 = arith.divf %26, %25 : vector<8x1xf32>
    %cst_18 = arith.constant 1.06140542 : f32
    %28 = vector.broadcast %cst_18 : f32 to vector<8x1xf32>
    %29 = arith.mulf %28, %27 : vector<8x1xf32>
    %cst_19 = arith.constant -1.45315206 : f32
    %30 = vector.broadcast %cst_19 : f32 to vector<8x1xf32>
    %31 = arith.addf %29, %30 : vector<8x1xf32>
    %32 = arith.mulf %31, %27 : vector<8x1xf32>
    %cst_20 = arith.constant 1.42141378 : f32
    %33 = vector.broadcast %cst_20 : f32 to vector<8x1xf32>
    %34 = arith.addf %32, %33 : vector<8x1xf32>
    %35 = arith.mulf %34, %27 : vector<8x1xf32>
    %cst_21 = arith.constant -0.284496725 : f32
    %36 = vector.broadcast %cst_21 : f32 to vector<8x1xf32>
    %37 = arith.addf %35, %36 : vector<8x1xf32>
    %38 = arith.mulf %37, %27 : vector<8x1xf32>
    %cst_22 = arith.constant 0.254829586 : f32
    %39 = vector.broadcast %cst_22 : f32 to vector<8x1xf32>
    %40 = arith.addf %38, %39 : vector<8x1xf32>
    %41 = arith.mulf %40, %27 : vector<8x1xf32>
    %cst_23 = arith.constant 0.000000e+00 : f32
    %42 = vector.broadcast %cst_23 : f32 to vector<8x1xf32>
    %43 = arith.subf %42, %21 : vector<8x1xf32>
    %44 = arith.mulf %43, %21 : vector<8x1xf32>
    %45 = math.exp %44 : vector<8x1xf32>
    %46 = arith.mulf %41, %45 : vector<8x1xf32>
    %cst_24 = arith.constant 1.000000e+00 : f32
    %47 = vector.broadcast %cst_24 : f32 to vector<8x1xf32>
    %48 = arith.subf %47, %46 : vector<8x1xf32>
    %49 = arith.mulf %20, %48 : vector<8x1xf32>
    %cst_25 = arith.constant 5.000000e-01 : f32
    %50 = vector.broadcast %cst_25 : f32 to vector<8x1xf32>
    %51 = arith.mulf %50, %13 : vector<8x1xf32>
    %cst_26 = arith.constant 1.000000e+00 : f32
    %52 = vector.broadcast %cst_26 : f32 to vector<8x1xf32>
    %53 = arith.addf %52, %49 : vector<8x1xf32>
    %54 = arith.mulf %51, %53 : vector<8x1xf32>
    %c4 = arith.constant 4 : index
    %c0_27 = arith.constant 0 : index
    %c0_28 = arith.constant 0 : index
    %55 = vector.load %arg4[%c4, %c0_27, %c0_28] : memref<5x8x8xf32, #tpu.memory_space<vmem>>, vector<1x8x8xf32>
    %56 = vector.shape_cast %55 : vector<1x8x8xf32> to vector<8x8xf32>
    %cst_29 = arith.constant dense<0.000000e+00> : vector<8x1xf32>
    %57 = tpu.matmul %56, %54, %cst_29 {dimension_numbers = #tpu.dot_dimension_numbers<[1], [0], [0], [1], [0, 0, 1, 1], [], []>} : vector<8x8xf32>, vector<8x1xf32>, vector<8x1xf32> -> vector<8x1xf32>
    %c0_30 = arith.constant 0 : index
    %c0_31 = arith.constant 0 : index
    %c0_32 = arith.constant 0 : index
    %58 = vector.load %arg3[%c0_30, %c0_31, %c0_32] : memref<28x8x4xbf16, #tpu.memory_space<vmem>>, vector<1x8x4xbf16>
    %59 = vector.shape_cast %58 : vector<1x8x4xbf16> to vector<8x4xbf16>
    %cst_33 = arith.constant dense<0.000000e+00> : vector<8x256xf32>
    %60 = tpu.matmul %59, %5, %cst_33 {dimension_numbers = #tpu.dot_dimension_numbers<[1], [0], [0], [1], [0, 0, 1, 1], [], []>} : vector<8x4xbf16>, vector<4x256xbf16>, vector<8x256xf32> -> vector<8x256xf32>
    %c0_34 = arith.constant 0 : index
    %c4_35 = arith.constant 4 : index
    %61 = vector.load %arg5[%c0_34, %c4_35] : memref<8x10xf32, #tpu.memory_space<vmem>>, vector<8x1xf32>
    %62 = vector.broadcast %61 : vector<8x1xf32> to vector<8x256xf32>
    %63 = arith.addf %60, %62 : vector<8x256xf32>
    %cst_36 = arith.constant 0.707106769 : f32
    %64 = vector.broadcast %cst_36 : f32 to vector<8x256xf32>
    %65 = arith.mulf %63, %64 : vector<8x256xf32>
    %cst_37 = arith.constant 0.000000e+00 : f32
    %66 = vector.broadcast %cst_37 : f32 to vector<8x256xf32>
    %67 = arith.cmpf oge, %65, %66 : vector<8x256xf32>
    %cst_38 = arith.constant 1.000000e+00 : f32
    %cst_39 = arith.constant -1.000000e+00 : f32
    %68 = vector.broadcast %cst_38 : f32 to vector<8x256xf32>
    %69 = vector.broadcast %cst_39 : f32 to vector<8x256xf32>
    %70 = arith.select %67, %68, %69 : vector<8x256xi1>, vector<8x256xf32>
    %71 = math.absf %65 : vector<8x256xf32>
    %cst_40 = arith.constant 0.327591091 : f32
    %72 = vector.broadcast %cst_40 : f32 to vector<8x256xf32>
    %73 = arith.mulf %72, %71 : vector<8x256xf32>
    %cst_41 = arith.constant 1.000000e+00 : f32
    %74 = vector.broadcast %cst_41 : f32 to vector<8x256xf32>
    %75 = arith.addf %74, %73 : vector<8x256xf32>
    %cst_42 = arith.constant 1.000000e+00 : f32
    %76 = vector.broadcast %cst_42 : f32 to vector<8x256xf32>
    %77 = arith.divf %76, %75 : vector<8x256xf32>
    %cst_43 = arith.constant 1.06140542 : f32
    %78 = vector.broadcast %cst_43 : f32 to vector<8x256xf32>
    %79 = arith.mulf %78, %77 : vector<8x256xf32>
    %cst_44 = arith.constant -1.45315206 : f32
    %80 = vector.broadcast %cst_44 : f32 to vector<8x256xf32>
    %81 = arith.addf %79, %80 : vector<8x256xf32>
    %82 = arith.mulf %81, %77 : vector<8x256xf32>
    %cst_45 = arith.constant 1.42141378 : f32
    %83 = vector.broadcast %cst_45 : f32 to vector<8x256xf32>
    %84 = arith.addf %82, %83 : vector<8x256xf32>
    %85 = arith.mulf %84, %77 : vector<8x256xf32>
    %cst_46 = arith.constant -0.284496725 : f32
    %86 = vector.broadcast %cst_46 : f32 to vector<8x256xf32>
    %87 = arith.addf %85, %86 : vector<8x256xf32>
    %88 = arith.mulf %87, %77 : vector<8x256xf32>
    %cst_47 = arith.constant 0.254829586 : f32
    %89 = vector.broadcast %cst_47 : f32 to vector<8x256xf32>
    %90 = arith.addf %88, %89 : vector<8x256xf32>
    %91 = arith.mulf %90, %77 : vector<8x256xf32>
    %cst_48 = arith.constant 0.000000e+00 : f32
    %92 = vector.broadcast %cst_48 : f32 to vector<8x256xf32>
    %93 = arith.subf %92, %71 : vector<8x256xf32>
    %94 = arith.mulf %93, %71 : vector<8x256xf32>
    %95 = math.exp %94 : vector<8x256xf32>
    %96 = arith.mulf %91, %95 : vector<8x256xf32>
    %cst_49 = arith.constant 1.000000e+00 : f32
    %97 = vector.broadcast %cst_49 : f32 to vector<8x256xf32>
    %98 = arith.subf %97, %96 : vector<8x256xf32>
    %99 = arith.mulf %70, %98 : vector<8x256xf32>
    %cst_50 = arith.constant 5.000000e-01 : f32
    %100 = vector.broadcast %cst_50 : f32 to vector<8x256xf32>
    %101 = arith.mulf %100, %63 : vector<8x256xf32>
    %cst_51 = arith.constant 1.000000e+00 : f32
    %102 = vector.broadcast %cst_51 : f32 to vector<8x256xf32>
    %103 = arith.addf %102, %99 : vector<8x256xf32>
    %104 = arith.mulf %101, %103 : vector<8x256xf32>
    %c0_52 = arith.constant 0 : index
    %c0_53 = arith.constant 0 : index
    %c0_54 = arith.constant 0 : index
    %105 = vector.load %arg4[%c0_52, %c0_53, %c0_54] : memref<5x8x8xf32, #tpu.memory_space<vmem>>, vector<1x8x8xf32>
    %106 = vector.shape_cast %105 : vector<1x8x8xf32> to vector<8x8xf32>
    %cst_55 = arith.constant dense<0.000000e+00> : vector<8x256xf32>
    %107 = tpu.matmul %106, %104, %cst_55 {dimension_numbers = #tpu.dot_dimension_numbers<[1], [0], [0], [1], [0, 0, 1, 1], [], []>} : vector<8x8xf32>, vector<8x256xf32>, vector<8x256xf32> -> vector<8x256xf32>
    %c1 = arith.constant 1 : index
    %c0_56 = arith.constant 0 : index
    %c0_57 = arith.constant 0 : index
    %108 = vector.load %arg3[%c1, %c0_56, %c0_57] : memref<28x8x4xbf16, #tpu.memory_space<vmem>>, vector<1x8x4xbf16>
    %109 = vector.shape_cast %108 : vector<1x8x4xbf16> to vector<8x4xbf16>
    %c0_58 = arith.constant 0 : index
    %c111 = arith.constant 111 : index
    %110 = vector.load %arg7[%c0_58, %c111] : memref<4x512xbf16, #tpu.memory_space<vmem>>, vector<4x256xbf16>
    %cst_59 = arith.constant dense<0.000000e+00> : vector<8x256xf32>
    %111 = tpu.matmul %109, %110, %cst_59 {dimension_numbers = #tpu.dot_dimension_numbers<[1], [0], [0], [1], [0, 0, 1, 1], [], []>} : vector<8x4xbf16>, vector<4x256xbf16>, vector<8x256xf32> -> vector<8x256xf32>
    %c4_60 = arith.constant 4 : index
    %c0_61 = arith.constant 0 : index
    %c0_62 = arith.constant 0 : index
    %112 = vector.load %arg3[%c4_60, %c0_61, %c0_62] : memref<28x8x4xbf16, #tpu.memory_space<vmem>>, vector<1x8x4xbf16>
    %113 = vector.shape_cast %112 : vector<1x8x4xbf16> to vector<8x4xbf16>
    %c0_63 = arith.constant 0 : index
    %c127 = arith.constant 127 : index
    %114 = vector.load %arg7[%c0_63, %c127] : memref<4x512xbf16, #tpu.memory_space<vmem>>, vector<4x256xbf16>
    %cst_64 = arith.constant dense<0.000000e+00> : vector<8x256xf32>
    %115 = tpu.matmul %113, %114, %cst_64 {dimension_numbers = #tpu.dot_dimension_numbers<[1], [0], [0], [1], [0, 0, 1, 1], [], []>} : vector<8x4xbf16>, vector<4x256xbf16>, vector<8x256xf32> -> vector<8x256xf32>
    %116 = arith.addf %111, %115 : vector<8x256xf32>
    %c7 = arith.constant 7 : index
    %c0_65 = arith.constant 0 : index
    %c0_66 = arith.constant 0 : index
    %117 = vector.load %arg3[%c7, %c0_65, %c0_66] : memref<28x8x4xbf16, #tpu.memory_space<vmem>>, vector<1x8x4xbf16>
    %118 = vector.shape_cast %117 : vector<1x8x4xbf16> to vector<8x4xbf16>
    %c0_67 = arith.constant 0 : index
    %c143 = arith.constant 143 : index
    %119 = vector.load %arg7[%c0_67, %c143] : memref<4x512xbf16, #tpu.memory_space<vmem>>, vector<4x256xbf16>
    %cst_68 = arith.constant dense<0.000000e+00> : vector<8x256xf32>
    %120 = tpu.matmul %118, %119, %cst_68 {dimension_numbers = #tpu.dot_dimension_numbers<[1], [0], [0], [1], [0, 0, 1, 1], [], []>} : vector<8x4xbf16>, vector<4x256xbf16>, vector<8x256xf32> -> vector<8x256xf32>
    %121 = arith.addf %116, %120 : vector<8x256xf32>
    %c2 = arith.constant 2 : index
    %c0_69 = arith.constant 0 : index
    %122 = vector.load %arg2[%c2, %c0_69] : memref<7x256xf32, #tpu.memory_space<vmem>>, vector<1x256xf32>
    %123 = vector.broadcast %122 : vector<1x256xf32> to vector<8x256xf32>
    %124 = arith.mulf %121, %123 : vector<8x256xf32>
    %c2_70 = arith.constant 2 : index
    %c0_71 = arith.constant 0 : index
    %c0_72 = arith.constant 0 : index
    %125 = vector.load %arg3[%c2_70, %c0_71, %c0_72] : memref<28x8x4xbf16, #tpu.memory_space<vmem>>, vector<1x8x4xbf16>
    %126 = vector.shape_cast %125 : vector<1x8x4xbf16> to vector<8x4xbf16>
    %c0_73 = arith.constant 0 : index
    %c112 = arith.constant 112 : index
    %127 = vector.load %arg7[%c0_73, %c112] : memref<4x512xbf16, #tpu.memory_space<vmem>>, vector<4x256xbf16>
    %cst_74 = arith.constant dense<0.000000e+00> : vector<8x256xf32>
    %128 = tpu.matmul %126, %127, %cst_74 {dimension_numbers = #tpu.dot_dimension_numbers<[1], [0], [0], [1], [0, 0, 1, 1], [], []>} : vector<8x4xbf16>, vector<4x256xbf16>, vector<8x256xf32> -> vector<8x256xf32>
    %c5 = arith.constant 5 : index
    %c0_75 = arith.constant 0 : index
    %c0_76 = arith.constant 0 : index
    %129 = vector.load %arg3[%c5, %c0_75, %c0_76] : memref<28x8x4xbf16, #tpu.memory_space<vmem>>, vector<1x8x4xbf16>
    %130 = vector.shape_cast %129 : vector<1x8x4xbf16> to vector<8x4xbf16>
    %cst_77 = arith.constant dense<0.000000e+00> : vector<8x256xf32>
    %131 = tpu.matmul %130, %5, %cst_77 {dimension_numbers = #tpu.dot_dimension_numbers<[1], [0], [0], [1], [0, 0, 1, 1], [], []>} : vector<8x4xbf16>, vector<4x256xbf16>, vector<8x256xf32> -> vector<8x256xf32>
    %132 = arith.addf %128, %131 : vector<8x256xf32>
    %c8_78 = arith.constant 8 : index
    %c0_79 = arith.constant 0 : index
    %c0_80 = arith.constant 0 : index
    %133 = vector.load %arg3[%c8_78, %c0_79, %c0_80] : memref<28x8x4xbf16, #tpu.memory_space<vmem>>, vector<1x8x4xbf16>
    %134 = vector.shape_cast %133 : vector<1x8x4xbf16> to vector<8x4xbf16>
    %c0_81 = arith.constant 0 : index
    %c144 = arith.constant 144 : index
    %135 = vector.load %arg7[%c0_81, %c144] : memref<4x512xbf16, #tpu.memory_space<vmem>>, vector<4x256xbf16>
    %cst_82 = arith.constant dense<0.000000e+00> : vector<8x256xf32>
    %136 = tpu.matmul %134, %135, %cst_82 {dimension_numbers = #tpu.dot_dimension_numbers<[1], [0], [0], [1], [0, 0, 1, 1], [], []>} : vector<8x4xbf16>, vector<4x256xbf16>, vector<8x256xf32> -> vector<8x256xf32>
    %137 = arith.addf %132, %136 : vector<8x256xf32>
    %138 = arith.addf %124, %137 : vector<8x256xf32>
    %c3 = arith.constant 3 : index
    %c0_83 = arith.constant 0 : index
    %c0_84 = arith.constant 0 : index
    %139 = vector.load %arg3[%c3, %c0_83, %c0_84] : memref<28x8x4xbf16, #tpu.memory_space<vmem>>, vector<1x8x4xbf16>
    %140 = vector.shape_cast %139 : vector<1x8x4xbf16> to vector<8x4xbf16>
    %c0_85 = arith.constant 0 : index
    %c113 = arith.constant 113 : index
    %141 = vector.load %arg7[%c0_85, %c113] : memref<4x512xbf16, #tpu.memory_space<vmem>>, vector<4x256xbf16>
    %cst_86 = arith.constant dense<0.000000e+00> : vector<8x256xf32>
    %142 = tpu.matmul %140, %141, %cst_86 {dimension_numbers = #tpu.dot_dimension_numbers<[1], [0], [0], [1], [0, 0, 1, 1], [], []>} : vector<8x4xbf16>, vector<4x256xbf16>, vector<8x256xf32> -> vector<8x256xf32>
    %c6 = arith.constant 6 : index
    %c0_87 = arith.constant 0 : index
    %c0_88 = arith.constant 0 : index
    %143 = vector.load %arg3[%c6, %c0_87, %c0_88] : memref<28x8x4xbf16, #tpu.memory_space<vmem>>, vector<1x8x4xbf16>
    %144 = vector.shape_cast %143 : vector<1x8x4xbf16> to vector<8x4xbf16>
    %c0_89 = arith.constant 0 : index
    %c129 = arith.constant 129 : index
    %145 = vector.load %arg7[%c0_89, %c129] : memref<4x512xbf16, #tpu.memory_space<vmem>>, vector<4x256xbf16>
    %cst_90 = arith.constant dense<0.000000e+00> : vector<8x256xf32>
    %146 = tpu.matmul %144, %145, %cst_90 {dimension_numbers = #tpu.dot_dimension_numbers<[1], [0], [0], [1], [0, 0, 1, 1], [], []>} : vector<8x4xbf16>, vector<4x256xbf16>, vector<8x256xf32> -> vector<8x256xf32>
    %147 = arith.addf %142, %146 : vector<8x256xf32>
    %c9 = arith.constant 9 : index
    %c0_91 = arith.constant 0 : index
    %c0_92 = arith.constant 0 : index
    %148 = vector.load %arg3[%c9, %c0_91, %c0_92] : memref<28x8x4xbf16, #tpu.memory_space<vmem>>, vector<1x8x4xbf16>
    %149 = vector.shape_cast %148 : vector<1x8x4xbf16> to vector<8x4xbf16>
    %c0_93 = arith.constant 0 : index
    %c145 = arith.constant 145 : index
    %150 = vector.load %arg7[%c0_93, %c145] : memref<4x512xbf16, #tpu.memory_space<vmem>>, vector<4x256xbf16>
    %cst_94 = arith.constant dense<0.000000e+00> : vector<8x256xf32>
    %151 = tpu.matmul %149, %150, %cst_94 {dimension_numbers = #tpu.dot_dimension_numbers<[1], [0], [0], [1], [0, 0, 1, 1], [], []>} : vector<8x4xbf16>, vector<4x256xbf16>, vector<8x256xf32> -> vector<8x256xf32>
    %152 = arith.addf %147, %151 : vector<8x256xf32>
    %c4_95 = arith.constant 4 : index
    %c0_96 = arith.constant 0 : index
    %153 = vector.load %arg2[%c4_95, %c0_96] : memref<7x256xf32, #tpu.memory_space<vmem>>, vector<1x256xf32>
    %154 = vector.broadcast %153 : vector<1x256xf32> to vector<8x256xf32>
    %155 = arith.mulf %152, %154 : vector<8x256xf32>
    %156 = arith.addf %138, %155 : vector<8x256xf32>
    %c0_97 = arith.constant 0 : index
    %c5_98 = arith.constant 5 : index
    %157 = vector.load %arg5[%c0_97, %c5_98] : memref<8x10xf32, #tpu.memory_space<vmem>>, vector<8x1xf32>
    %158 = vector.broadcast %157 : vector<8x1xf32> to vector<8x256xf32>
    %159 = arith.addf %156, %158 : vector<8x256xf32>
    %cst_99 = arith.constant 0.707106769 : f32
    %160 = vector.broadcast %cst_99 : f32 to vector<8x256xf32>
    %161 = arith.mulf %159, %160 : vector<8x256xf32>
    %cst_100 = arith.constant 0.000000e+00 : f32
    %162 = vector.broadcast %cst_100 : f32 to vector<8x256xf32>
    %163 = arith.cmpf oge, %161, %162 : vector<8x256xf32>
    %cst_101 = arith.constant 1.000000e+00 : f32
    %cst_102 = arith.constant -1.000000e+00 : f32
    %164 = vector.broadcast %cst_101 : f32 to vector<8x256xf32>
    %165 = vector.broadcast %cst_102 : f32 to vector<8x256xf32>
    %166 = arith.select %163, %164, %165 : vector<8x256xi1>, vector<8x256xf32>
    %167 = math.absf %161 : vector<8x256xf32>
    %cst_103 = arith.constant 0.327591091 : f32
    %168 = vector.broadcast %cst_103 : f32 to vector<8x256xf32>
    %169 = arith.mulf %168, %167 : vector<8x256xf32>
    %cst_104 = arith.constant 1.000000e+00 : f32
    %170 = vector.broadcast %cst_104 : f32 to vector<8x256xf32>
    %171 = arith.addf %170, %169 : vector<8x256xf32>
    %cst_105 = arith.constant 1.000000e+00 : f32
    %172 = vector.broadcast %cst_105 : f32 to vector<8x256xf32>
    %173 = arith.divf %172, %171 : vector<8x256xf32>
    %cst_106 = arith.constant 1.06140542 : f32
    %174 = vector.broadcast %cst_106 : f32 to vector<8x256xf32>
    %175 = arith.mulf %174, %173 : vector<8x256xf32>
    %cst_107 = arith.constant -1.45315206 : f32
    %176 = vector.broadcast %cst_107 : f32 to vector<8x256xf32>
    %177 = arith.addf %175, %176 : vector<8x256xf32>
    %178 = arith.mulf %177, %173 : vector<8x256xf32>
    %cst_108 = arith.constant 1.42141378 : f32
    %179 = vector.broadcast %cst_108 : f32 to vector<8x256xf32>
    %180 = arith.addf %178, %179 : vector<8x256xf32>
    %181 = arith.mulf %180, %173 : vector<8x256xf32>
    %cst_109 = arith.constant -0.284496725 : f32
    %182 = vector.broadcast %cst_109 : f32 to vector<8x256xf32>
    %183 = arith.addf %181, %182 : vector<8x256xf32>
    %184 = arith.mulf %183, %173 : vector<8x256xf32>
    %cst_110 = arith.constant 0.254829586 : f32
    %185 = vector.broadcast %cst_110 : f32 to vector<8x256xf32>
    %186 = arith.addf %184, %185 : vector<8x256xf32>
    %187 = arith.mulf %186, %173 : vector<8x256xf32>
    %cst_111 = arith.constant 0.000000e+00 : f32
    %188 = vector.broadcast %cst_111 : f32 to vector<8x256xf32>
    %189 = arith.subf %188, %167 : vector<8x256xf32>
    %190 = arith.mulf %189, %167 : vector<8x256xf32>
    %191 = math.exp %190 : vector<8x256xf32>
    %192 = arith.mulf %187, %191 : vector<8x256xf32>
    %cst_112 = arith.constant 1.000000e+00 : f32
    %193 = vector.broadcast %cst_112 : f32 to vector<8x256xf32>
    %194 = arith.subf %193, %192 : vector<8x256xf32>
    %195 = arith.mulf %166, %194 : vector<8x256xf32>
    %cst_113 = arith.constant 5.000000e-01 : f32
    %196 = vector.broadcast %cst_113 : f32 to vector<8x256xf32>
    %197 = arith.mulf %196, %159 : vector<8x256xf32>
    %cst_114 = arith.constant 1.000000e+00 : f32
    %198 = vector.broadcast %cst_114 : f32 to vector<8x256xf32>
    %199 = arith.addf %198, %195 : vector<8x256xf32>
    %200 = arith.mulf %197, %199 : vector<8x256xf32>
    %c1_115 = arith.constant 1 : index
    %c0_116 = arith.constant 0 : index
    %c0_117 = arith.constant 0 : index
    %201 = vector.load %arg4[%c1_115, %c0_116, %c0_117] : memref<5x8x8xf32, #tpu.memory_space<vmem>>, vector<1x8x8xf32>
    %202 = vector.shape_cast %201 : vector<1x8x8xf32> to vector<8x8xf32>
    %cst_118 = arith.constant dense<0.000000e+00> : vector<8x256xf32>
    %203 = tpu.matmul %202, %200, %cst_118 {dimension_numbers = #tpu.dot_dimension_numbers<[1], [0], [0], [1], [0, 0, 1, 1], [], []>} : vector<8x8xf32>, vector<8x256xf32>, vector<8x256xf32> -> vector<8x256xf32>
    %204 = arith.addf %107, %203 : vector<8x256xf32>
    %c10 = arith.constant 10 : index
    %c0_119 = arith.constant 0 : index
    %c0_120 = arith.constant 0 : index
    %205 = vector.load %arg3[%c10, %c0_119, %c0_120] : memref<28x8x4xbf16, #tpu.memory_space<vmem>>, vector<1x8x4xbf16>
    %206 = vector.shape_cast %205 : vector<1x8x4xbf16> to vector<8x4xbf16>
    %c0_121 = arith.constant 0 : index
    %c94 = arith.constant 94 : index
    %207 = vector.load %arg7[%c0_121, %c94] : memref<4x512xbf16, #tpu.memory_space<vmem>>, vector<4x256xbf16>
    %cst_122 = arith.constant dense<0.000000e+00> : vector<8x256xf32>
    %208 = tpu.matmul %206, %207, %cst_122 {dimension_numbers = #tpu.dot_dimension_numbers<[1], [0], [0], [1], [0, 0, 1, 1], [], []>} : vector<8x4xbf16>, vector<4x256xbf16>, vector<8x256xf32> -> vector<8x256xf32>
    %c13 = arith.constant 13 : index
    %c0_123 = arith.constant 0 : index
    %c0_124 = arith.constant 0 : index
    %209 = vector.load %arg3[%c13, %c0_123, %c0_124] : memref<28x8x4xbf16, #tpu.memory_space<vmem>>, vector<1x8x4xbf16>
    %210 = vector.shape_cast %209 : vector<1x8x4xbf16> to vector<8x4xbf16>
    %c0_125 = arith.constant 0 : index
    %c126 = arith.constant 126 : index
    %211 = vector.load %arg7[%c0_125, %c126] : memref<4x512xbf16, #tpu.memory_space<vmem>>, vector<4x256xbf16>
    %cst_126 = arith.constant dense<0.000000e+00> : vector<8x256xf32>
    %212 = tpu.matmul %210, %211, %cst_126 {dimension_numbers = #tpu.dot_dimension_numbers<[1], [0], [0], [1], [0, 0, 1, 1], [], []>} : vector<8x4xbf16>, vector<4x256xbf16>, vector<8x256xf32> -> vector<8x256xf32>
    %213 = arith.addf %208, %212 : vector<8x256xf32>
    %c16 = arith.constant 16 : index
    %c0_127 = arith.constant 0 : index
    %c0_128 = arith.constant 0 : index
    %214 = vector.load %arg3[%c16, %c0_127, %c0_128] : memref<28x8x4xbf16, #tpu.memory_space<vmem>>, vector<1x8x4xbf16>
    %215 = vector.shape_cast %214 : vector<1x8x4xbf16> to vector<8x4xbf16>
    %c0_129 = arith.constant 0 : index
    %c158 = arith.constant 158 : index
    %216 = vector.load %arg7[%c0_129, %c158] : memref<4x512xbf16, #tpu.memory_space<vmem>>, vector<4x256xbf16>
    %cst_130 = arith.constant dense<0.000000e+00> : vector<8x256xf32>
    %217 = tpu.matmul %215, %216, %cst_130 {dimension_numbers = #tpu.dot_dimension_numbers<[1], [0], [0], [1], [0, 0, 1, 1], [], []>} : vector<8x4xbf16>, vector<4x256xbf16>, vector<8x256xf32> -> vector<8x256xf32>
    %218 = arith.addf %213, %217 : vector<8x256xf32>
    %c1_131 = arith.constant 1 : index
    %c0_132 = arith.constant 0 : index
    %219 = vector.load %arg2[%c1_131, %c0_132] : memref<7x256xf32, #tpu.memory_space<vmem>>, vector<1x256xf32>
    %220 = vector.broadcast %219 : vector<1x256xf32> to vector<8x256xf32>
    %221 = arith.mulf %218, %220 : vector<8x256xf32>
    %c11 = arith.constant 11 : index
    %c0_133 = arith.constant 0 : index
    %c0_134 = arith.constant 0 : index
    %222 = vector.load %arg3[%c11, %c0_133, %c0_134] : memref<28x8x4xbf16, #tpu.memory_space<vmem>>, vector<1x8x4xbf16>
    %223 = vector.shape_cast %222 : vector<1x8x4xbf16> to vector<8x4xbf16>
    %c0_135 = arith.constant 0 : index
    %c96 = arith.constant 96 : index
    %224 = vector.load %arg7[%c0_135, %c96] : memref<4x512xbf16, #tpu.memory_space<vmem>>, vector<4x256xbf16>
    %cst_136 = arith.constant dense<0.000000e+00> : vector<8x256xf32>
    %225 = tpu.matmul %223, %224, %cst_136 {dimension_numbers = #tpu.dot_dimension_numbers<[1], [0], [0], [1], [0, 0, 1, 1], [], []>} : vector<8x4xbf16>, vector<4x256xbf16>, vector<8x256xf32> -> vector<8x256xf32>
    %c14 = arith.constant 14 : index
    %c0_137 = arith.constant 0 : index
    %c0_138 = arith.constant 0 : index
    %226 = vector.load %arg3[%c14, %c0_137, %c0_138] : memref<28x8x4xbf16, #tpu.memory_space<vmem>>, vector<1x8x4xbf16>
    %227 = vector.shape_cast %226 : vector<1x8x4xbf16> to vector<8x4xbf16>
    %cst_139 = arith.constant dense<0.000000e+00> : vector<8x256xf32>
    %228 = tpu.matmul %227, %5, %cst_139 {dimension_numbers = #tpu.dot_dimension_numbers<[1], [0], [0], [1], [0, 0, 1, 1], [], []>} : vector<8x4xbf16>, vector<4x256xbf16>, vector<8x256xf32> -> vector<8x256xf32>
    %229 = arith.addf %225, %228 : vector<8x256xf32>
    %c17 = arith.constant 17 : index
    %c0_140 = arith.constant 0 : index
    %c0_141 = arith.constant 0 : index
    %230 = vector.load %arg3[%c17, %c0_140, %c0_141] : memref<28x8x4xbf16, #tpu.memory_space<vmem>>, vector<1x8x4xbf16>
    %231 = vector.shape_cast %230 : vector<1x8x4xbf16> to vector<8x4xbf16>
    %c0_142 = arith.constant 0 : index
    %c160 = arith.constant 160 : index
    %232 = vector.load %arg7[%c0_142, %c160] : memref<4x512xbf16, #tpu.memory_space<vmem>>, vector<4x256xbf16>
    %cst_143 = arith.constant dense<0.000000e+00> : vector<8x256xf32>
    %233 = tpu.matmul %231, %232, %cst_143 {dimension_numbers = #tpu.dot_dimension_numbers<[1], [0], [0], [1], [0, 0, 1, 1], [], []>} : vector<8x4xbf16>, vector<4x256xbf16>, vector<8x256xf32> -> vector<8x256xf32>
    %234 = arith.addf %229, %233 : vector<8x256xf32>
    %235 = arith.addf %221, %234 : vector<8x256xf32>
    %c12 = arith.constant 12 : index
    %c0_144 = arith.constant 0 : index
    %c0_145 = arith.constant 0 : index
    %236 = vector.load %arg3[%c12, %c0_144, %c0_145] : memref<28x8x4xbf16, #tpu.memory_space<vmem>>, vector<1x8x4xbf16>
    %237 = vector.shape_cast %236 : vector<1x8x4xbf16> to vector<8x4xbf16>
    %c0_146 = arith.constant 0 : index
    %c98 = arith.constant 98 : index
    %238 = vector.load %arg7[%c0_146, %c98] : memref<4x512xbf16, #tpu.memory_space<vmem>>, vector<4x256xbf16>
    %cst_147 = arith.constant dense<0.000000e+00> : vector<8x256xf32>
    %239 = tpu.matmul %237, %238, %cst_147 {dimension_numbers = #tpu.dot_dimension_numbers<[1], [0], [0], [1], [0, 0, 1, 1], [], []>} : vector<8x4xbf16>, vector<4x256xbf16>, vector<8x256xf32> -> vector<8x256xf32>
    %c15 = arith.constant 15 : index
    %c0_148 = arith.constant 0 : index
    %c0_149 = arith.constant 0 : index
    %240 = vector.load %arg3[%c15, %c0_148, %c0_149] : memref<28x8x4xbf16, #tpu.memory_space<vmem>>, vector<1x8x4xbf16>
    %241 = vector.shape_cast %240 : vector<1x8x4xbf16> to vector<8x4xbf16>
    %c0_150 = arith.constant 0 : index
    %c130 = arith.constant 130 : index
    %242 = vector.load %arg7[%c0_150, %c130] : memref<4x512xbf16, #tpu.memory_space<vmem>>, vector<4x256xbf16>
    %cst_151 = arith.constant dense<0.000000e+00> : vector<8x256xf32>
    %243 = tpu.matmul %241, %242, %cst_151 {dimension_numbers = #tpu.dot_dimension_numbers<[1], [0], [0], [1], [0, 0, 1, 1], [], []>} : vector<8x4xbf16>, vector<4x256xbf16>, vector<8x256xf32> -> vector<8x256xf32>
    %244 = arith.addf %239, %243 : vector<8x256xf32>
    %c18 = arith.constant 18 : index
    %c0_152 = arith.constant 0 : index
    %c0_153 = arith.constant 0 : index
    %245 = vector.load %arg3[%c18, %c0_152, %c0_153] : memref<28x8x4xbf16, #tpu.memory_space<vmem>>, vector<1x8x4xbf16>
    %246 = vector.shape_cast %245 : vector<1x8x4xbf16> to vector<8x4xbf16>
    %c0_154 = arith.constant 0 : index
    %c162 = arith.constant 162 : index
    %247 = vector.load %arg7[%c0_154, %c162] : memref<4x512xbf16, #tpu.memory_space<vmem>>, vector<4x256xbf16>
    %cst_155 = arith.constant dense<0.000000e+00> : vector<8x256xf32>
    %248 = tpu.matmul %246, %247, %cst_155 {dimension_numbers = #tpu.dot_dimension_numbers<[1], [0], [0], [1], [0, 0, 1, 1], [], []>} : vector<8x4xbf16>, vector<4x256xbf16>, vector<8x256xf32> -> vector<8x256xf32>
    %249 = arith.addf %244, %248 : vector<8x256xf32>
    %c5_156 = arith.constant 5 : index
    %c0_157 = arith.constant 0 : index
    %250 = vector.load %arg2[%c5_156, %c0_157] : memref<7x256xf32, #tpu.memory_space<vmem>>, vector<1x256xf32>
    %251 = vector.broadcast %250 : vector<1x256xf32> to vector<8x256xf32>
    %252 = arith.mulf %249, %251 : vector<8x256xf32>
    %253 = arith.addf %235, %252 : vector<8x256xf32>
    %c0_158 = arith.constant 0 : index
    %c6_159 = arith.constant 6 : index
    %254 = vector.load %arg5[%c0_158, %c6_159] : memref<8x10xf32, #tpu.memory_space<vmem>>, vector<8x1xf32>
    %255 = vector.broadcast %254 : vector<8x1xf32> to vector<8x256xf32>
    %256 = arith.addf %253, %255 : vector<8x256xf32>
    %cst_160 = arith.constant 0.707106769 : f32
    %257 = vector.broadcast %cst_160 : f32 to vector<8x256xf32>
    %258 = arith.mulf %256, %257 : vector<8x256xf32>
    %cst_161 = arith.constant 0.000000e+00 : f32
    %259 = vector.broadcast %cst_161 : f32 to vector<8x256xf32>
    %260 = arith.cmpf oge, %258, %259 : vector<8x256xf32>
    %cst_162 = arith.constant 1.000000e+00 : f32
    %cst_163 = arith.constant -1.000000e+00 : f32
    %261 = vector.broadcast %cst_162 : f32 to vector<8x256xf32>
    %262 = vector.broadcast %cst_163 : f32 to vector<8x256xf32>
    %263 = arith.select %260, %261, %262 : vector<8x256xi1>, vector<8x256xf32>
    %264 = math.absf %258 : vector<8x256xf32>
    %cst_164 = arith.constant 0.327591091 : f32
    %265 = vector.broadcast %cst_164 : f32 to vector<8x256xf32>
    %266 = arith.mulf %265, %264 : vector<8x256xf32>
    %cst_165 = arith.constant 1.000000e+00 : f32
    %267 = vector.broadcast %cst_165 : f32 to vector<8x256xf32>
    %268 = arith.addf %267, %266 : vector<8x256xf32>
    %cst_166 = arith.constant 1.000000e+00 : f32
    %269 = vector.broadcast %cst_166 : f32 to vector<8x256xf32>
    %270 = arith.divf %269, %268 : vector<8x256xf32>
    %cst_167 = arith.constant 1.06140542 : f32
    %271 = vector.broadcast %cst_167 : f32 to vector<8x256xf32>
    %272 = arith.mulf %271, %270 : vector<8x256xf32>
    %cst_168 = arith.constant -1.45315206 : f32
    %273 = vector.broadcast %cst_168 : f32 to vector<8x256xf32>
    %274 = arith.addf %272, %273 : vector<8x256xf32>
    %275 = arith.mulf %274, %270 : vector<8x256xf32>
    %cst_169 = arith.constant 1.42141378 : f32
    %276 = vector.broadcast %cst_169 : f32 to vector<8x256xf32>
    %277 = arith.addf %275, %276 : vector<8x256xf32>
    %278 = arith.mulf %277, %270 : vector<8x256xf32>
    %cst_170 = arith.constant -0.284496725 : f32
    %279 = vector.broadcast %cst_170 : f32 to vector<8x256xf32>
    %280 = arith.addf %278, %279 : vector<8x256xf32>
    %281 = arith.mulf %280, %270 : vector<8x256xf32>
    %cst_171 = arith.constant 0.254829586 : f32
    %282 = vector.broadcast %cst_171 : f32 to vector<8x256xf32>
    %283 = arith.addf %281, %282 : vector<8x256xf32>
    %284 = arith.mulf %283, %270 : vector<8x256xf32>
    %cst_172 = arith.constant 0.000000e+00 : f32
    %285 = vector.broadcast %cst_172 : f32 to vector<8x256xf32>
    %286 = arith.subf %285, %264 : vector<8x256xf32>
    %287 = arith.mulf %286, %264 : vector<8x256xf32>
    %288 = math.exp %287 : vector<8x256xf32>
    %289 = arith.mulf %284, %288 : vector<8x256xf32>
    %cst_173 = arith.constant 1.000000e+00 : f32
    %290 = vector.broadcast %cst_173 : f32 to vector<8x256xf32>
    %291 = arith.subf %290, %289 : vector<8x256xf32>
    %292 = arith.mulf %263, %291 : vector<8x256xf32>
    %cst_174 = arith.constant 5.000000e-01 : f32
    %293 = vector.broadcast %cst_174 : f32 to vector<8x256xf32>
    %294 = arith.mulf %293, %256 : vector<8x256xf32>
    %cst_175 = arith.constant 1.000000e+00 : f32
    %295 = vector.broadcast %cst_175 : f32 to vector<8x256xf32>
    %296 = arith.addf %295, %292 : vector<8x256xf32>
    %297 = arith.mulf %294, %296 : vector<8x256xf32>
    %c2_176 = arith.constant 2 : index
    %c0_177 = arith.constant 0 : index
    %c0_178 = arith.constant 0 : index
    %298 = vector.load %arg4[%c2_176, %c0_177, %c0_178] : memref<5x8x8xf32, #tpu.memory_space<vmem>>, vector<1x8x8xf32>
    %299 = vector.shape_cast %298 : vector<1x8x8xf32> to vector<8x8xf32>
    %cst_179 = arith.constant dense<0.000000e+00> : vector<8x256xf32>
    %300 = tpu.matmul %299, %297, %cst_179 {dimension_numbers = #tpu.dot_dimension_numbers<[1], [0], [0], [1], [0, 0, 1, 1], [], []>} : vector<8x8xf32>, vector<8x256xf32>, vector<8x256xf32> -> vector<8x256xf32>
    %301 = arith.addf %204, %300 : vector<8x256xf32>
    %c19 = arith.constant 19 : index
    %c0_180 = arith.constant 0 : index
    %c0_181 = arith.constant 0 : index
    %302 = vector.load %arg3[%c19, %c0_180, %c0_181] : memref<28x8x4xbf16, #tpu.memory_space<vmem>>, vector<1x8x4xbf16>
    %303 = vector.shape_cast %302 : vector<1x8x4xbf16> to vector<8x4xbf16>
    %c0_182 = arith.constant 0 : index
    %c77 = arith.constant 77 : index
    %304 = vector.load %arg7[%c0_182, %c77] : memref<4x512xbf16, #tpu.memory_space<vmem>>, vector<4x256xbf16>
    %cst_183 = arith.constant dense<0.000000e+00> : vector<8x256xf32>
    %305 = tpu.matmul %303, %304, %cst_183 {dimension_numbers = #tpu.dot_dimension_numbers<[1], [0], [0], [1], [0, 0, 1, 1], [], []>} : vector<8x4xbf16>, vector<4x256xbf16>, vector<8x256xf32> -> vector<8x256xf32>
    %c22 = arith.constant 22 : index
    %c0_184 = arith.constant 0 : index
    %c0_185 = arith.constant 0 : index
    %306 = vector.load %arg3[%c22, %c0_184, %c0_185] : memref<28x8x4xbf16, #tpu.memory_space<vmem>>, vector<1x8x4xbf16>
    %307 = vector.shape_cast %306 : vector<1x8x4xbf16> to vector<8x4xbf16>
    %c0_186 = arith.constant 0 : index
    %c125 = arith.constant 125 : index
    %308 = vector.load %arg7[%c0_186, %c125] : memref<4x512xbf16, #tpu.memory_space<vmem>>, vector<4x256xbf16>
    %cst_187 = arith.constant dense<0.000000e+00> : vector<8x256xf32>
    %309 = tpu.matmul %307, %308, %cst_187 {dimension_numbers = #tpu.dot_dimension_numbers<[1], [0], [0], [1], [0, 0, 1, 1], [], []>} : vector<8x4xbf16>, vector<4x256xbf16>, vector<8x256xf32> -> vector<8x256xf32>
    %310 = arith.addf %305, %309 : vector<8x256xf32>
    %c25 = arith.constant 25 : index
    %c0_188 = arith.constant 0 : index
    %c0_189 = arith.constant 0 : index
    %311 = vector.load %arg3[%c25, %c0_188, %c0_189] : memref<28x8x4xbf16, #tpu.memory_space<vmem>>, vector<1x8x4xbf16>
    %312 = vector.shape_cast %311 : vector<1x8x4xbf16> to vector<8x4xbf16>
    %c0_190 = arith.constant 0 : index
    %c173 = arith.constant 173 : index
    %313 = vector.load %arg7[%c0_190, %c173] : memref<4x512xbf16, #tpu.memory_space<vmem>>, vector<4x256xbf16>
    %cst_191 = arith.constant dense<0.000000e+00> : vector<8x256xf32>
    %314 = tpu.matmul %312, %313, %cst_191 {dimension_numbers = #tpu.dot_dimension_numbers<[1], [0], [0], [1], [0, 0, 1, 1], [], []>} : vector<8x4xbf16>, vector<4x256xbf16>, vector<8x256xf32> -> vector<8x256xf32>
    %315 = arith.addf %310, %314 : vector<8x256xf32>
    %c0_192 = arith.constant 0 : index
    %c0_193 = arith.constant 0 : index
    %316 = vector.load %arg2[%c0_192, %c0_193] : memref<7x256xf32, #tpu.memory_space<vmem>>, vector<1x256xf32>
    %317 = vector.broadcast %316 : vector<1x256xf32> to vector<8x256xf32>
    %318 = arith.mulf %315, %317 : vector<8x256xf32>
    %c20 = arith.constant 20 : index
    %c0_194 = arith.constant 0 : index
    %c0_195 = arith.constant 0 : index
    %319 = vector.load %arg3[%c20, %c0_194, %c0_195] : memref<28x8x4xbf16, #tpu.memory_space<vmem>>, vector<1x8x4xbf16>
    %320 = vector.shape_cast %319 : vector<1x8x4xbf16> to vector<8x4xbf16>
    %c0_196 = arith.constant 0 : index
    %c80 = arith.constant 80 : index
    %321 = vector.load %arg7[%c0_196, %c80] : memref<4x512xbf16, #tpu.memory_space<vmem>>, vector<4x256xbf16>
    %cst_197 = arith.constant dense<0.000000e+00> : vector<8x256xf32>
    %322 = tpu.matmul %320, %321, %cst_197 {dimension_numbers = #tpu.dot_dimension_numbers<[1], [0], [0], [1], [0, 0, 1, 1], [], []>} : vector<8x4xbf16>, vector<4x256xbf16>, vector<8x256xf32> -> vector<8x256xf32>
    %c23 = arith.constant 23 : index
    %c0_198 = arith.constant 0 : index
    %c0_199 = arith.constant 0 : index
    %323 = vector.load %arg3[%c23, %c0_198, %c0_199] : memref<28x8x4xbf16, #tpu.memory_space<vmem>>, vector<1x8x4xbf16>
    %324 = vector.shape_cast %323 : vector<1x8x4xbf16> to vector<8x4xbf16>
    %cst_200 = arith.constant dense<0.000000e+00> : vector<8x256xf32>
    %325 = tpu.matmul %324, %5, %cst_200 {dimension_numbers = #tpu.dot_dimension_numbers<[1], [0], [0], [1], [0, 0, 1, 1], [], []>} : vector<8x4xbf16>, vector<4x256xbf16>, vector<8x256xf32> -> vector<8x256xf32>
    %326 = arith.addf %322, %325 : vector<8x256xf32>
    %c26 = arith.constant 26 : index
    %c0_201 = arith.constant 0 : index
    %c0_202 = arith.constant 0 : index
    %327 = vector.load %arg3[%c26, %c0_201, %c0_202] : memref<28x8x4xbf16, #tpu.memory_space<vmem>>, vector<1x8x4xbf16>
    %328 = vector.shape_cast %327 : vector<1x8x4xbf16> to vector<8x4xbf16>
    %c0_203 = arith.constant 0 : index
    %c176 = arith.constant 176 : index
    %329 = vector.load %arg7[%c0_203, %c176] : memref<4x512xbf16, #tpu.memory_space<vmem>>, vector<4x256xbf16>
    %cst_204 = arith.constant dense<0.000000e+00> : vector<8x256xf32>
    %330 = tpu.matmul %328, %329, %cst_204 {dimension_numbers = #tpu.dot_dimension_numbers<[1], [0], [0], [1], [0, 0, 1, 1], [], []>} : vector<8x4xbf16>, vector<4x256xbf16>, vector<8x256xf32> -> vector<8x256xf32>
    %331 = arith.addf %326, %330 : vector<8x256xf32>
    %332 = arith.addf %318, %331 : vector<8x256xf32>
    %c21 = arith.constant 21 : index
    %c0_205 = arith.constant 0 : index
    %c0_206 = arith.constant 0 : index
    %333 = vector.load %arg3[%c21, %c0_205, %c0_206] : memref<28x8x4xbf16, #tpu.memory_space<vmem>>, vector<1x8x4xbf16>
    %334 = vector.shape_cast %333 : vector<1x8x4xbf16> to vector<8x4xbf16>
    %c0_207 = arith.constant 0 : index
    %c83 = arith.constant 83 : index
    %335 = vector.load %arg7[%c0_207, %c83] : memref<4x512xbf16, #tpu.memory_space<vmem>>, vector<4x256xbf16>
    %cst_208 = arith.constant dense<0.000000e+00> : vector<8x256xf32>
    %336 = tpu.matmul %334, %335, %cst_208 {dimension_numbers = #tpu.dot_dimension_numbers<[1], [0], [0], [1], [0, 0, 1, 1], [], []>} : vector<8x4xbf16>, vector<4x256xbf16>, vector<8x256xf32> -> vector<8x256xf32>
    %c24 = arith.constant 24 : index
    %c0_209 = arith.constant 0 : index
    %c0_210 = arith.constant 0 : index
    %337 = vector.load %arg3[%c24, %c0_209, %c0_210] : memref<28x8x4xbf16, #tpu.memory_space<vmem>>, vector<1x8x4xbf16>
    %338 = vector.shape_cast %337 : vector<1x8x4xbf16> to vector<8x4xbf16>
    %c0_211 = arith.constant 0 : index
    %c131 = arith.constant 131 : index
    %339 = vector.load %arg7[%c0_211, %c131] : memref<4x512xbf16, #tpu.memory_space<vmem>>, vector<4x256xbf16>
    %cst_212 = arith.constant dense<0.000000e+00> : vector<8x256xf32>
    %340 = tpu.matmul %338, %339, %cst_212 {dimension_numbers = #tpu.dot_dimension_numbers<[1], [0], [0], [1], [0, 0, 1, 1], [], []>} : vector<8x4xbf16>, vector<4x256xbf16>, vector<8x256xf32> -> vector<8x256xf32>
    %341 = arith.addf %336, %340 : vector<8x256xf32>
    %c27 = arith.constant 27 : index
    %c0_213 = arith.constant 0 : index
    %c0_214 = arith.constant 0 : index
    %342 = vector.load %arg3[%c27, %c0_213, %c0_214] : memref<28x8x4xbf16, #tpu.memory_space<vmem>>, vector<1x8x4xbf16>
    %343 = vector.shape_cast %342 : vector<1x8x4xbf16> to vector<8x4xbf16>
    %c0_215 = arith.constant 0 : index
    %c179 = arith.constant 179 : index
    %344 = vector.load %arg7[%c0_215, %c179] : memref<4x512xbf16, #tpu.memory_space<vmem>>, vector<4x256xbf16>
    %cst_216 = arith.constant dense<0.000000e+00> : vector<8x256xf32>
    %345 = tpu.matmul %343, %344, %cst_216 {dimension_numbers = #tpu.dot_dimension_numbers<[1], [0], [0], [1], [0, 0, 1, 1], [], []>} : vector<8x4xbf16>, vector<4x256xbf16>, vector<8x256xf32> -> vector<8x256xf32>
    %346 = arith.addf %341, %345 : vector<8x256xf32>
    %c6_217 = arith.constant 6 : index
    %c0_218 = arith.constant 0 : index
    %347 = vector.load %arg2[%c6_217, %c0_218] : memref<7x256xf32, #tpu.memory_space<vmem>>, vector<1x256xf32>
    %348 = vector.broadcast %347 : vector<1x256xf32> to vector<8x256xf32>
    %349 = arith.mulf %346, %348 : vector<8x256xf32>
    %350 = arith.addf %332, %349 : vector<8x256xf32>
    %c0_219 = arith.constant 0 : index
    %c7_220 = arith.constant 7 : index
    %351 = vector.load %arg5[%c0_219, %c7_220] : memref<8x10xf32, #tpu.memory_space<vmem>>, vector<8x1xf32>
    %352 = vector.broadcast %351 : vector<8x1xf32> to vector<8x256xf32>
    %353 = arith.addf %350, %352 : vector<8x256xf32>
    %cst_221 = arith.constant 0.707106769 : f32
    %354 = vector.broadcast %cst_221 : f32 to vector<8x256xf32>
    %355 = arith.mulf %353, %354 : vector<8x256xf32>
    %cst_222 = arith.constant 0.000000e+00 : f32
    %356 = vector.broadcast %cst_222 : f32 to vector<8x256xf32>
    %357 = arith.cmpf oge, %355, %356 : vector<8x256xf32>
    %cst_223 = arith.constant 1.000000e+00 : f32
    %cst_224 = arith.constant -1.000000e+00 : f32
    %358 = vector.broadcast %cst_223 : f32 to vector<8x256xf32>
    %359 = vector.broadcast %cst_224 : f32 to vector<8x256xf32>
    %360 = arith.select %357, %358, %359 : vector<8x256xi1>, vector<8x256xf32>
    %361 = math.absf %355 : vector<8x256xf32>
    %cst_225 = arith.constant 0.327591091 : f32
    %362 = vector.broadcast %cst_225 : f32 to vector<8x256xf32>
    %363 = arith.mulf %362, %361 : vector<8x256xf32>
    %cst_226 = arith.constant 1.000000e+00 : f32
    %364 = vector.broadcast %cst_226 : f32 to vector<8x256xf32>
    %365 = arith.addf %364, %363 : vector<8x256xf32>
    %cst_227 = arith.constant 1.000000e+00 : f32
    %366 = vector.broadcast %cst_227 : f32 to vector<8x256xf32>
    %367 = arith.divf %366, %365 : vector<8x256xf32>
    %cst_228 = arith.constant 1.06140542 : f32
    %368 = vector.broadcast %cst_228 : f32 to vector<8x256xf32>
    %369 = arith.mulf %368, %367 : vector<8x256xf32>
    %cst_229 = arith.constant -1.45315206 : f32
    %370 = vector.broadcast %cst_229 : f32 to vector<8x256xf32>
    %371 = arith.addf %369, %370 : vector<8x256xf32>
    %372 = arith.mulf %371, %367 : vector<8x256xf32>
    %cst_230 = arith.constant 1.42141378 : f32
    %373 = vector.broadcast %cst_230 : f32 to vector<8x256xf32>
    %374 = arith.addf %372, %373 : vector<8x256xf32>
    %375 = arith.mulf %374, %367 : vector<8x256xf32>
    %cst_231 = arith.constant -0.284496725 : f32
    %376 = vector.broadcast %cst_231 : f32 to vector<8x256xf32>
    %377 = arith.addf %375, %376 : vector<8x256xf32>
    %378 = arith.mulf %377, %367 : vector<8x256xf32>
    %cst_232 = arith.constant 0.254829586 : f32
    %379 = vector.broadcast %cst_232 : f32 to vector<8x256xf32>
    %380 = arith.addf %378, %379 : vector<8x256xf32>
    %381 = arith.mulf %380, %367 : vector<8x256xf32>
    %cst_233 = arith.constant 0.000000e+00 : f32
    %382 = vector.broadcast %cst_233 : f32 to vector<8x256xf32>
    %383 = arith.subf %382, %361 : vector<8x256xf32>
    %384 = arith.mulf %383, %361 : vector<8x256xf32>
    %385 = math.exp %384 : vector<8x256xf32>
    %386 = arith.mulf %381, %385 : vector<8x256xf32>
    %cst_234 = arith.constant 1.000000e+00 : f32
    %387 = vector.broadcast %cst_234 : f32 to vector<8x256xf32>
    %388 = arith.subf %387, %386 : vector<8x256xf32>
    %389 = arith.mulf %360, %388 : vector<8x256xf32>
    %cst_235 = arith.constant 5.000000e-01 : f32
    %390 = vector.broadcast %cst_235 : f32 to vector<8x256xf32>
    %391 = arith.mulf %390, %353 : vector<8x256xf32>
    %cst_236 = arith.constant 1.000000e+00 : f32
    %392 = vector.broadcast %cst_236 : f32 to vector<8x256xf32>
    %393 = arith.addf %392, %389 : vector<8x256xf32>
    %394 = arith.mulf %391, %393 : vector<8x256xf32>
    %c3_237 = arith.constant 3 : index
    %c0_238 = arith.constant 0 : index
    %c0_239 = arith.constant 0 : index
    %395 = vector.load %arg4[%c3_237, %c0_238, %c0_239] : memref<5x8x8xf32, #tpu.memory_space<vmem>>, vector<1x8x8xf32>
    %396 = vector.shape_cast %395 : vector<1x8x8xf32> to vector<8x8xf32>
    %cst_240 = arith.constant dense<0.000000e+00> : vector<8x256xf32>
    %397 = tpu.matmul %396, %394, %cst_240 {dimension_numbers = #tpu.dot_dimension_numbers<[1], [0], [0], [1], [0, 0, 1, 1], [], []>} : vector<8x8xf32>, vector<8x256xf32>, vector<8x256xf32> -> vector<8x256xf32>
    %398 = arith.addf %301, %397 : vector<8x256xf32>
    %399 = vector.broadcast %57 : vector<8x1xf32> to vector<8x256xf32>
    %400 = arith.addf %398, %399 : vector<8x256xf32>
    %c0_241 = arith.constant 0 : index
    %c9_242 = arith.constant 9 : index
    %401 = vector.load %arg5[%c0_241, %c9_242] : memref<8x10xf32, #tpu.memory_space<vmem>>, vector<8x1xf32>
    %402 = vector.broadcast %401 : vector<8x1xf32> to vector<8x256xf32>
    %403 = arith.addf %400, %402 : vector<8x256xf32>
    %cst_243 = arith.constant 0.707106769 : f32
    %404 = vector.broadcast %cst_243 : f32 to vector<8x256xf32>
    %405 = arith.mulf %403, %404 : vector<8x256xf32>
    %cst_244 = arith.constant 0.000000e+00 : f32
    %406 = vector.broadcast %cst_244 : f32 to vector<8x256xf32>
    %407 = arith.cmpf oge, %405, %406 : vector<8x256xf32>
    %cst_245 = arith.constant 1.000000e+00 : f32
    %cst_246 = arith.constant -1.000000e+00 : f32
    %408 = vector.broadcast %cst_245 : f32 to vector<8x256xf32>
    %409 = vector.broadcast %cst_246 : f32 to vector<8x256xf32>
    %410 = arith.select %407, %408, %409 : vector<8x256xi1>, vector<8x256xf32>
    %411 = math.absf %405 : vector<8x256xf32>
    %cst_247 = arith.constant 0.327591091 : f32
    %412 = vector.broadcast %cst_247 : f32 to vector<8x256xf32>
    %413 = arith.mulf %412, %411 : vector<8x256xf32>
    %cst_248 = arith.constant 1.000000e+00 : f32
    %414 = vector.broadcast %cst_248 : f32 to vector<8x256xf32>
    %415 = arith.addf %414, %413 : vector<8x256xf32>
    %cst_249 = arith.constant 1.000000e+00 : f32
    %416 = vector.broadcast %cst_249 : f32 to vector<8x256xf32>
    %417 = arith.divf %416, %415 : vector<8x256xf32>
    %cst_250 = arith.constant 1.06140542 : f32
    %418 = vector.broadcast %cst_250 : f32 to vector<8x256xf32>
    %419 = arith.mulf %418, %417 : vector<8x256xf32>
    %cst_251 = arith.constant -1.45315206 : f32
    %420 = vector.broadcast %cst_251 : f32 to vector<8x256xf32>
    %421 = arith.addf %419, %420 : vector<8x256xf32>
    %422 = arith.mulf %421, %417 : vector<8x256xf32>
    %cst_252 = arith.constant 1.42141378 : f32
    %423 = vector.broadcast %cst_252 : f32 to vector<8x256xf32>
    %424 = arith.addf %422, %423 : vector<8x256xf32>
    %425 = arith.mulf %424, %417 : vector<8x256xf32>
    %cst_253 = arith.constant -0.284496725 : f32
    %426 = vector.broadcast %cst_253 : f32 to vector<8x256xf32>
    %427 = arith.addf %425, %426 : vector<8x256xf32>
    %428 = arith.mulf %427, %417 : vector<8x256xf32>
    %cst_254 = arith.constant 0.254829586 : f32
    %429 = vector.broadcast %cst_254 : f32 to vector<8x256xf32>
    %430 = arith.addf %428, %429 : vector<8x256xf32>
    %431 = arith.mulf %430, %417 : vector<8x256xf32>
    %cst_255 = arith.constant 0.000000e+00 : f32
    %432 = vector.broadcast %cst_255 : f32 to vector<8x256xf32>
    %433 = arith.subf %432, %411 : vector<8x256xf32>
    %434 = arith.mulf %433, %411 : vector<8x256xf32>
    %435 = math.exp %434 : vector<8x256xf32>
    %436 = arith.mulf %431, %435 : vector<8x256xf32>
    %cst_256 = arith.constant 1.000000e+00 : f32
    %437 = vector.broadcast %cst_256 : f32 to vector<8x256xf32>
    %438 = arith.subf %437, %436 : vector<8x256xf32>
    %439 = arith.mulf %410, %438 : vector<8x256xf32>
    %cst_257 = arith.constant 5.000000e-01 : f32
    %440 = vector.broadcast %cst_257 : f32 to vector<8x256xf32>
    %441 = arith.mulf %440, %403 : vector<8x256xf32>
    %cst_258 = arith.constant 1.000000e+00 : f32
    %442 = vector.broadcast %cst_258 : f32 to vector<8x256xf32>
    %443 = arith.addf %442, %439 : vector<8x256xf32>
    %444 = arith.mulf %441, %443 : vector<8x256xf32>
    %c0_259 = arith.constant 0 : index
    %c0_260 = arith.constant 0 : index
    %c0_261 = arith.constant 0 : index
    %445 = vector.load %arg6[%c0_259, %c0_260, %c0_261] : memref<1x8x256xf32, #tpu.memory_space<vmem>>, vector<1x8x256xf32>
    %446 = vector.shape_cast %445 : vector<1x8x256xf32> to vector<8x256xf32>
    %447 = vector.shape_cast %444 : vector<8x256xf32> to vector<1x8x256xf32>
    tpu.vector_store %arg6[%c0_259, %c0_260, %c0_261], %447 {strides = array<i32>} : memref<1x8x256xf32, #tpu.memory_space<vmem>>, vector<1x8x256xf32>,
    return
  }
  func.func @transform_0(%arg0: i32) -> (i32, i32, i32) {
    %c0_i32 = arith.constant 0 : i32
    %c0_i32_0 = arith.constant 0 : i32
    %c0_i32_1 = arith.constant 0 : i32
    return %arg0, %c0_i32, %c0_i32_0 : i32, i32, i32
  }
  func.func @transform_1(%arg0: i32) -> (i32, i32) {
    %c0_i32 = arith.constant 0 : i32
    %c0_i32_0 = arith.constant 0 : i32
    %c0_i32_1 = arith.constant 0 : i32
    return %c0_i32, %c0_i32_0 : i32, i32
  }
  func.func @transform_2(%arg0: i32) -> (i32, i32, i32) {
    %c0_i32 = arith.constant 0 : i32
    %c0_i32_0 = arith.constant 0 : i32
    %c0_i32_1 = arith.constant 0 : i32
    %c0_i32_2 = arith.constant 0 : i32
    return %c0_i32, %c0_i32_0, %c0_i32_1 : i32, i32, i32
  }
  func.func @transform_3(%arg0: i32) -> (i32, i32, i32) {
    %c0_i32 = arith.constant 0 : i32
    %c0_i32_0 = arith.constant 0 : i32
    %c0_i32_1 = arith.constant 0 : i32
    %c0_i32_2 = arith.constant 0 : i32
    return %c0_i32, %c0_i32_0, %c0_i32_1 : i32, i32, i32
  }
  func.func @transform_4(%arg0: i32) -> (i32, i32) {
    %c0_i32 = arith.constant 0 : i32
    %c0_i32_0 = arith.constant 0 : i32
    %c0_i32_1 = arith.constant 0 : i32
    return %c0_i32, %c0_i32_0 : i32, i32
  }
  func.func @transform_5(%arg0: i32) -> (i32, i32, i32) {
    %c0_i32 = arith.constant 0 : i32
    %c0_i32_0 = arith.constant 0 : i32
    %c0_i32_1 = arith.constant 0 : i32
    return %arg0, %c0_i32, %c0_i32_0 : i32, i32, i32
  }
}

</mosaic_0001>

<bundles_post_ra>
// kernel: _lambda_.1
= control target key start
LH: loop header
LB: loop body
LE: loop exit
PB: predicated region body
PF: predicated region fallthrough
CT: control target
= control target key end

     0   :  { %s2842_s18 = smov 0   ;;  %s3679_s0 = inlined_call_operand.vmem [shape: f32[2,4,256], index: 0, kind: input, shape index: {}]   ;;  %s3680_s1 = inlined_call_operand.vmem [shape: f32[7,256], index: 1, kind: input, shape index: {}]   ;;  %s3681_s2 = inlined_call_operand.vmem [shape: bf16[28,8,4], index: 2, kind: input, shape index: {}]   ;;  %s3682_s3 = inlined_call_operand.vmem [shape: f32[5,8,8], index: 3, kind: input, shape index: {}]   ;;  %s3683_s4 = inlined_call_operand.vmem [shape: f32[8,10], index: 4, kind: input, shape index: {}]   ;;  %s3684_s5 = inlined_call_operand.vmem [shape: f32[2,8,256], index: 5, kind: output, shape index: {}]  }
   0x1 LB: > { %s2565_s19 = sadd.s32 4294967295, %s2778_s18   ;;  %p2569_p0 = scmp.ge.s32.totalorder %s2778_s18, 1  ;;  %s2778_s18 = sphi %s2842_s18, %s15_s18  }
   0x2   : > { %p187_p1 = scmp.lt.s32.totalorder %s2778_s18, 3 }
   0x4   : > { %p188_p2 = pnand %p2569_p0, %p187_p1 }
   0x5   : > { %p215_p3 = scmp.lt.s32.totalorder (!%p188_p2), %s2565_s19, 1  ;;  %s2781_s24 = smov (!%p188_p2), 1  }
   0x6   : > { %191 = sbr.rel (%p188_p2) target bundleno = 1313 (0x521), region = 40  ;;  %s2782_s25 = smov (!%p188_p2), 17  }
   0x7   : > { %s2783_s26 = smov (!%p188_p2), 113   ;;  %s2784_s27 = smov (!%p188_p2), 16  }
   0x8   : > { %s2785_s28 = smov (!%p188_p2), 112   ;;  %s2786_s29 = smov (!%p188_p2), 127  }
   0x9   : > { %s2787_s30 = smov (!%p188_p2), 15   ;;  %s2788_s6 = smov (!%p188_p2), 111  }
   0xa   : > { %s2789_s9 = smov (!%p188_p2), 120   ;;  %s2792_s8 = smov (!%p188_p2), 2  }
   0xb   : > { %v2780_v0 = vmov 0   ;;  %s3688_s19 = smov (!%p215_p3, %s2565_s19), 1  ;;  %vm238_vm0 = vcmask 1041408   ;;  %vm249_vm1 = vcmask 1043456   ;;  %v2877_v42 = vld [vmem:[%s3683_s4] sm:$0xff]  ;;  %vm261_vm2 = vcmask 31744  }
   0xc   : > { %226 = vst [vmem:[#allocation2] sm:$0xff] %v2780_v0  ;;  %s2679_s20 = sshll.u32 %s3688_s19, 3  ;;  %v2888_v46 = vld [vmem:[%s3681_s2] sm:$0xf]  ;;  %vm498_vm3 = vcmask 7168   ;;  %vm549_vm4 = vcmask 138240  }
   0xd   : > { %s219_s23 = scalar_lea.vmem %s3679_s0, %s2679_s20  ;;  %v2911_v56 = vld [vmem:[%s3681_s2 + $0x10] sm:$0xf]  ;;  %v2925_v61 = vld [vmem:[%s3681_s2 + $0x4] sm:$0xf]  ;;  %vm604_vm5 = vcmask 924672   ;;  %vm701_vm6 = vcmask 130048  }
   0xe   : > { %v228_v1 = vld [vmem:[%s219_s23] sm:$0xff]  ;;  %vm756_vm7 = vcmask 916480   ;;  %vm818_vm8 = vcmask 1039360   ;;  %vm870_vm9 = vcmask 121856   ;;  %vm925_vm10 = vcmask 908288   ;;  %s2795_s10 = smov 32  }
   0xf   : > { %230 = vst [vmem:[#allocation1] ss:$2 sm:$0xff] %v228_v1  ;;  %s2797_s11 = smov 126   ;;  %s2798_s14 = smov 96  }
  0x10   : > { %s2799_s15 = smov 94   ;;  %s2800_s20 = smov 30  }
  0x11   : > { %s2802_s23 = smov 51   ;;  %s2808_s12 = smov 77  }
  0x12   : > { %s2809_s17 = smov 3  }
  0x16   : > { %v231_v2 = vld.sshfl [vmem:[#allocation1] sm:$0xff pattern:$0x75316420]  ;;  %v232_v3 = vld.sshfl [vmem:[#allocation1 + $0x8] sm:$0xff pattern:$0x75316420] }
  0x17   : > { %244 = vst [vmem:[#allocation1] ss:$2 sm:$0xff] %v228_v1  ;;  %v2857_v4 = vpack.c.bf16 %v232_v3, %v231_v2  ;;  %v2938_v3 = vld [vmem:[%s3681_s2 + $0x1c] sm:$0xf] }
  0x19   : > { %v237_v5 = vrot.slane %v2857_v4, 2  ;;  %v359_v43 = vunpack.c.l.b16 %v2857_v4 }
  0x1b   : > { %v241_v6 = vsel %vm238_vm0, %v2857_v4, %v237_v5  ;;  %v361_v44 = vpack.c.b16 %v359_v43, %v359_v43 }
  0x1c   : > { %243 = vst [vmem:[#allocation2 + $0x2] sm:$0xf] %v241_v6 }
  0x1d   : > { %v2882_v45 = vsel %vm238_vm0, %v361_v44, 0 }
  0x1e   : > { %v245_v7 = vld.sshfl [vmem:[#allocation1] sm:$0xff pattern:$0x75316420]  ;;  %v246_v8 = vld.sshfl [vmem:[#allocation1 + $0x8] sm:$0xff pattern:$0x75316420]  ;;  %379 = vmatpush.bf16.msra.mxu2 %v2882_v45 }
  0x1f   : > { %v250_v9 = vsel %vm249_vm1, %v245_v7, 0.0  ;;  %v251_v10 = vsel %vm249_vm1, %v246_v8, 0.0 }
  0x20   : > { %v252_v11 = vadd.f32 %v251_v10, %v250_v9  ;;  %v2950_v9 = vld [vmem:[%s3681_s2 + $0x14] sm:$0xf] }
  0x21   : > { %2578 = vmatmul.msk.bf16.vlgmr.msra.gmra.mxu2 %vm261_vm2, %v2888_v46 }
  0x22   : > { %253 = vadd.xlane.f32.xlu0 %v252_v11 }
  0x23   : > { %v481_v12 = vld [vmem:[#allocation2] sm:$0x3f] }
  0x24   : > { %485 = vst [vmem:[#allocation1] ss:$4 sm:$0xff] %v481_v12  ;;  %v589_v16 = vld [vmem:[#allocation2 + $0x2] sm:$0x3f] }
  0x25   : > { %v655_v20 = vld [vmem:[#allocation2] sm:$0x3f] }
  0x26   : > { %v741_v24 = vld [vmem:[#allocation2 + $0x2] sm:$0x3f] }
  0x27   : > { %v803_v28 = vld [vmem:[#allocation2 + $0x2] sm:$0x3f] }
  0x28   : > { %v800_v32 = vld [vmem:[#allocation2] sm:$0x3f] }
  0x29   : > { %v910_v36 = vld [vmem:[#allocation2 + $0x2] sm:$0x3f] }
  0x2b   : > { %v486_v13 = vld.sshfl [vmem:[#allocation1] sm:$0xff pattern:$0x73625140]  ;;  %v490_v14 = vld.sshfl [vmem:[#allocation1 + $0x10] sm:$0xff pattern:$0x73625140] }
  0x2c   : > { %492 = vrot.lane.b32.xlu1 %v486_v13, %s2781_s24  ;;  %v488_v15 = vld.sshfl [vmem:[#allocation1 + $0x8] sm:$0xff pattern:$0x73625140]  ;;  %496 = vrot.lane.b32.xlu2 %v490_v14, %s2781_s24 }
  0x2d   : > { %536 = vst [vmem:[#allocation1] ss:$4 sm:$0xff] %v481_v12  ;;  %v2962_v14 = vld [vmem:[%s3681_s2 + $0x8] sm:$0xf] }
  0x34   : > { %494 = vrot.lane.b32.xlu1 %v488_v15, %s2781_s24  ;;  %v539_v17 = vld.sshfl [vmem:[#allocation1 + $0x8] sm:$0xff pattern:$0x73625140]  ;;  %v541_v18 = vld.sshfl [vmem:[#allocation1 + $0x10] sm:$0xff pattern:$0x73625140] }
  0x35   : > { %v537_v19 = vld.sshfl [vmem:[#allocation1] sm:$0xff pattern:$0x73625140]  ;;  %v2790_v15 = vmov 5   ;;  %s2803_s24 = smov 83  }
  0x36   : > { %591 = vst [vmem:[#allocation1] ss:$4 sm:$0xff] %v589_v16  ;;  %543 = vrot.lane.b32.xlu2 %v537_v19, %s2782_s25  ;;  %258 = vrot.lane.b32.xlu0 %v2877_v42, %s2789_s9  ;;  %v2973_v19 = vld [vmem:[%s3681_s2 + $0x20] sm:$0xf]  ;;  %s2794_s9 = smov 34  }
  0x37   : > { %2721 = vset.pattern.permute.xlu1 %v2790_v15 }
  0x3c   : > { %545 = vrot.lane.b32.xlu1 %v539_v17, %s2782_s25 }
  0x3d   : > { %v594_v21 = vld.sshfl [vmem:[#allocation1 + $0x8] sm:$0xff pattern:$0x73625140]  ;;  %v592_v22 = vld.sshfl [vmem:[#allocation1] sm:$0xff pattern:$0x73625140] }
  0x3e   : > { %v596_v23 = vld.sshfl [vmem:[#allocation1 + $0x10] sm:$0xff pattern:$0x73625140]  ;;  %547 = vrot.lane.b32.xlu2 %v541_v18, %s2782_s25  ;;  %s2804_s25 = smov 48  }
  0x3f   : > { %688 = vst [vmem:[#allocation1] ss:$4 sm:$0xff] %v655_v20  ;;  %602 = vrot.lane.b32.xlu0 %v596_v23, %s2783_s26 }
  0x44   : > { %598 = vrot.lane.b32.xlu1 %v592_v22, %s2783_s26 }
  0x46   : > { %v689_v25 = vld.sshfl [vmem:[#allocation1] sm:$0xff pattern:$0x73625140]  ;;  %v691_v26 = vld.sshfl [vmem:[#allocation1 + $0x8] sm:$0xff pattern:$0x73625140]  ;;  %600 = vrot.lane.b32.xlu2 %v594_v21, %s2783_s26 }
  0x47   : > { %v693_v27 = vld.sshfl [vmem:[#allocation1 + $0x10] sm:$0xff pattern:$0x73625140]  ;;  %s2805_s26 = smov 80  }
  0x48   : > { %743 = vst [vmem:[#allocation1] ss:$4 sm:$0xff] %v741_v24  ;;  %699 = vrot.lane.b32.xlu0 %v693_v27, %s2784_s27  ;;  %v2985_v24 = vld [vmem:[%s3681_s2 + $0x18] sm:$0xf] }
  0x4c   : > { %695 = vrot.lane.b32.xlu1 %v689_v25, %s2784_s27 }
  0x4e   : > { %697 = vrot.lane.b32.xlu2 %v691_v26, %s2784_s27 }
  0x4f   : > { %v744_v29 = vld.sshfl [vmem:[#allocation1] sm:$0xff pattern:$0x73625140]  ;;  %v746_v30 = vld.sshfl [vmem:[#allocation1 + $0x8] sm:$0xff pattern:$0x73625140] }
  0x50   : > { %v748_v31 = vld.sshfl [vmem:[#allocation1 + $0x10] sm:$0xff pattern:$0x73625140] }
  0x51   : > { %805 = vst [vmem:[#allocation1] ss:$4 sm:$0xff] %v803_v28  ;;  %754 = vrot.lane.b32.xlu0 %v748_v31, %s2785_s28  ;;  %v360_v31 = vunpack.c.h.b16 %v2857_v4 }
  0x54   : > { %750 = vrot.lane.b32.xlu1 %v744_v29, %s2785_s28  ;;  %v2997_v29 = vld [vmem:[%s3681_s2 + $0xc] sm:$0xf] }
  0x56   : > { %752 = vrot.lane.b32.xlu2 %v746_v30, %s2785_s28  ;;  %v3004_v30 = vld [vmem:[%s3681_s2 + $0x24] sm:$0xf] }
  0x58   : > { %v806_v33 = vld.sshfl [vmem:[#allocation1] sm:$0xff pattern:$0x73625140]  ;;  %v808_v34 = vld.sshfl [vmem:[#allocation1 + $0x8] sm:$0xff pattern:$0x73625140] }
  0x59   : > { %v810_v35 = vld.sshfl [vmem:[#allocation1 + $0x10] sm:$0xff pattern:$0x73625140] }
  0x5a   : > { %857 = vst [vmem:[#allocation1] ss:$4 sm:$0xff] %v800_v32  ;;  %816 = vrot.lane.b32.xlu0 %v810_v35, %s2786_s29  ;;  %v362_v32 = vpack.c.b16 %v360_v31, %v360_v31  ;;  %v1414_v31 = vld [vmem:[#allocation2 + $0x2] sm:$0x3f] }
  0x5c   : > { %812 = vrot.lane.b32.xlu1 %v806_v33, %s2786_s29  ;;  %v3010_v33 = vsel %vm238_vm0, %v362_v32, 0 }
  0x5d   : > { %392 = vmatpush.bf16.msra.mxu3 %v3010_v33 }
  0x5e   : > { %814 = vrot.lane.b32.xlu2 %v808_v34, %s2786_s29  ;;  %v1154_v34 = vld [vmem:[#allocation2] sm:$0x3f]  ;;  %s2806_s29 = smov 125  }
  0x60   : > { %2579 = vmatmul.msk.bf16.vlgmr.msra.gmra.mxu3 %vm261_vm2, %v2888_v46 }
  0x61   : > { %v858_v37 = vld.sshfl [vmem:[#allocation1] sm:$0xff pattern:$0x73625140]  ;;  %v860_v38 = vld.sshfl [vmem:[#allocation1 + $0x8] sm:$0xff pattern:$0x73625140] }
  0x62   : > { %v862_v39 = vld.sshfl [vmem:[#allocation1 + $0x10] sm:$0xff pattern:$0x73625140] }
  0x63   : > { %912 = vst [vmem:[#allocation1] ss:$4 sm:$0xff] %v910_v36  ;;  %868 = vrot.lane.b32.xlu0 %v862_v39, %s2787_s30 }
  0x64   : > { %864 = vrot.lane.b32.xlu1 %v858_v37, %s2787_s30  ;;  %v2791_v37 = vmov 4  }
  0x65   : > { %2722 = vset.pattern.permute.xlu2 %v2791_v37 }
  0x66   : > { %866 = vrot.lane.b32.xlu2 %v860_v38, %s2787_s30 }
  0x6a   : > { %v913_v40 = vld.sshfl [vmem:[#allocation1] sm:$0xff pattern:$0x73625140]  ;;  %v915_v41 = vld.sshfl [vmem:[#allocation1 + $0x8] sm:$0xff pattern:$0x73625140] }
  0x6b   : > { %v917_v35 = vld.sshfl [vmem:[#allocation1 + $0x10] sm:$0xff pattern:$0x73625140] }
  0x6c   : > { %919 = vrot.lane.b32.xlu1 %v913_v40, %s2788_s6  ;;  %923 = vrot.lane.b32.xlu0 %v917_v35, %s2788_s6  ;;  %1158 = vst [vmem:[#allocation1] ss:$4 sm:$0xff] %v1154_v34 }
  0x6e   : > { %921 = vrot.lane.b32.xlu2 %v915_v41, %s2788_s6  ;;  %s2793_s6 = smov 98  }
  0x73   : > { %v1161_v38 = vld.sshfl [vmem:[#allocation1 + $0x8] sm:$0xff pattern:$0x73625140]  ;;  %v1163_v39 = vld.sshfl [vmem:[#allocation1 + $0x10] sm:$0xff pattern:$0x73625140] }
  0x74   : > { %979 = vperm.xlu1 %2721, %v2877_v42   ;;  %v1159_v41 = vld.sshfl [vmem:[#allocation1] sm:$0xff pattern:$0x73625140] }
  0x75   : > { %1165 = vrot.lane.b32.xlu0 %v1159_v41, %s2792_s8  ;;  %1209 = vst [vmem:[#allocation1] ss:$4 sm:$0xff] %v1154_v34 }
  0x76   : > { %356 = vperm.xlu2 %2722, %v2877_v42  }
  0x7c   : > { %1167 = vrot.lane.b32.xlu1 %v1161_v38, %s2792_s8 }
  0x7e   : > { %1169 = vrot.lane.b32.xlu2 %v1163_v39, %s2792_s8 }
  0x86   : > { %v2894_v47 = vpop.permute.xlu2 %496 }
  0x90   : > { %v544_v50 = vpop.permute.xlu2 %543 }
  0x95   : > { %v254_v48 = vpop.xlane.xlu0 %253 }
  0x96   : > { %v255_v49 = vmul.f32 0.00390625, %v254_v48  ;;  %v1262_v48 = vld [vmem:[#allocation2 + $0x2] sm:$0x3f] }
  0x98   : > { %2574 = vmatpush.msk.msra.mxu0 %vm249_vm1, %v255_v49  ;;  %v2901_v52 = vpop.permute.xlu2 %547  ;;  %vm330_vm1 = vcmask 64512  }
  0x99   : > { %2575 = vmatmul.msk.f32.vlgmr.msra.gmra.mxu0 %vm261_vm2, %v2877_v42 }
  0x9e   : > { %v493_v51 = vpop.permute.xlu1 %492 }
  0xa0   : > { %v2915_v57 = vpop.permute.xlu2 %600 }
  0xa4   : > { %v3016_v36 = vpop.f32.mrf.mxu2 }
  0xa6   : > { %v2903_v53 = vpop.permute.xlu1 %494 }
  0xa7   : > { %v499_v54 = vsel %vm498_vm3, %v493_v51, %v2903_v53  ;;  %v1212_v51 = vld.sshfl [vmem:[#allocation1 + $0x8] sm:$0xff pattern:$0x73625140] }
  0xa8   : > { %v505_v55 = vsel %vm238_vm0, %v499_v54, 0  ;;  %v2930_v62 = vpop.permute.xlu2 %697  ;;  %v259_v40 = vpop.permute.xlu0 %258 }
  0xa9   : > { %517 = vmatpush.bf16.msrb.mxu0 %v505_v55  ;;  %v1214_v55 = vld.sshfl [vmem:[#allocation1 + $0x10] sm:$0xff pattern:$0x73625140] }
  0xac   : > { %2582 = vmatmul.msk.bf16.vlgmr.msrb.gmra.mxu0 %vm261_vm2, %v2911_v56  ;;  %v383_v4 = vpop.f32.mrf.mxu2 }
  0xae   : > { %v2917_v58 = vpop.permute.xlu1 %545 }
  0xaf   : > { %v550_v59 = vsel %vm549_vm4, %v544_v50, %v2917_v58  ;;  %v1210_v50 = vld.sshfl [vmem:[#allocation1] sm:$0xff pattern:$0x73625140] }
  0xb0   : > { %v556_v60 = vsel %vm238_vm0, %v550_v59, 0  ;;  %v2942_v6 = vpop.permute.xlu2 %752  ;;  %1264 = vst [vmem:[#allocation1] ss:$4 sm:$0xff] %v1262_v48  ;;  %v1476_v48 = vld [vmem:[#allocation2 + $0x2] sm:$0x3f] }
  0xb1   : > { %568 = vmatpush.bf16.msrb.mxu2 %v556_v60  ;;  %v1328_v60 = vld [vmem:[#allocation2] sm:$0x3f] }
  0xb4   : > { %2584 = vmatmul.msk.bf16.vlgmr.msrb.gmra.mxu2 %vm261_vm2, %v2925_v61 }
  0xb5   : > { %668 = vmatpush.bf16.msra.mxu2 %v2882_v45 }
  0xb6   : > { %v599_v63 = vpop.permute.xlu1 %598 }
  0xb7   : > { %v605_v1 = vsel %vm604_vm5, %v599_v63, %v2915_v57  ;;  %v1267_v63 = vld.sshfl [vmem:[#allocation1 + $0x8] sm:$0xff pattern:$0x73625140] }
  0xb8   : > { %v611_v2 = vsel %vm238_vm0, %v605_v1, 0  ;;  %v2957_v13 = vpop.permute.xlu2 %814  ;;  %v1269_v1 = vld.sshfl [vmem:[#allocation1 + $0x10] sm:$0xff pattern:$0x73625140]  ;;  %1273 = vrot.lane.b32.xlu1 %v1267_v63, %s2793_s6 }
  0xb9   : > { %623 = vmatpush.bf16.msra.mxu0 %v611_v2  ;;  %v1265_v2 = vld.sshfl [vmem:[#allocation1] sm:$0xff pattern:$0x73625140]  ;;  %1275 = vrot.lane.b32.xlu2 %v1269_v1, %s2793_s6 }
  0xba   : > { %1271 = vrot.lane.b32.xlu0 %v1265_v2, %s2793_s6  ;;  %1361 = vst [vmem:[#allocation1] ss:$4 sm:$0xff] %v1328_v60 }
  0xbc   : > { %2587 = vmatmul.msk.bf16.vlgmr.msra.gmra.mxu0 %vm261_vm2, %v2938_v3 }
  0xbe   : > { %v696_v5 = vpop.permute.xlu1 %695 }
  0xbf   : > { %v702_v7 = vsel %vm701_vm6, %v696_v5, %v2930_v62 }
  0xc0   : > { %v708_v8 = vsel %vm238_vm0, %v702_v7, 0  ;;  %v2975_v20 = vpop.permute.xlu2 %866  ;;  %1218 = vrot.lane.b32.xlu1 %v1212_v51, %s2794_s9 }
  0xc1   : > { %720 = vmatpush.bf16.msrb.mxu0 %v708_v8  ;;  %1220 = vrot.lane.b32.xlu2 %v1214_v55, %s2794_s9  ;;  %v1364_v32 = vld.sshfl [vmem:[#allocation1 + $0x8] sm:$0xff pattern:$0x73625140]  ;;  %v1366_v34 = vld.sshfl [vmem:[#allocation1 + $0x10] sm:$0xff pattern:$0x73625140] }
  0xc2   : > { %1216 = vrot.lane.b32.xlu0 %v1210_v50, %s2794_s9  ;;  %v1362_v37 = vld.sshfl [vmem:[#allocation1] sm:$0xff pattern:$0x73625140]  ;;  %s2807_s9 = smov 45  }
  0xc3   : > { %1416 = vst [vmem:[#allocation1] ss:$4 sm:$0xff] %v1414_v31 }
  0xc4   : > { %2592 = vmatmul.msk.bf16.vlgmr.msra.gmra.mxu2 %vm261_vm2, %v2950_v9 }
  0xc6   : > { %v751_v10 = vpop.permute.xlu1 %750 }
  0xc7   : > { %v757_v11 = vsel %vm756_vm7, %v751_v10, %v2942_v6 }
  0xc8   : > { %v763_v12 = vsel %vm238_vm0, %v757_v11, 0  ;;  %v2989_v25 = vpop.permute.xlu2 %921  ;;  %1370 = vrot.lane.b32.xlu1 %v1364_v32, %s2795_s10 }
  0xc9   : > { %775 = vmatpush.bf16.msrb.mxu2 %v763_v12  ;;  %1372 = vrot.lane.b32.xlu2 %v1366_v34, %s2795_s10 }
  0xca   : > { %1368 = vrot.lane.b32.xlu0 %v1362_v37, %s2795_s10  ;;  %v1417_v50 = vld.sshfl [vmem:[#allocation1] sm:$0xff pattern:$0x73625140]  ;;  %v1419_v51 = vld.sshfl [vmem:[#allocation1 + $0x8] sm:$0xff pattern:$0x73625140] }
  0xcb   : > { %v1421_v55 = vld.sshfl [vmem:[#allocation1 + $0x10] sm:$0xff pattern:$0x73625140] }
  0xcc   : > { %2594 = vmatmul.msk.bf16.vlgmr.msrb.gmra.mxu0 %vm261_vm2, %v2962_v14  ;;  %1478 = vst [vmem:[#allocation1] ss:$4 sm:$0xff] %v1476_v48 }
  0xce   : > { %v813_v16 = vpop.permute.xlu1 %812 }
  0xcf   : > { %v819_v17 = vsel %vm818_vm8, %v813_v16, %v2957_v13 }
  0xd0   : > { %v825_v18 = vsel %vm238_vm0, %v819_v17, 0  ;;  %v551_v17 = vsel %vm549_vm4, %v2917_v58, %v2901_v52 }
  0xd1   : > { %837 = vmatpush.bf16.msra.mxu0 %v825_v18 }
  0xd4   : > { %2597 = vmatmul.msk.bf16.vlgmr.msrb.gmra.mxu2 %vm261_vm2, %v2973_v19 }
  0xd6   : > { %v865_v21 = vpop.permute.xlu1 %864 }
  0xd7   : > { %v871_v22 = vsel %vm870_vm9, %v865_v21, %v2975_v20  ;;  %v559_v21 = vsel %vm238_vm0, %v551_v17, 0  ;;  %v1483_v17 = vld.sshfl [vmem:[#allocation1 + $0x10] sm:$0xff pattern:$0x73625140] }
  0xd8   : > { %v877_v23 = vsel %vm238_vm0, %v871_v22, 0  ;;  %581 = vmatpush.bf16.msrb.mxu3 %v559_v21  ;;  %v1479_v21 = vld.sshfl [vmem:[#allocation1] sm:$0xff pattern:$0x73625140]  ;;  %1489 = vrot.lane.b32.xlu2 %v1483_v17, %s2797_s11 }
  0xd9   : > { %889 = vmatpush.bf16.msra.mxu2 %v877_v23  ;;  %1485 = vrot.lane.b32.xlu0 %v1479_v21, %s2797_s11 }
  0xdb   : > { %2585 = vmatmul.msk.bf16.vlgmr.msrb.gmra.mxu3 %vm261_vm2, %v2925_v61  ;;  %v603_v61 = vpop.permute.xlu0 %602 }
  0xdc   : > { %2601 = vmatmul.msk.bf16.vlgmr.msra.gmra.mxu0 %vm261_vm2, %v2985_v24  ;;  %681 = vmatpush.bf16.msra.mxu3 %v3010_v33 }
  0xde   : > { %v920_v26 = vpop.permute.xlu1 %919 }
  0xdf   : > { %v926_v27 = vsel %vm925_vm10, %v920_v26, %v2989_v25 }
  0xe0   : > { %v932_v28 = vsel %vm238_vm0, %v926_v27, 0  ;;  %1427 = vrot.lane.b32.xlu2 %v1421_v55, %s2798_s14 }
  0xe1   : > { %944 = vmatpush.bf16.msrb.mxu0 %v932_v28  ;;  %1423 = vrot.lane.b32.xlu0 %v1417_v50, %s2798_s14  ;;  %v3073_v50 = vld [vmem:[%s3680_s1 + $0x2] ss:$8 sm:$0x3] }
  0xe3   : > { %v700_v1 = vpop.permute.xlu0 %699 }
  0xe4   : > { %2603 = vmatmul.msk.bf16.vlgmr.msra.gmra.mxu2 %vm261_vm2, %v2997_v29 }
  0xeb   : > { %2593 = vmatmul.msk.bf16.vlgmr.msra.gmra.mxu3 %vm261_vm2, %v2950_v9  ;;  %v755_v31 = vpop.permute.xlu0 %754 }
  0xec   : > { %2606 = vmatmul.msk.bf16.vlgmr.msrb.gmra.mxu0 %vm261_vm2, %v3004_v30 }
 0x116   : > { %v285_v43 = vpop.f32.mrf.mxu0 }
 0x117   : > { %v3019_v44 = vadd.f32 %v285_v43, %v259_v40 }
 0x119   : > { %v3022_v46 = vmul.f32 0.70710677, %v3019_v44 }
 0x11b   : > { %v291_v49 = vand.u32 2147483647, %v3022_v46  ;;  %vm289_vm15 = vcmp.ge.f32.partialorder %v3022_v46, 0.0  ;;  %v325_v46 = vmul.f32 0.5, %v3019_v44 }
 0x11d   : > { %v292_v54 = vmul.f32 0.3275911, %v291_v49  ;;  %v318_v23 = vsub.f32 0.0, %v291_v49 }
 0x11f   : > { %v293_v59 = vadd.f32 1.0, %v292_v54  ;;  %v319_v58 = vmul.f32 %v318_v23, %v291_v49  ;;  %v606_v23 = vsel %vm604_vm5, %v2915_v57, %v603_v61  ;;  %v1583_v57 = vld [vmem:[#allocation2 + $0x2] sm:$0x3f] }
 0x120   : > { %v614_v44 = vsel %vm238_vm0, %v606_v23, 0  ;;  %v2801_v23 = vmov 6  }
 0x121   : > { %2728 = vrcp.f32 %v293_v59  ;;  %v305_v11 = vand.u32 2147483648, %v293_v59  ;;  %v303_v15 = vand.u32 2147483647, %v293_v59  ;;  %vm299_vm12 = vweird.f32 %v293_v59  ;;  %2723 = vset.pattern.permute.xlu0 %v2801_v23 }
 0x122   : > { %v320_v39 = vmul.f32 1.442695, %v319_v58 }
 0x123   : > { %v306_v18 = vor.u32 1.1754944e-38, %v305_v11  ;;  %vm304_vm14 = vcmp.eq.f32.partialorder %v303_v15, 8.507059e+37 }
 0x124   : > { %2730 = vpow2.f32 %v320_v39  ;;  %v817_v39 = vpop.permute.xlu0 %816 }
 0x127   : > { %v2729_v5 = vpop.eup %2728 }
 0x128   : > { %v295_v7 = vmul.f32 %v2729_v5, %v293_v59  ;;  %vm300_vm11 = vweird.f32 %v2729_v5 }
 0x129   : > { %v3025_v8 = vpop.f32.mrf.mxu0  ;;  %vm301_vm13 = vmor %vm299_vm12, %vm300_vm11 }
 0x12a   : > { %v296_v10 = vsub.f32 1.0, %v295_v7  ;;  %v2731_v2 = vpop.eup %2730  ;;  %v1473_v7 = vld [vmem:[#allocation2] sm:$0x3f] }
 0x12c   : > { %v297_v12 = vmul.f32 %v2729_v5, %v296_v10  ;;  %v2796_v10 = vmov -1.0  }
 0x12d   : > { %v290_v11 = vsel %vm289_vm15, 1.0, %v2796_v10 }
 0x12e   : > { %v298_v16 = vadd.f32 %v2729_v5, %v297_v12 }
 0x130   : > { %v302_v22 = vsel %vm301_vm13, %v2729_v5, %v298_v16  ;;  %v1481_v16 = vld.sshfl [vmem:[#allocation1 + $0x8] sm:$0xff pattern:$0x73625140] }
 0x131   : > { %v521_v26 = vpop.f32.mrf.mxu0  ;;  %v307_v27 = vsel %vm304_vm14, %v306_v18, %v302_v22  ;;  %1487 = vrot.lane.b32.xlu1 %v1481_v16, %s2797_s11  ;;  %1530 = vst [vmem:[#allocation1] ss:$4 sm:$0xff] %v1473_v7 }
 0x132   : > { %v309_v28 = vmul.f32 1.0614054, %v307_v27 }
 0x134   : > { %v310_v52 = vadd.f32 -1.4531521, %v309_v28  ;;  %v500_v28 = vsel %vm498_vm3, %v2903_v53, %v2894_v47 }
 0x135   : > { %v508_v32 = vsel %vm238_vm0, %v500_v28, 0 }
 0x136   : > { %v311_v35 = vmul.f32 %v310_v52, %v307_v27  ;;  %v758_v52 = vsel %vm756_vm7, %v2942_v6, %v755_v31  ;;  %v703_v6 = vsel %vm701_vm6, %v2930_v62, %v700_v1  ;;  %v869_v62 = vpop.permute.xlu0 %868 }
 0x137   : > { %v3034_v4 = vpop.f32.mrf.mxu2  ;;  %v766_v58 = vsel %vm238_vm0, %v758_v52, 0 }
 0x138   : > { %v312_v38 = vadd.f32 1.4214138, %v311_v35  ;;  %788 = vmatpush.bf16.msrb.mxu3 %v766_v58  ;;  %v1531_v35 = vld.sshfl [vmem:[#allocation1] sm:$0xff pattern:$0x73625140] }
 0x139   : > { %v3036_v40 = vpop.f32.mrf.mxu0  ;;  %v1533_v37 = vld.sshfl [vmem:[#allocation1 + $0x8] sm:$0xff pattern:$0x73625140]  ;;  %1425 = vrot.lane.b32.xlu1 %v1419_v51, %s2798_s14  ;;  %v3057_v53 = vld.sshfl [vmem:[#allocation1 + $0x10] sm:$0xff pattern:$0x73625140] }
 0x13a   : > { %v313_v41 = vmul.f32 %v312_v38, %v307_v27  ;;  %1585 = vst [vmem:[#allocation1] ss:$4 sm:$0xff] %v1583_v57  ;;  %v711_v38 = vsel %vm238_vm0, %v703_v6, 0 }
 0x13b   : > { %2598 = vmatmul.msk.bf16.vlgmr.msrb.gmra.mxu3 %vm261_vm2, %v2973_v19  ;;  %v872_v19 = vsel %vm870_vm9, %v2975_v20, %v869_v62  ;;  %v1786_v20 = vld [vmem:[#allocation2] sm:$0x3f] }
 0x13c   : > { %v314_v43 = vadd.f32 -0.28449672, %v313_v41  ;;  %v880_v51 = vsel %vm238_vm0, %v872_v19, 0 }
 0x13d   : > { %902 = vmatpush.bf16.msra.mxu3 %v880_v51 }
 0x13e   : > { %v315_v49 = vmul.f32 %v314_v43, %v307_v27  ;;  %v924_v58 = vpop.permute.xlu0 %923 }
 0x13f   : > { %v572_v54 = vpop.f32.mrf.mxu2 }
 0x140   : > { %v316_v59 = vadd.f32 0.2548296, %v315_v49  ;;  %v571_v49 = vadd.f32 %v3034_v4, %v3025_v8  ;;  %v820_v8 = vsel %vm818_vm8, %v2957_v13, %v817_v39  ;;  %v3087_v4 = vld [vmem:[%s3680_s1 + $0x4] ss:$8 sm:$0x3] }
 0x141   : > { %v627_v60 = vpop.f32.mrf.mxu0  ;;  %v1588_v43 = vld.sshfl [vmem:[#allocation1 + $0x8] sm:$0xff pattern:$0x73625140]  ;;  %v1586_v48 = vld.sshfl [vmem:[#allocation1] sm:$0xff pattern:$0x73625140] }
 0x142   : > { %v317_v63 = vmul.f32 %v316_v59, %v307_v27  ;;  %v2576_v27 = vld [vmem:[%s3682_s3 + $0x20] sm:$0xff]  ;;  %1594 = vrot.lane.b32.xlu1 %v1588_v43, %s2799_s15  ;;  %1592 = vrot.lane.b32.xlu0 %v1586_v48, %s2799_s15  ;;  %v642_v55 = vadd.f32 %v3036_v40, %v571_v49  ;;  %v647_v59 = vperm.slane %v3073_v50, 0  ;;  %v828_v40 = vsel %vm238_vm0, %v820_v8, 0  ;;  %v1959_v49 = vld [vmem:[#allocation2] sm:$0x3f] }
 0x144   : > { %v322_v5 = vmul.f32 %v2731_v2, %v317_v63  ;;  %v3090_v63 = vpop.permute.xlu2 %356  ;;  %v651_v1 = vmul.f32 %v647_v59, %v642_v55 }
 0x145   : > { %v3094_v7 = vadd.f32 %v3016_v36, %v3090_v63 }
 0x146   : > { %v323_v12 = vsub.f32 1.0, %v322_v5  ;;  %v1590_v5 = vld.sshfl [vmem:[#allocation1 + $0x10] sm:$0xff pattern:$0x73625140] }
 0x147   : > { %v670_v15 = vpop.f32.mrf.mxu2  ;;  %1790 = vst [vmem:[#allocation1] ss:$4 sm:$0xff] %v1786_v20  ;;  %1596 = vrot.lane.b32.xlu2 %v1590_v5, %s2799_s15  ;;  %s2680_s15 = sshll.u32 %s3688_s19, 4 }
 0x148   : > { %v324_v18 = vmul.f32 %v323_v12, %v290_v11  ;;  %v968_v11 = vperm.slane %v3087_v4, 0  ;;  %v3100_v12 = vmul.f32 0.70710677, %v3094_v7 }
 0x149   : > { %v722_v22 = vpop.f32.mrf.mxu0 }
 0x14a   : > { %v326_v9 = vadd.f32 1.0, %v324_v18  ;;  %v723_v60 = vadd.f32 %v722_v22, %v670_v15  ;;  %1539 = vrot.lane.b32.xlu1 %v1533_v37, %s2800_s20  ;;  %1537 = vrot.lane.b32.xlu0 %v1531_v35, %s2800_s20  ;;  %v3103_v18 = vand.u32 2147483647, %v3100_v12  ;;  %vm400_vm11 = vcmp.ge.f32.partialorder %v3100_v12, 0.0 }
 0x14b   : > { %2604 = vmatmul.msk.bf16.vlgmr.msra.gmra.mxu3 %vm261_vm2, %v2997_v29 }
 0x14c   : > { %v327_v26 = vmul.f32 %v326_v9, %v325_v46  ;;  %v406_v21 = vmul.f32 0.3275911, %v3103_v18 }
 0x14e   : > { %349 = vmatpush.msra.mxu1 %v327_v26  ;;  %v3108_v46 = vld.sshfl [vmem:[#allocation1] sm:$0xff pattern:$0x73625140]  ;;  %v3110_v9 = vld.sshfl [vmem:[#allocation1 + $0x8] sm:$0xff pattern:$0x73625140] }
 0x14f   : > { %2577 = vmatmul.msk.f32.vlgmr.msra.gmra.mxu1 %vm330_vm1, %v2576_v27  ;;  %v672_v34 = vpop.f32.mrf.mxu2  ;;  %v3112_v26 = vld.sshfl [vmem:[#allocation1 + $0x10] sm:$0xff pattern:$0x73625140]  ;;  %v408_v27 = vadd.f32 1.0, %v406_v21  ;;  %1541 = vrot.lane.b32.xlu2 %v3057_v53, %s2800_s20  ;;  %s3668_s20 = scalar_lea.vmem %s3684_s5, %s2680_s15 }
 0x150   : > { %530 = vmatpush.bf16.msrb.mxu1 %v508_v32  ;;  %1841 = vst [vmem:[#allocation1] ss:$4 sm:$0xff] %v1786_v20  ;;  %v1894_v34 = vld [vmem:[#allocation2 + $0x2] sm:$0x3f] }
 0x151   : > { %v724_v47 = vpop.f32.mrf.mxu0  ;;  %2732 = vrcp.f32 %v408_v27  ;;  %vm415_vm3 = vweird.f32 %v408_v27 }
 0x152   : > { %1652 = vperm.xlu0 %2723, %v2877_v42   ;;  %v927_v42 = vsel %vm925_vm10, %v2989_v25, %v924_v58  ;;  %1797 = vrot.lane.b32.xlu1 %v3108_v46, %s2809_s17 }
 0x153   : > { %v935_v32 = vsel %vm238_vm0, %v927_v42, 0  ;;  %v2045_v42 = vld [vmem:[#allocation2 + $0x2] sm:$0x3f] }
 0x154   : > { %636 = vmatpush.bf16.msra.mxu1 %v614_v44 }
 0x157   : > { %2583 = vmatmul.msk.bf16.vlgmr.msrb.gmra.mxu1 %vm261_vm2, %v2911_v56  ;;  %v777_v41 = vpop.f32.mrf.mxu2  ;;  %v2733_v37 = vpop.eup %2732  ;;  %v3130_v47 = vld.sshfl [vmem:[#allocation1] sm:$0xff pattern:$0x73625140]  ;;  %v3132_v53 = vld.sshfl [vmem:[#allocation1 + $0x10] sm:$0xff pattern:$0x73625140]  ;;  %1799 = vrot.lane.b32.xlu2 %v3110_v9, %s2809_s17 }
 0x158   : > { %733 = vmatpush.bf16.msrb.mxu1 %v711_v38  ;;  %v794_v2 = vadd.f32 %v777_v41, %v723_v60  ;;  %v411_v38 = vmul.f32 %v2733_v37, %v408_v27  ;;  %v1844_v39 = vld.sshfl [vmem:[#allocation1 + $0x8] sm:$0xff pattern:$0x73625140]  ;;  %v421_v41 = vand.u32 2147483648, %v408_v27  ;;  %vm416_vm4 = vweird.f32 %v2733_v37 }
 0x159   : > { %v839_v61 = vpop.f32.mrf.mxu0  ;;  %1896 = vst [vmem:[#allocation1] ss:$4 sm:$0xff] %v1894_v34  ;;  %vm3138_vm5 = vmor %vm415_vm3, %vm416_vm4  ;;  %vm1222_vm4 = vcmask 277504  }
 0x15a   : > { %v796_v16 = vadd.f32 %v794_v2, %v651_v1  ;;  %2725 = vset.pattern.permute.xlu0 %v2780_v0  ;;  %v412_v25 = vsub.f32 1.0, %v411_v38  ;;  %v422_v0 = vor.u32 1.1754944e-38, %v421_v41  ;;  %v394_v1 = vpop.f32.mrf.mxu3  ;;  %1801 = vrot.lane.b32.xlu1 %v3112_v26, %s2809_s17 }
 0x15b   : > { %1850 = vrot.lane.b32.xlu0 %v1844_v39, %s2802_s23  ;;  %v3150_v2 = vadd.f32 %v394_v1, %v3090_v63 }
 0x15f   : > { %v779_v56 = vpop.f32.mrf.mxu2  ;;  %1848 = vrot.lane.b32.xlu2 %v3130_v47, %s2802_s23 }
 0x160   : > { %v1899_v19 = vld.sshfl [vmem:[#allocation1 + $0x8] sm:$0xff pattern:$0x73625140]  ;;  %v3147_v20 = vld.sshfl [vmem:[#allocation1] sm:$0xff pattern:$0x73625140] }
 0x161   : > { %v841_v54 = vpop.f32.mrf.mxu0 }
 0x162   : > { %v3144_v54 = vld.sshfl [vmem:[#allocation1 + $0x10] sm:$0xff pattern:$0x73625140]  ;;  %1852 = vrot.lane.b32.xlu1 %v3132_v53, %s2802_s23 }
 0x163   : > { %1905 = vrot.lane.b32.xlu0 %v1899_v19, %s2803_s24  ;;  %1992 = vst [vmem:[#allocation1] ss:$4 sm:$0xff] %v1959_v49  ;;  %v2107_v19 = vld [vmem:[#allocation2 + $0x2] sm:$0x3f]  ;;  %v3317_v53 = vld [vmem:[%s3681_s2 + $0x30] sm:$0xf] }
 0x167   : > { %2588 = vmatmul.msk.bf16.vlgmr.msra.gmra.mxu1 %vm261_vm2, %v2938_v3  ;;  %v891_v13 = vpop.f32.mrf.mxu2  ;;  %v3106_v3 = vpop.permute.xlu1 %979  ;;  %1903 = vrot.lane.b32.xlu2 %v3147_v20, %s2803_s24 }
 0x168   : > { %v892_v29 = vadd.f32 %v891_v13, %v839_v61  ;;  %850 = vmatpush.bf16.msra.mxu1 %v828_v40  ;;  %v413_v61 = vmul.f32 %v2733_v37, %v412_v25 }
 0x169   : > { %v946_v15 = vpop.f32.mrf.mxu0 }
 0x16a   : > { %v963_v17 = vadd.f32 %v946_v15, %v892_v29  ;;  %v414_v48 = vadd.f32 %v2733_v37, %v413_v61  ;;  %v458_v29 = vsub.f32 0.0, %v3103_v18  ;;  %v3154_v15 = vmul.f32 0.70710677, %v3150_v2  ;;  %v3165_v58 = vld.sshfl [vmem:[#allocation1 + $0x10] sm:$0xff pattern:$0x73625140]  ;;  %1907 = vrot.lane.b32.xlu1 %v3144_v54, %s2803_s24 }
 0x16c   : > { %v972_v36 = vmul.f32 %v968_v11, %v963_v17  ;;  %v418_v51 = vsel %vm3138_vm5, %v2733_v37, %v414_v48  ;;  %v3161_v21 = vand.u32 2147483647, %v3154_v15  ;;  %v1995_v37 = vld.sshfl [vmem:[#allocation1 + $0x8] sm:$0xff pattern:$0x73625140]  ;;  %v3172_v48 = vpop.permute.xlu0 %1165  ;;  %vm1171_vm5 = vcmask 15360  }
 0x16d   : > { %2001 = vrot.lane.b32.xlu0 %v1995_v37, %s2804_s25  ;;  %v2104_v37 = vld [vmem:[#allocation2] sm:$0x3f] }
 0x16e   : > { %v974_v22 = vadd.f32 %v972_v36, %v796_v16  ;;  %v460_v36 = vmul.f32 %v458_v29, %v3103_v18  ;;  %v407_v18 = vmul.f32 0.3275911, %v3161_v21 }
 0x16f   : > { %v893_v28 = vpop.f32.mrf.mxu2  ;;  %v3170_v43 = vpop.permute.xlu1 %1167 }
 0x170   : > { %v3118_v31 = vadd.f32 %v3106_v3, %v974_v22  ;;  %v409_v39 = vadd.f32 1.0, %v407_v18 }
 0x171   : > { %v948_v52 = vpop.f32.mrf.mxu0 }
 0x172   : > { %v3121_v44 = vmul.f32 0.70710677, %v3118_v31  ;;  %v3163_v52 = vld.sshfl [vmem:[#allocation1] sm:$0xff pattern:$0x73625140]  ;;  %v436_v29 = vand.u32 2147483648, %v409_v39  ;;  %vm430_vm12 = vweird.f32 %v409_v39  ;;  %2003 = vrot.lane.b32.xlu1 %v3165_v58, %s2804_s25 }
 0x173   : > { %2047 = vst [vmem:[#allocation1] ss:$4 sm:$0xff] %v2045_v42  ;;  %1999 = vrot.lane.b32.xlu2 %v3163_v52, %s2804_s25 }
 0x174   : > { %v3124_v57 = vand.u32 2147483647, %v3121_v44  ;;  %vm986_vm14 = vcmp.ge.f32.partialorder %v3121_v44, 0.0 }
 0x175   : > { %v988_v44 = vsel %vm986_vm14, 1.0, %v2796_v10 }
 0x176   : > { %v992_v35 = vmul.f32 0.3275911, %v3124_v57  ;;  %v1044_v63 = vsub.f32 0.0, %v3124_v57 }
 0x177   : > { %2595 = vmatmul.msk.bf16.vlgmr.msrb.gmra.mxu1 %vm261_vm2, %v2962_v14  ;;  %v419_v14 = vand.u32 2147483647, %v408_v27  ;;  %v462_v27 = vmul.f32 1.442695, %v460_v36 }
 0x178   : > { %v994_v6 = vadd.f32 1.0, %v992_v35  ;;  %957 = vmatpush.bf16.msrb.mxu1 %v935_v32  ;;  %v396_v35 = vpop.f32.mrf.mxu3 }
 0x179   : > { %vm420_vm6 = vcmp.eq.f32.partialorder %v419_v14, 8.507059e+37 }
 0x17a   : > { %2734 = vrcp.f32 %v994_v6  ;;  %v1005_v55 = vand.u32 2147483647, %v994_v6  ;;  %v1007_v59 = vand.u32 2147483648, %v994_v6  ;;  %v423_v60 = vsel %vm420_vm6, %v422_v0, %v418_v51  ;;  %v3178_v1 = vld.sshfl [vmem:[#allocation1 + $0x10] sm:$0xff pattern:$0x73625140] }
 0x17b   : > { %vm1001_vm7 = vweird.f32 %v994_v6  ;;  %v440_v40 = vmul.f32 1.0614054, %v423_v60  ;;  %2736 = vpow2.f32 %v462_v27  ;;  %v2050_v12 = vld.sshfl [vmem:[#allocation1 + $0x8] sm:$0xff pattern:$0x73625140]  ;;  %vm1277_vm6 = vcmask 801792   ;;  %2058 = vrot.lane.b32.xlu1 %v3178_v1, %s2805_s26 }
 0x17c   : > { %v1008_v11 = vor.u32 1.1754944e-38, %v1007_v59  ;;  %vm1006_vm10 = vcmp.eq.f32.partialorder %v1005_v55, 8.507059e+37  ;;  %2738 = vrcp.f32 %v409_v39  ;;  %v3175_v59 = vld.sshfl [vmem:[#allocation1] sm:$0xff pattern:$0x73625140]  ;;  %2056 = vrot.lane.b32.xlu0 %v2050_v12, %s2805_s26 }
 0x17d   : > { %v442_v13 = vadd.f32 -1.4531521, %v440_v40  ;;  %2109 = vst [vmem:[#allocation1] ss:$4 sm:$0xff] %v2107_v19  ;;  %2054 = vrot.lane.b32.xlu2 %v3175_v59, %s2805_s26 }
 0x17f   : > { %v444_v17 = vmul.f32 %v442_v13, %v423_v60 }
 0x180   : > { %v2735_v62 = vpop.eup %2734 }
 0x181   : > { %v997_v56 = vmul.f32 %v2735_v62, %v994_v6  ;;  %vm1002_vm8 = vweird.f32 %v2735_v62  ;;  %v446_v23 = vadd.f32 1.4214138, %v444_v17 }
 0x182   : > { %vm1003_vm9 = vmor %vm1001_vm7, %vm1002_vm8  ;;  %vm1374_vm7 = vcmask 261120   ;;  %vm401_vm8 = vcmp.ge.f32.partialorder %v3154_v15, 0.0  ;;  %v473_v15 = vmul.f32 0.5, %v3150_v2 }
 0x183   : > { %v998_v8 = vsub.f32 1.0, %v997_v56  ;;  %v448_v34 = vmul.f32 %v446_v23, %v423_v60 }
 0x185   : > { %v999_v5 = vmul.f32 %v2735_v62, %v998_v8  ;;  %v450_v38 = vadd.f32 -0.28449672, %v448_v34  ;;  %v402_v8 = vsel %vm400_vm11, 1.0, %v2796_v10  ;;  %vm1598_vm11 = vcmask 769024  }
 0x187   : > { %v1000_v16 = vadd.f32 %v2735_v62, %v999_v5  ;;  %2602 = vmatmul.msk.bf16.vlgmr.msra.gmra.mxu1 %vm261_vm2, %v2985_v24  ;;  %v1046_v24 = vmul.f32 %v1044_v63, %v3124_v57  ;;  %v452_v41 = vmul.f32 %v450_v38, %v423_v60  ;;  %v2737_v57 = vpop.eup %2736  ;;  %v472_v63 = vmul.f32 0.5, %v3094_v7  ;;  %v3193_v7 = vld [vmem:[%s3682_s3] sm:$0xff] }
 0x188   : > { %v2739_v56 = vpop.eup %2738 }
 0x189   : > { %v1004_v22 = vsel %vm1003_vm9, %v2735_v62, %v1000_v16  ;;  %v1048_v61 = vmul.f32 1.442695, %v1046_v24  ;;  %v454_v0 = vadd.f32 0.2548296, %v452_v41  ;;  %v426_v40 = vmul.f32 %v2739_v56, %v409_v39  ;;  %v3183_v16 = vpop.permute.xlu1 %1273 }
 0x18a   : > { %v1009_v28 = vsel %vm1006_vm10, %v1008_v11, %v1004_v22  ;;  %vm431_vm13 = vweird.f32 %v2739_v56  ;;  %v434_v11 = vand.u32 2147483647, %v409_v39  ;;  %v1272_v22 = vpop.permute.xlu0 %1271  ;;  %v459_v24 = vsub.f32 0.0, %v3161_v21  ;;  %v3196_v39 = vld.sshfl [vmem:[#allocation1] sm:$0xff pattern:$0x73625140] }
 0x18b   : > { %v1026_v32 = vmul.f32 1.0614054, %v1009_v28  ;;  %v456_v49 = vmul.f32 %v454_v0, %v423_v60  ;;  %2740 = vpow2.f32 %v1048_v61  ;;  %v427_v60 = vsub.f32 1.0, %v426_v40  ;;  %vm432_vm15 = vmor %vm430_vm12, %vm431_vm13  ;;  %v3198_v41 = vld.sshfl [vmem:[#allocation1 + $0x10] sm:$0xff pattern:$0x73625140]  ;;  %2116 = vrot.lane.b32.xlu2 %v3196_v39, %s2806_s29 }
 0x18c   : > { %vm435_vm3 = vcmp.eq.f32.partialorder %v434_v11, 8.507059e+37  ;;  %v1058_v0 = vmul.f32 0.5, %v3118_v31  ;;  %v2214_v11 = vld [vmem:[#allocation2 + $0x2] sm:$0x3f]  ;;  %vm1491_vm9 = vcmask 1031168   ;;  %vm1429_vm10 = vcmask 785408   ;;  %2120 = vrot.lane.b32.xlu1 %v3198_v41, %s2806_s29 }
 0x18d   : > { %v1028_v6 = vadd.f32 -1.4531521, %v1026_v32  ;;  %v466_v55 = vmul.f32 %v2737_v57, %v456_v49  ;;  %v428_v27 = vmul.f32 %v2739_v56, %v427_v60  ;;  %v437_v32 = vor.u32 1.1754944e-38, %v436_v29  ;;  %v3223_v29 = vld [vmem:[%s3681_s2 + $0x28] sm:$0xf] }
 0x18e   : > { %v461_v57 = vmul.f32 %v459_v24, %v3161_v21  ;;  %v1278_v21 = vsel %vm1277_vm6, %v1272_v22, %v3183_v16  ;;  %vm1543_vm12 = vcmask 244736   ;;  %v969_v41 = vperm.slane %v3087_v4, 1 }
 0x18f   : > { %v1030_v25 = vmul.f32 %v1028_v6, %v1009_v28  ;;  %v468_v13 = vsub.f32 1.0, %v466_v55  ;;  %v429_v34 = vadd.f32 %v2739_v56, %v428_v27  ;;  %v1172_v55 = vsel %vm1171_vm5, %v3172_v48, %v3170_v43 }
 0x190   : > { %v1178_v12 = vsel %vm238_vm0, %v1172_v55, 0  ;;  %v1284_v60 = vsel %vm238_vm0, %v1278_v21, 0 }
 0x191   : > { %v1032_v14 = vadd.f32 1.4214138, %v1030_v25  ;;  %v470_v36 = vmul.f32 %v468_v13, %v402_v8  ;;  %v2741_v23 = vpop.eup %2740  ;;  %v3202_v61 = vpop.permute.xlu1 %1218  ;;  %v3218_v13 = vld [vmem:[%s3682_s3 + $0x8] sm:$0xff] }
 0x192   : > { %v1217_v49 = vpop.permute.xlu0 %1216 }
 0x193   : > { %v1034_v62 = vmul.f32 %v1032_v14, %v1009_v28  ;;  %v474_v42 = vadd.f32 1.0, %v470_v36 }
 0x195   : > { %v1036_v51 = vadd.f32 -0.28449672, %v1034_v62  ;;  %v476_v35 = vmul.f32 %v474_v42, %v472_v63  ;;  %v2112_v62 = vld.sshfl [vmem:[#allocation1 + $0x8] sm:$0xff pattern:$0x73625140] }
 0x196   : > { %2118 = vrot.lane.b32.xlu0 %v2112_v62, %s2806_s29  ;;  %2161 = vst [vmem:[#allocation1] ss:$4 sm:$0xff] %v2104_v37 }
 0x197   : > { %v1038_v5 = vmul.f32 %v1036_v51, %v1009_v28  ;;  %2607 = vmatmul.msk.bf16.vlgmr.msrb.gmra.mxu1 %vm261_vm2, %v3004_v30  ;;  %1127 = vmatpush.msra.mxu0 %v476_v35 }
 0x198   : > { %2612 = vmatmul.msk.f32.vlgmr.msra.gmra.mxu0 %vm330_vm1, %v3193_v7 }
 0x199   : > { %v1040_v17 = vadd.f32 0.2548296, %v1038_v5  ;;  %v464_v5 = vmul.f32 1.442695, %v461_v57  ;;  %v3232_v36 = vpop.permute.xlu1 %1370 }
 0x19b   : > { %v1042_v30 = vmul.f32 %v1040_v17, %v1009_v28  ;;  %v433_v28 = vsel %vm432_vm15, %v2739_v56, %v429_v34  ;;  %v1223_v56 = vsel %vm1222_vm4, %v1217_v49, %v3202_v61  ;;  %2742 = vpow2.f32 %v464_v5  ;;  %v3244_v34 = vld [vmem:[%s3681_s2 + $0x34] sm:$0xf]  ;;  %v3286_v5 = vld [vmem:[%s3681_s2 + $0x44] sm:$0xf] }
 0x19c   : > { %v438_v38 = vsel %vm435_vm3, %v437_v32, %v433_v28  ;;  %v1229_v31 = vsel %vm238_vm0, %v1223_v56, 0 }
 0x19d   : > { %v1052_v18 = vmul.f32 %v2741_v23, %v1042_v30  ;;  %v441_v25 = vmul.f32 1.0614054, %v438_v38  ;;  %1241 = vmatpush.bf16.msrb.mxu0 %v1229_v31  ;;  %v3234_v63 = vld.sshfl [vmem:[#allocation1] sm:$0xff pattern:$0x73625140]  ;;  %v1369_v23 = vpop.permute.xlu0 %1368 }
 0x19e   : > { %v3236_v22 = vld.sshfl [vmem:[#allocation1 + $0x10] sm:$0xff pattern:$0x73625140]  ;;  %v2164_v30 = vld.sshfl [vmem:[#allocation1 + $0x8] sm:$0xff pattern:$0x73625140]  ;;  %v1375_v42 = vsel %vm1374_vm7, %v1369_v23, %v3232_v36  ;;  %2168 = vrot.lane.b32.xlu2 %v3234_v63, %s2807_s9 }
 0x19f   : > { %v1054_v6 = vsub.f32 1.0, %v1052_v18  ;;  %v443_v19 = vadd.f32 -1.4531521, %v441_v25  ;;  %2170 = vrot.lane.b32.xlu0 %v2164_v30, %s2807_s9  ;;  %2216 = vst [vmem:[#allocation1] ss:$4 sm:$0xff] %v2214_v11  ;;  %v1381_v35 = vsel %vm238_vm0, %v1375_v42, 0  ;;  %2172 = vrot.lane.b32.xlu1 %v3236_v22, %s2807_s9 }
 0x1a0   : > { %2618 = vmatmul.msk.bf16.vlgmr.msrb.gmra.mxu0 %vm261_vm2, %v3223_v29 }
 0x1a1   : > { %v1056_v14 = vmul.f32 %v1054_v6, %v988_v44  ;;  %v445_v8 = vmul.f32 %v443_v19, %v438_v38  ;;  %1341 = vmatpush.bf16.msra.mxu0 %v2882_v45  ;;  %v2743_v24 = vpop.eup %2742  ;;  %v403_v6 = vsel %vm401_vm8, 1.0, %v2796_v10 }
 0x1a3   : > { %v1060_v51 = vadd.f32 1.0, %v1056_v14  ;;  %v447_v48 = vadd.f32 1.4214138, %v445_v8  ;;  %v3255_v14 = vld [vmem:[%s3681_s2 + $0x38] sm:$0xf]  ;;  %v3262_v49 = vpop.permute.xlu1 %1487 }
 0x1a5   : > { %v1062_v40 = vmul.f32 %v1060_v51, %v1058_v0  ;;  %v449_v17 = vmul.f32 %v447_v48, %v438_v38  ;;  %v1486_v19 = vpop.permute.xlu0 %1485  ;;  %v3269_v51 = vld [vmem:[%s3681_s2 + $0x40] sm:$0xf]  ;;  %v3298_v48 = vld [vmem:[%s3681_s2 + $0x2c] sm:$0xf] }
 0x1a6   : > { %v2219_v28 = vld.sshfl [vmem:[#allocation1 + $0x8] sm:$0xff pattern:$0x73625140]  ;;  %v1492_v56 = vsel %vm1491_vm9, %v1486_v19, %v3262_v49 }
 0x1a7   : > { %1084 = vmatpush.msrb.mxu2 %v1062_v40  ;;  %v451_v27 = vadd.f32 -0.28449672, %v449_v17  ;;  %2225 = vrot.lane.b32.xlu0 %v2219_v28, %s2808_s12  ;;  %v1498_v2 = vsel %vm238_vm0, %v1492_v56, 0 }
 0x1a8   : > { %2610 = vmatmul.msk.f32.vlgmr.msrb.gmra.mxu2 %vm330_vm1, %v3218_v13 }
 0x1a9   : > { %1190 = vmatpush.bf16.msra.mxu2 %v1178_v12  ;;  %v453_v32 = vmul.f32 %v451_v27, %v438_v38 }
 0x1ab   : > { %v455_v18 = vadd.f32 0.2548296, %v453_v32  ;;  %v3278_v31 = vpop.permute.xlu1 %1425  ;;  %v3328_v32 = vld [vmem:[%s3681_s2 + $0x3c] sm:$0xf] }
 0x1ad   : > { %1296 = vmatpush.bf16.msrb.mxu2 %v1284_v60  ;;  %v457_v37 = vmul.f32 %v455_v18, %v438_v38  ;;  %v3258_v38 = vpop.f32.mrf.mxu3  ;;  %v1424_v8 = vpop.permute.xlu0 %1423 }
 0x1ae   : > { %v1430_v21 = vsel %vm1429_vm10, %v1424_v8, %v3278_v31 }
 0x1af   : > { %v467_v44 = vmul.f32 %v2743_v24, %v457_v37  ;;  %v3343_v24 = vld [vmem:[%s3681_s2 + $0x48] sm:$0xf] }
 0x1b0   : > { %2616 = vmatmul.msk.bf16.vlgmr.msra.gmra.mxu2 %vm261_vm2, %v3244_v34  ;;  %2626 = vmatmul.msk.bf16.vlgmr.msra.gmra.mxu0 %vm261_vm2, %v3255_v14 }
 0x1b1   : > { %1393 = vmatpush.bf16.msra.mxu2 %v1381_v35  ;;  %v469_v25 = vsub.f32 1.0, %v467_v44 }
 0x1b3   : > { %v471_v0 = vmul.f32 %v469_v25, %v403_v6  ;;  %v648_v25 = vperm.slane %v3073_v50, 1 }
 0x1b4   : > { %v3293_v9 = vpop.permute.xlu1 %1594 }
 0x1b5   : > { %v475_v57 = vadd.f32 1.0, %v471_v0  ;;  %v585_v55 = vpop.f32.mrf.mxu3  ;;  %v1593_v12 = vpop.permute.xlu0 %1592 }
 0x1b6   : > { %v1599_v26 = vsel %vm1598_vm11, %v1593_v12, %v3293_v9 }
 0x1b7   : > { %v477_v62 = vmul.f32 %v475_v57, %v473_v15  ;;  %v1605_v11 = vsel %vm238_vm0, %v1599_v26, 0 }
 0x1b9   : > { %1147 = vmatpush.msra.mxu1 %v477_v62 }
 0x1ba   : > { %2613 = vmatmul.msk.f32.vlgmr.msra.gmra.mxu1 %vm330_vm1, %v3193_v7  ;;  %v1436_v7 = vsel %vm238_vm0, %v1430_v21, 0 }
 0x1bb   : > { %1448 = vmatpush.bf16.msrb.mxu0 %v1436_v7 }
 0x1bc   : > { %v3309_v17 = vpop.permute.xlu1 %1539 }
 0x1bd   : > { %v683_v40 = vpop.f32.mrf.mxu3  ;;  %v1538_v23 = vpop.permute.xlu0 %1537 }
 0x1be   : > { %v1544_v27 = vsel %vm1543_vm12, %v1538_v23, %v3309_v17 }
 0x1bf   : > { %v1550_v42 = vsel %vm238_vm0, %v1544_v27, 0 }
 0x1c0   : > { %2621 = vmatmul.msk.bf16.vlgmr.msrb.gmra.mxu2 %vm261_vm2, %v3269_v51  ;;  %2631 = vmatmul.msk.bf16.vlgmr.msrb.gmra.mxu0 %vm261_vm2, %v3286_v5 }
 0x1c1   : > { %1510 = vmatpush.bf16.msrb.mxu2 %v1498_v2  ;;  %1562 = vmatpush.bf16.msra.mxu0 %v1550_v42 }
 0x1c5   : > { %v685_v60 = vpop.f32.mrf.mxu3 }
 0x1cc   : > { %v351_v46 = vpop.f32.mrf.mxu1 }
 0x1cd   : > { %2417 = vperm.xlu0 %2725, %v351_v46   ;;  %v790_v30 = vpop.f32.mrf.mxu3  ;;  %v1170_v46 = vpop.permute.xlu2 %1169 }
 0x1d0   : > { %2628 = vmatmul.msk.bf16.vlgmr.msra.gmra.mxu2 %vm261_vm2, %v3298_v48  ;;  %2637 = vmatmul.msk.bf16.vlgmr.msra.gmra.mxu0 %vm261_vm2, %v3317_v53 }
 0x1d1   : > { %1617 = vmatpush.bf16.msra.mxu2 %v1605_v11 }
 0x1d4   : > { %v532_v47 = vpop.f32.mrf.mxu1 }
 0x1d5   : > { %v792_v18 = vpop.f32.mrf.mxu3  ;;  %v584_v44 = vadd.f32 %v3258_v38, %v532_v47 }
 0x1d6   : > { %v1276_v18 = vpop.permute.xlu2 %1275 }
 0x1dc   : > { %v534_v20 = vpop.f32.mrf.mxu1 }
 0x1dd   : > { %v904_v52 = vpop.f32.mrf.mxu3 }
 0x1e0   : > { %2635 = vmatmul.msk.bf16.vlgmr.msrb.gmra.mxu2 %vm261_vm2, %v3328_v32 }
 0x1e4   : > { %v638_v54 = vpop.f32.mrf.mxu1 }
 0x1e5   : > { %v906_v37 = vpop.f32.mrf.mxu3  ;;  %v643_v6 = vadd.f32 %v638_v54, %v584_v44 }
 0x1e7   : > { %v652_v62 = vmul.f32 %v648_v25, %v643_v6 }
 0x1ec   : > { %v640_v35 = vpop.f32.mrf.mxu1 }
 0x1f0   : > { %2640 = vmatmul.msk.bf16.vlgmr.msra.gmra.mxu2 %vm261_vm2, %v3343_v24 }
 0x1f4   : > { %v735_v58 = vpop.f32.mrf.mxu1 }
 0x1f5   : > { %v736_v28 = vadd.f32 %v735_v58, %v683_v40 }
 0x1f7   : > { %v795_v0 = vadd.f32 %v790_v30, %v736_v28  ;;  %v1221_v28 = vpop.permute.xlu2 %1220 }
 0x1f8   : > { %v1224_v25 = vsel %vm1222_vm4, %v3202_v61, %v1221_v28 }
 0x1f9   : > { %v797_v19 = vadd.f32 %v795_v0, %v652_v62 }
 0x1fc   : > { %v737_v59 = vpop.f32.mrf.mxu1 }
 0x204   : > { %v852_v1 = vpop.f32.mrf.mxu1 }
 0x205   : > { %v905_v15 = vadd.f32 %v904_v52, %v852_v1 }
 0x20c   : > { %v854_v39 = vpop.f32.mrf.mxu1 }
 0x214   : > { %v959_v57 = vpop.f32.mrf.mxu1 }
 0x215   : > { %v964_v63 = vadd.f32 %v959_v57, %v905_v15  ;;  %v1129_v21 = vpop.f32.mrf.mxu0 }
 0x217   : > { %v973_v56 = vmul.f32 %v969_v41, %v964_v63  ;;  %v1232_v41 = vsel %vm238_vm0, %v1224_v25, 0 }
 0x218   : > { %1254 = vmatpush.bf16.msrb.mxu1 %v1232_v41 }
 0x219   : > { %v975_v2 = vadd.f32 %v973_v56, %v797_v19 }
 0x21b   : > { %v983_v22 = vadd.f32 %v3106_v3, %v975_v2  ;;  %2619 = vmatmul.msk.bf16.vlgmr.msrb.gmra.mxu1 %vm261_vm2, %v3223_v29 }
 0x21c   : > { %v961_v55 = vpop.f32.mrf.mxu1  ;;  %1354 = vmatpush.bf16.msra.mxu1 %v3010_v33 }
 0x21d   : > { %v985_v8 = vmul.f32 0.70710677, %v983_v22  ;;  %v3357_v50 = vpop.f32.mrf.mxu0 }
 0x21f   : > { %v991_v38 = vand.u32 2147483647, %v985_v8  ;;  %vm987_vm4 = vcmp.ge.f32.partialorder %v985_v8, 0.0 }
 0x221   : > { %v993_v7 = vmul.f32 0.3275911, %v991_v38  ;;  %v1045_v52 = vsub.f32 0.0, %v991_v38 }
 0x223   : > { %v995_v40 = vadd.f32 1.0, %v993_v7  ;;  %v1047_v1 = vmul.f32 %v1045_v52, %v991_v38 }
 0x225   : > { %2744 = vrcp.f32 %v995_v40  ;;  %v1245_v11 = vpop.f32.mrf.mxu0  ;;  %v1022_v23 = vand.u32 2147483648, %v995_v40  ;;  %v1020_v3 = vand.u32 2147483647, %v995_v40  ;;  %vm1016_vm14 = vweird.f32 %v995_v40 }
 0x226   : > { %v1050_v0 = vmul.f32 1.442695, %v1047_v1  ;;  %v1173_v11 = vsel %vm1171_vm5, %v3170_v43, %v1170_v46 }
 0x227   : > { %v1023_v20 = vor.u32 1.1754944e-38, %v1022_v23  ;;  %vm1021_vm3 = vcmp.eq.f32.partialorder %v1020_v3, 8.507059e+37  ;;  %v1279_v23 = vsel %vm1277_vm6, %v3183_v16, %v1276_v18  ;;  %v1181_v3 = vsel %vm238_vm0, %v1173_v11, 0 }
 0x228   : > { %2746 = vpow2.f32 %v1050_v0  ;;  %v1287_v8 = vsel %vm238_vm0, %v1279_v23, 0 }
 0x22b   : > { %v2745_v12 = vpop.eup %2744  ;;  %v1086_v4 = vpop.f32.mrf.mxu2  ;;  %2627 = vmatmul.msk.bf16.vlgmr.msra.gmra.mxu1 %vm261_vm2, %v3255_v14 }
 0x22c   : > { %v1012_v26 = vmul.f32 %v2745_v12, %v995_v40  ;;  %v3359_v60 = vadd.f32 %v1129_v21, %v1086_v4  ;;  %vm1017_vm13 = vweird.f32 %v2745_v12  ;;  %v989_v40 = vsel %vm987_vm4, 1.0, %v2796_v10 }
 0x22d   : > { %vm1018_vm15 = vmor %vm1016_vm14, %vm1017_vm13  ;;  %v3363_v35 = vpop.f32.mrf.mxu0  ;;  %vm2005_vm13 = vcmask 392192   ;;  %vm2060_vm14 = vcmask 654336   ;;  %vm2229_vm4 = vcmask 629760  }
 0x22e   : > { %v1013_v47 = vsub.f32 1.0, %v1012_v26  ;;  %v2747_v21 = vpop.eup %2746  ;;  %v1059_v26 = vmul.f32 0.5, %v983_v22 }
 0x230   : > { %v1014_v27 = vmul.f32 %v2745_v12, %v1013_v47 }
 0x232   : > { %v1015_v30 = vadd.f32 %v2745_v12, %v1014_v27 }
 0x233   : > { %v3361_v42 = vpop.f32.mrf.mxu2 }
 0x234   : > { %v1019_v54 = vsel %vm1018_vm15, %v2745_v12, %v1015_v30  ;;  %v1373_v12 = vpop.permute.xlu2 %1372  ;;  %vm2122_vm15 = vcmask 1022976  }
 0x235   : > { %v1024_v37 = vsel %vm1021_vm3, %v1023_v20, %v1019_v54  ;;  %v1345_v15 = vpop.f32.mrf.mxu0  ;;  %v1376_v43 = vsel %vm1374_vm7, %v3232_v36, %v1373_v12  ;;  %vm2174_vm3 = vcmask 367616  }
 0x236   : > { %v1027_v58 = vmul.f32 1.0614054, %v1024_v37  ;;  %v1384_v46 = vsel %vm238_vm0, %v1376_v43, 0 }
 0x238   : > { %v1029_v59 = vadd.f32 -1.4531521, %v1027_v58  ;;  %v3399_v58 = vld [vmem:[%s3680_s1 + $0x1] ss:$8 sm:$0x3] }
 0x23a   : > { %v1031_v39 = vmul.f32 %v1029_v59, %v1024_v37 }
 0x23b   : > { %v1194_v44 = vpop.f32.mrf.mxu2 }
 0x23c   : > { %v1033_v6 = vadd.f32 1.4214138, %v1031_v39  ;;  %v1490_v30 = vpop.permute.xlu2 %1489  ;;  %v2217_v44 = vld.sshfl [vmem:[#allocation1] sm:$0xff pattern:$0x73625140] }
 0x23d   : > { %v1450_v55 = vpop.f32.mrf.mxu0  ;;  %2223 = vrot.lane.b32.xlu2 %v2217_v44, %s2808_s12 }
 0x23e   : > { %v1035_v57 = vmul.f32 %v1033_v6, %v1024_v37 }
 0x240   : > { %v1037_v62 = vadd.f32 -0.28449672, %v1035_v57 }
 0x242   : > { %v1039_v63 = vmul.f32 %v1037_v62, %v1024_v37 }
 0x243   : > { %v1298_v19 = vpop.f32.mrf.mxu2 }
 0x244   : > { %v1041_v56 = vadd.f32 0.2548296, %v1039_v63  ;;  %v1428_v20 = vpop.permute.xlu2 %1427  ;;  %v3420_v63 = vpop.permute.xlu0 %1652 }
 0x245   : > { %v1452_v29 = vpop.f32.mrf.mxu0  ;;  %v1431_v18 = vsel %vm1429_vm10, %v3278_v31, %v1428_v20 }
 0x246   : > { %v1043_v2 = vmul.f32 %v1041_v56, %v1024_v37  ;;  %v1493_v37 = vsel %vm1491_vm9, %v3262_v49, %v1490_v30  ;;  %vm1854_vm9 = vcmask 416768  }
 0x247   : > { %v1501_v31 = vsel %vm238_vm0, %v1493_v37, 0 }
 0x248   : > { %v1053_v61 = vmul.f32 %v2747_v21, %v1043_v2 }
 0x24a   : > { %v1055_v38 = vsub.f32 1.0, %v1053_v61 }
 0x24b   : > { %v1300_v7 = vpop.f32.mrf.mxu2 }
 0x24c   : > { %v1057_v4 = vmul.f32 %v1055_v38, %v989_v40  ;;  %v1597_v36 = vpop.permute.xlu2 %1596 }
 0x24d   : > { %v1564_v16 = vpop.f32.mrf.mxu0  ;;  %v1600_v57 = vsel %vm1598_vm11, %v3293_v9, %v1597_v36  ;;  %vm1803_vm11 = vcmask 23552  }
 0x24e   : > { %v1061_v47 = vadd.f32 1.0, %v1057_v4 }
 0x250   : > { %v1063_v27 = vmul.f32 %v1061_v47, %v1059_v26 }
 0x252   : > { %1104 = vmatpush.msrb.mxu3 %v1063_v27 }
 0x253   : > { %2611 = vmatmul.msk.f32.vlgmr.msrb.gmra.mxu3 %vm330_vm1, %v3218_v13  ;;  %v1395_v22 = vpop.f32.mrf.mxu2  ;;  %v1439_v13 = vsel %vm238_vm0, %v1431_v18, 0  ;;  %v3440_v18 = vld [vmem:[%s3681_s2 + $0x4c] sm:$0xf] }
 0x254   : > { %1203 = vmatpush.bf16.msra.mxu3 %v1181_v3  ;;  %1461 = vmatpush.bf16.msrb.mxu1 %v1439_v13  ;;  %v1396_v39 = vadd.f32 %v1395_v22, %v3363_v35  ;;  %v1542_v49 = vpop.permute.xlu2 %1541  ;;  %v3430_v22 = vpop.permute.xlu0 %1850 }
 0x255   : > { %v1566_v54 = vpop.f32.mrf.mxu0 }
 0x256   : > { %v1467_v6 = vadd.f32 %v1450_v55, %v1396_v39 }
 0x257   : > { %2632 = vmatmul.msk.bf16.vlgmr.msrb.gmra.mxu1 %vm261_vm2, %v3286_v5  ;;  %v1320_v5 = vperm.slane %v3399_v58, 0 }
 0x258   : > { %1309 = vmatpush.bf16.msrb.mxu3 %v1287_v8 }
 0x25b   : > { %2617 = vmatmul.msk.bf16.vlgmr.msra.gmra.mxu3 %vm261_vm2, %v3244_v34  ;;  %v1397_v14 = vpop.f32.mrf.mxu2  ;;  %v1244_v34 = vadd.f32 %v3357_v50, %v3361_v42  ;;  %v1545_v50 = vsel %vm1543_vm12, %v3309_v17, %v1542_v49  ;;  %v3412_v42 = vld [vmem:[%s3680_s1 + $0x5] ss:$8 sm:$0x3]  ;;  %vm1909_vm12 = vcmask 678912  }
 0x25c   : > { %1406 = vmatpush.bf16.msra.mxu3 %v1384_v46  ;;  %v1641_v35 = vperm.slane %v3412_v42, 0  ;;  %v3428_v47 = vpop.permute.xlu2 %1799  ;;  %v3445_v54 = vpop.permute.xlu0 %1905 }
 0x25d   : > { %v1315_v1 = vadd.f32 %v1298_v19, %v1244_v34  ;;  %v1608_v19 = vsel %vm238_vm0, %v1600_v57, 0  ;;  %v1149_v57 = vpop.f32.mrf.mxu1 }
 0x25f   : > { %v1324_v28 = vmul.f32 %v1320_v5, %v1315_v1  ;;  %v1798_v5 = vpop.permute.xlu1 %1797 }
 0x261   : > { %v1469_v17 = vadd.f32 %v1467_v6, %v1324_v28 }
 0x263   : > { %v1512_v52 = vpop.f32.mrf.mxu2 }
 0x264   : > { %v1565_v25 = vadd.f32 %v1564_v16, %v1512_v52  ;;  %v1849_v43 = vpop.permute.xlu2 %1848  ;;  %v3448_v49 = vpop.permute.xlu0 %2001 }
 0x265   : > { %v1855_v46 = vsel %vm1854_vm9, %v1849_v43, %v3430_v22  ;;  %v3525_v43 = vld [vmem:[%s3681_s2 + $0x50] sm:$0xf] }
 0x266   : > { %v1861_v14 = vsel %vm238_vm0, %v1855_v46, 0 }
 0x267   : > { %1873 = vmatpush.bf16.msrb.mxu2 %v1861_v14 }
 0x26a   : > { %2650 = vmatmul.msk.bf16.vlgmr.msrb.gmra.mxu2 %vm261_vm2, %v3440_v18 }
 0x26b   : > { %2622 = vmatmul.msk.bf16.vlgmr.msrb.gmra.mxu3 %vm261_vm2, %v3269_v51  ;;  %v1514_v59 = vpop.f32.mrf.mxu2  ;;  %v1553_v51 = vsel %vm238_vm0, %v1545_v50, 0  ;;  %1972 = vmatpush.bf16.msra.mxu2 %v2882_v45  ;;  %v1804_v50 = vsel %vm1803_vm11, %v1798_v5, %v3428_v47 }
 0x26c   : > { %1523 = vmatpush.bf16.msrb.mxu3 %v1501_v31  ;;  %1575 = vmatpush.bf16.msra.mxu1 %v1553_v51  ;;  %v1904_v59 = vpop.permute.xlu2 %1903  ;;  %v3455_v51 = vld [vmem:[%s3681_s2 + $0x5c] sm:$0xf] }
 0x26d   : > { %v1910_v28 = vsel %vm1909_vm12, %v1904_v59, %v3445_v54 }
 0x26f   : > { %2638 = vmatmul.msk.bf16.vlgmr.msra.gmra.mxu1 %vm261_vm2, %v3317_v53 }
 0x273   : > { %v1619_v0 = vpop.f32.mrf.mxu2 }
 0x274   : > { %v1636_v15 = vadd.f32 %v1619_v0, %v1565_v25  ;;  %v3462_v25 = vld [vmem:[%s3682_s3 + $0x10] sm:$0xff]  ;;  %v2000_v0 = vpop.permute.xlu2 %1999 }
 0x276   : > { %v1645_v41 = vmul.f32 %v1641_v35, %v1636_v15  ;;  %v1810_v35 = vsel %vm238_vm0, %v1804_v50, 0  ;;  %v2006_v15 = vsel %vm2005_vm13, %v2000_v0, %v3448_v49  ;;  %v3548_v0 = vld [vmem:[%s3683_s4] sm:$0xff] }
 0x278   : > { %v1647_v62 = vadd.f32 %v1645_v41, %v1469_v17  ;;  %v1916_v17 = vsel %vm238_vm0, %v1910_v28, 0  ;;  %v3472_v41 = vpop.permute.xlu0 %2056 }
 0x27a   : > { %v1655_v56 = vadd.f32 %v3420_v63, %v1647_v62  ;;  %2657 = vmatmul.msk.bf16.vlgmr.msra.gmra.mxu2 %vm261_vm2, %v3455_v51  ;;  %v3477_v62 = vld [vmem:[%s3681_s2 + $0x58] sm:$0xf] }
 0x27b   : > { %2629 = vmatmul.msk.bf16.vlgmr.msra.gmra.mxu3 %vm261_vm2, %v3298_v48  ;;  %v1621_v2 = vpop.f32.mrf.mxu2 }
 0x27c   : > { %v1657_v55 = vmul.f32 0.70710677, %v1655_v56  ;;  %1630 = vmatpush.bf16.msra.mxu3 %v1608_v19  ;;  %v1731_v39 = vmul.f32 0.5, %v1655_v56  ;;  %v2012_v19 = vsel %vm238_vm0, %v2006_v15, 0  ;;  %v2055_v56 = vpop.permute.xlu2 %2054 }
 0x27d   : > { %v2061_v2 = vsel %vm2060_vm14, %v2055_v56, %v3472_v41  ;;  %v1642_v56 = vperm.slane %v3412_v42, 1 }
 0x27e   : > { %v1663_v53 = vand.u32 2147483647, %v1657_v55  ;;  %vm1659_vm10 = vcmp.ge.f32.partialorder %v1657_v55, 0.0  ;;  %v2067_v55 = vsel %vm238_vm0, %v2061_v2, 0 }
 0x27f   : > { %v1661_v31 = vsel %vm1659_vm10, 1.0, %v2796_v10  ;;  %2079 = vmatpush.bf16.msrb.mxu2 %v2067_v55 }
 0x280   : > { %v1665_v21 = vmul.f32 0.3275911, %v1663_v53  ;;  %v1717_v11 = vsub.f32 0.0, %v1663_v53 }
 0x282   : > { %v1667_v61 = vadd.f32 1.0, %v1665_v21  ;;  %v1719_v3 = vmul.f32 %v1717_v11, %v1663_v53  ;;  %v3488_v21 = vld [vmem:[%s3681_s2 + $0x68] sm:$0xf] }
 0x284   : > { %2748 = vrcp.f32 %v1667_v61  ;;  %v1680_v9 = vand.u32 2147483648, %v1667_v61  ;;  %vm1674_vm5 = vweird.f32 %v1667_v61  ;;  %v1678_v12 = vand.u32 2147483647, %v1667_v61 }
 0x285   : > { %v1721_v30 = vmul.f32 1.442695, %v1719_v3 }
 0x286   : > { %v1681_v48 = vor.u32 1.1754944e-38, %v1680_v9  ;;  %vm1679_vm8 = vcmp.eq.f32.partialorder %v1678_v12, 8.507059e+37 }
 0x287   : > { %2750 = vpow2.f32 %v1721_v30 }
 0x28a   : > { %v2749_v38 = vpop.eup %2748  ;;  %2662 = vmatmul.msk.bf16.vlgmr.msrb.gmra.mxu2 %vm261_vm2, %v3488_v21 }
 0x28b   : > { %v1670_v7 = vmul.f32 %v2749_v38, %v1667_v61  ;;  %2636 = vmatmul.msk.bf16.vlgmr.msrb.gmra.mxu3 %vm261_vm2, %v3328_v32  ;;  %vm1675_vm6 = vweird.f32 %v2749_v38  ;;  %v3490_v61 = vpop.permute.xlu0 %2118 }
 0x28c   : > { %vm1676_vm7 = vmor %vm1674_vm5, %vm1675_vm6 }
 0x28d   : > { %v1671_v40 = vsub.f32 1.0, %v1670_v7  ;;  %v2751_v36 = vpop.eup %2750 }
 0x28f   : > { %v1672_v4 = vmul.f32 %v2749_v38, %v1671_v40  ;;  %v3499_v40 = vld [vmem:[%s3681_s2 + $0x64] sm:$0xf] }
 0x291   : > { %v1673_v26 = vadd.f32 %v2749_v38, %v1672_v4 }
 0x293   : > { %v1677_v29 = vsel %vm1676_vm7, %v2749_v38, %v1673_v26  ;;  %v2117_v38 = vpop.permute.xlu2 %2116  ;;  %v3502_v4 = vpop.permute.xlu0 %2170 }
 0x294   : > { %v1682_v23 = vsel %vm1679_vm8, %v1681_v48, %v1677_v29  ;;  %v2123_v7 = vsel %vm2122_vm15, %v2117_v38, %v3490_v61 }
 0x295   : > { %v1699_v27 = vmul.f32 1.0614054, %v1682_v23  ;;  %v2129_v12 = vsel %vm238_vm0, %v2123_v7, 0 }
 0x297   : > { %v1701_v8 = vadd.f32 -1.4531521, %v1699_v27 }
 0x298   : > { %v1256_v53 = vpop.f32.mrf.mxu1 }
 0x299   : > { %v1703_v32 = vmul.f32 %v1701_v8, %v1682_v23 }
 0x29b   : > { %2641 = vmatmul.msk.bf16.vlgmr.msra.gmra.mxu3 %vm261_vm2, %v3343_v24  ;;  %v1705_v16 = vadd.f32 1.4214138, %v1703_v32  ;;  %v2169_v48 = vpop.permute.xlu2 %2168  ;;  %v3516_v3 = vpop.permute.xlu0 %2225 }
 0x29c   : > { %v2175_v26 = vsel %vm2174_vm3, %v2169_v48, %v3502_v4 }
 0x29d   : > { %v1707_v20 = vmul.f32 %v1705_v16, %v1682_v23  ;;  %v2181_v11 = vsel %vm238_vm0, %v2175_v26, 0 }
 0x29e   : > { %2193 = vmatpush.bf16.msra.mxu2 %v2181_v11 }
 0x29f   : > { %v1709_v13 = vadd.f32 -0.28449672, %v1707_v20 }
 0x2a0   : > { %v1258_v9 = vpop.f32.mrf.mxu1 }
 0x2a1   : > { %v1711_v24 = vmul.f32 %v1709_v13, %v1682_v23 }
 0x2a3   : > { %v1713_v52 = vadd.f32 0.2548296, %v1711_v24  ;;  %v2224_v27 = vpop.permute.xlu2 %2223  ;;  %v3533_v24 = vld [vmem:[%s3681_s2 + $0x60] sm:$0xf] }
 0x2a4   : > { %v2230_v8 = vsel %vm2229_vm4, %v2224_v27, %v3516_v3 }
 0x2a5   : > { %v1715_v37 = vmul.f32 %v1713_v52, %v1682_v23  ;;  %v3512_v23 = vld [vmem:[%s3681_s2 + $0x54] sm:$0xf]  ;;  %v2236_v16 = vsel %vm238_vm0, %v2230_v8, 0 }
 0x2a6   : > { %2668 = vmatmul.msk.bf16.vlgmr.msra.gmra.mxu2 %vm261_vm2, %v3512_v23 }
 0x2a7   : > { %v1725_v34 = vmul.f32 %v2751_v36, %v1715_v37 }
 0x2a8   : > { %v1356_v29 = vpop.f32.mrf.mxu1 }
 0x2a9   : > { %v1727_v1 = vsub.f32 1.0, %v1725_v34 }
 0x2ab   : > { %v1729_v45 = vmul.f32 %v1727_v1, %v1661_v31  ;;  %v3540_v31 = vld [vmem:[%s3681_s2 + $0x6c] sm:$0xf] }
 0x2ad   : > { %v1733_v44 = vadd.f32 1.0, %v1729_v45 }
 0x2af   : > { %v1735_v6 = vmul.f32 %v1733_v44, %v1731_v39  ;;  %v1321_v39 = vperm.slane %v3399_v58, 1 }
 0x2b0   : > { %v1358_v46 = vpop.f32.mrf.mxu1 }
 0x2b1   : > { %1757 = vmatpush.msrb.mxu0 %v1735_v6 }
 0x2b2   : > { %2644 = vmatmul.msk.f32.vlgmr.msrb.gmra.mxu0 %vm330_vm1, %v3462_v25 }
 0x2b3   : > { %1822 = vmatpush.bf16.msra.mxu0 %v1810_v35  ;;  %v2810_v35 = vmov 7  }
 0x2b4   : > { %2724 = vset.pattern.permute.xlu2 %v2810_v35 }
 0x2b5   : > { %2283 = vperm.xlu2 %2724, %v3548_v0  }
 0x2b7   : > { %1928 = vmatpush.bf16.msrb.mxu0 %v1916_v17 }
 0x2ba   : > { %2648 = vmatmul.msk.bf16.vlgmr.msra.gmra.mxu0 %vm261_vm2, %v3477_v62 }
 0x2bb   : > { %2024 = vmatpush.bf16.msra.mxu0 %v2012_v19 }
 0x2ca   : > { %2653 = vmatmul.msk.bf16.vlgmr.msrb.gmra.mxu0 %vm261_vm2, %v3499_v40 }
 0x2cb   : > { %2141 = vmatpush.bf16.msrb.mxu0 %v2129_v12 }
 0x2d4   : > { %v1463_v20 = vpop.f32.mrf.mxu1 }
 0x2d6   : > { %v1106_v32 = vpop.f32.mrf.mxu3 }
 0x2d7   : > { %v3520_v30 = vadd.f32 %v1149_v57, %v1106_v32  ;;  %v2221_v57 = vld.sshfl [vmem:[#allocation1 + $0x10] sm:$0xff pattern:$0x73625140]  ;;  %v1802_v32 = vpop.permute.xlu1 %1801 }
 0x2d8   : > { %2227 = vrot.lane.b32.xlu1 %v2221_v57, %s2808_s12 }
 0x2da   : > { %2659 = vmatmul.msk.bf16.vlgmr.msra.gmra.mxu0 %vm261_vm2, %v3525_v43 }
 0x2db   : > { %2248 = vmatpush.bf16.msra.mxu0 %v2236_v16 }
 0x2dc   : > { %v1465_v52 = vpop.f32.mrf.mxu1 }
 0x2de   : > { %v1205_v14 = vpop.f32.mrf.mxu3 }
 0x2df   : > { %v1257_v1 = vadd.f32 %v1256_v53, %v1205_v14 }
 0x2e6   : > { %v1207_v13 = vpop.f32.mrf.mxu3 }
 0x2ea   : > { %2666 = vmatmul.msk.bf16.vlgmr.msrb.gmra.mxu0 %vm261_vm2, %v3533_v24 }
 0x2ec   : > { %v1577_v37 = vpop.f32.mrf.mxu1 }
 0x2ed   : > { %v1875_v7 = vpop.f32.mrf.mxu2 }
 0x2ee   : > { %v1311_v36 = vpop.f32.mrf.mxu3 }
 0x2ef   : > { %v1316_v5 = vadd.f32 %v1311_v36, %v1257_v1 }
 0x2f1   : > { %v1325_v50 = vmul.f32 %v1321_v39, %v1316_v5 }
 0x2f4   : > { %v1579_v59 = vpop.f32.mrf.mxu1 }
 0x2f6   : > { %v1313_v34 = vpop.f32.mrf.mxu3 }
 0x2fa   : > { %2671 = vmatmul.msk.bf16.vlgmr.msra.gmra.mxu0 %vm261_vm2, %v3540_v31 }
 0x2fe   : > { %v1408_v45 = vpop.f32.mrf.mxu3 }
 0x2ff   : > { %v1409_v44 = vadd.f32 %v1408_v45, %v1356_v29  ;;  %v1877_v29 = vpop.f32.mrf.mxu2 }
 0x300   : > { %v3571_v29 = vld [vmem:[%s3680_s1] ss:$8 sm:$0x3] }
 0x301   : > { %v1468_v28 = vadd.f32 %v1463_v20, %v1409_v44 }
 0x303   : > { %v1470_v6 = vadd.f32 %v1468_v28, %v1325_v50 }
 0x306   : > { %v1410_v17 = vpop.f32.mrf.mxu3 }
 0x307   : > { %v1974_v16 = vpop.f32.mrf.mxu2 }
 0x30e   : > { %v1525_v15 = vpop.f32.mrf.mxu3 }
 0x30f   : > { %v1578_v19 = vadd.f32 %v1577_v37, %v1525_v15  ;;  %v1976_v1 = vpop.f32.mrf.mxu2 }
 0x316   : > { %v1527_v58 = vpop.f32.mrf.mxu3 }
 0x317   : > { %v2081_v17 = vpop.f32.mrf.mxu2 }
 0x31e   : > { %v1632_v2 = vpop.f32.mrf.mxu3 }
 0x31f   : > { %v1637_v55 = vadd.f32 %v1632_v2, %v1578_v19 }
 0x321   : > { %v1646_v53 = vmul.f32 %v1642_v56, %v1637_v55  ;;  %v2083_v55 = vpop.f32.mrf.mxu2 }
 0x323   : > { %v1648_v38 = vadd.f32 %v1646_v53, %v1470_v6 }
 0x325   : > { %v3554_v9 = vadd.f32 %v3420_v63, %v1648_v38  ;;  %v1853_v63 = vpop.permute.xlu1 %1852 }
 0x326   : > { %v1634_v12 = vpop.f32.mrf.mxu3  ;;  %v1856_v52 = vsel %vm1854_vm9, %v3430_v22, %v1853_v63 }
 0x327   : > { %v1658_v48 = vmul.f32 0.70710677, %v3554_v9  ;;  %v1864_v37 = vsel %vm238_vm0, %v1856_v52, 0 }
 0x328   : > { %1886 = vmatpush.bf16.msrb.mxu3 %v1864_v37 }
 0x329   : > { %v1664_v26 = vand.u32 2147483647, %v1658_v48  ;;  %vm1660_vm9 = vcmp.ge.f32.partialorder %v1658_v48, 0.0  ;;  %v2195_v63 = vpop.f32.mrf.mxu2 }
 0x32b   : > { %v1666_v11 = vmul.f32 0.3275911, %v1664_v26  ;;  %2651 = vmatmul.msk.bf16.vlgmr.msrb.gmra.mxu3 %vm261_vm2, %v3440_v18  ;;  %v1718_v22 = vsub.f32 0.0, %v1664_v26 }
 0x32c   : > { %1985 = vmatpush.bf16.msra.mxu3 %v3010_v33 }
 0x32d   : > { %v1668_v27 = vadd.f32 1.0, %v1666_v11  ;;  %v1720_v6 = vmul.f32 %v1718_v22, %v1664_v26  ;;  %v1908_v19 = vpop.permute.xlu1 %1907 }
 0x32e   : > { %v1911_v48 = vsel %vm1909_vm12, %v3445_v54, %v1908_v19 }
 0x32f   : > { %2752 = vrcp.f32 %v1668_v27  ;;  %v1759_v8 = vpop.f32.mrf.mxu0  ;;  %v1695_v36 = vand.u32 2147483648, %v1668_v27  ;;  %v1693_v59 = vand.u32 2147483647, %v1668_v27  ;;  %vm1689_vm6 = vweird.f32 %v1668_v27 }
 0x330   : > { %v3558_v42 = vadd.f32 %v1759_v8, %v3359_v60  ;;  %v1723_v57 = vmul.f32 1.442695, %v1720_v6  ;;  %v1919_v22 = vsel %vm238_vm0, %v1911_v48, 0 }
 0x331   : > { %v1696_v60 = vor.u32 1.1754944e-38, %v1695_v36  ;;  %vm1694_vm8 = vcmp.eq.f32.partialorder %v1693_v59, 8.507059e+37  ;;  %v1805_v36 = vsel %vm1803_vm11, %v3428_v47, %v1802_v32  ;;  %v2197_v47 = vpop.f32.mrf.mxu2 }
 0x332   : > { %2754 = vpow2.f32 %v1723_v57  ;;  %v3610_v57 = vpop.permute.xlu2 %2283 }
 0x335   : > { %v2753_v46 = vpop.eup %2752  ;;  %v2004_v11 = vpop.permute.xlu1 %2003 }
 0x336   : > { %v1685_v14 = vmul.f32 %v2753_v46, %v1668_v27  ;;  %vm1690_vm5 = vweird.f32 %v2753_v46  ;;  %v2007_v32 = vsel %vm2005_vm13, %v3448_v49, %v2004_v11 }
 0x337   : > { %v1824_v20 = vpop.f32.mrf.mxu0  ;;  %vm1691_vm7 = vmor %vm1689_vm6, %vm1690_vm5 }
 0x338   : > { %v1686_v13 = vsub.f32 1.0, %v1685_v14  ;;  %v1876_v38 = vadd.f32 %v1875_v7, %v1824_v20  ;;  %v2755_v26 = vpop.eup %2754  ;;  %v1732_v7 = vmul.f32 0.5, %v3554_v9 }
 0x33a   : > { %v1687_v34 = vmul.f32 %v2753_v46, %v1686_v13  ;;  %v1662_v13 = vsel %vm1660_vm9, 1.0, %v2796_v10 }
 0x33b   : > { %2658 = vmatmul.msk.bf16.vlgmr.msra.gmra.mxu3 %vm261_vm2, %v3455_v51 }
 0x33c   : > { %v1688_v5 = vadd.f32 %v2753_v46, %v1687_v34 }
 0x33e   : > { %v1692_v39 = vsel %vm1691_vm7, %v2753_v46, %v1688_v5  ;;  %v1951_v46 = vperm.slane %v3571_v29, 0  ;;  %v2059_v5 = vpop.permute.xlu1 %2058 }
 0x33f   : > { %v1826_v45 = vpop.f32.mrf.mxu0  ;;  %v1697_v44 = vsel %vm1694_vm8, %v1696_v60, %v1692_v39  ;;  %v1813_v60 = vsel %vm238_vm0, %v1805_v36, 0  ;;  %v2062_v39 = vsel %vm2060_vm14, %v3472_v41, %v2059_v5  ;;  %v2015_v41 = vsel %vm238_vm0, %v2007_v32, 0 }
 0x340   : > { %v1700_v50 = vmul.f32 1.0614054, %v1697_v44  ;;  %v2070_v45 = vsel %vm238_vm0, %v2062_v39, 0 }
 0x341   : > { %2092 = vmatpush.bf16.msrb.mxu3 %v2070_v45 }
 0x342   : > { %v1702_v28 = vadd.f32 -1.4531521, %v1700_v50 }
 0x344   : > { %v1704_v35 = vmul.f32 %v1702_v28, %v1697_v44 }
 0x346   : > { %v1706_v15 = vadd.f32 1.4214138, %v1704_v35 }
 0x347   : > { %v1930_v58 = vpop.f32.mrf.mxu0 }
 0x348   : > { %v1708_v33 = vmul.f32 %v1706_v15, %v1697_v44  ;;  %v1947_v8 = vadd.f32 %v1930_v58, %v1876_v38 }
 0x34a   : > { %v1710_v56 = vadd.f32 -0.28449672, %v1708_v33  ;;  %v1955_v52 = vmul.f32 %v1951_v46, %v1947_v8 }
 0x34b   : > { %2663 = vmatmul.msk.bf16.vlgmr.msrb.gmra.mxu3 %vm261_vm2, %v3488_v21 }
 0x34c   : > { %v1712_v2 = vmul.f32 %v1710_v56, %v1697_v44 }
 0x34e   : > { %v1714_v53 = vadd.f32 0.2548296, %v1712_v2 }
 0x34f   : > { %v1932_v18 = vpop.f32.mrf.mxu0 }
 0x350   : > { %v1716_v12 = vmul.f32 %v1714_v53, %v1697_v44 }
 0x352   : > { %v1726_v27 = vmul.f32 %v2755_v26, %v1716_v12 }
 0x354   : > { %v1728_v14 = vsub.f32 1.0, %v1726_v27 }
 0x356   : > { %v1730_v51 = vmul.f32 %v1728_v14, %v1662_v13  ;;  %v2811_v13 = vmov 9  }
 0x357   : > { %v2026_v20 = vpop.f32.mrf.mxu0  ;;  %2726 = vset.pattern.permute.xlu1 %v2811_v13  ;;  %2727 = vset.pattern.permute.xlu0 %v2811_v13 }
 0x358   : > { %v2027_v37 = vadd.f32 %v2026_v20, %v1974_v16  ;;  %v1734_v34 = vadd.f32 1.0, %v1730_v51  ;;  %v2121_v16 = vpop.permute.xlu1 %2120  ;;  %2423 = vperm.xlu1 %2726, %v3548_v0  }
 0x359   : > { %v2124_v49 = vsel %vm2122_vm15, %v3490_v61, %v2121_v16 }
 0x35a   : > { %v1736_v59 = vmul.f32 %v1734_v34, %v1732_v7  ;;  %v2098_v1 = vadd.f32 %v2081_v17, %v2027_v37  ;;  %v2132_v21 = vsel %vm238_vm0, %v2124_v49, 0 }
 0x35c   : > { %1777 = vmatpush.msrb.mxu1 %v1736_v59  ;;  %v2100_v9 = vadd.f32 %v2098_v1, %v1955_v52 }
 0x35d   : > { %2645 = vmatmul.msk.f32.vlgmr.msrb.gmra.mxu1 %vm330_vm1, %v3462_v25 }
 0x35e   : > { %1835 = vmatpush.bf16.msra.mxu1 %v1813_v60 }
 0x35f   : > { %v2028_v54 = vpop.f32.mrf.mxu0 }
 0x360   : > { %v2173_v25 = vpop.permute.xlu1 %2172  ;;  %v3627_v54 = vld [vmem:[%s3682_s3 + $0x18] sm:$0xff] }
 0x361   : > { %v2176_v50 = vsel %vm2174_vm3, %v3502_v4, %v2173_v25 }
 0x362   : > { %1941 = vmatpush.bf16.msrb.mxu1 %v1919_v22  ;;  %v2184_v28 = vsel %vm238_vm0, %v2176_v50, 0 }
 0x363   : > { %2206 = vmatpush.bf16.msra.mxu3 %v2184_v28 }
 0x365   : > { %2649 = vmatmul.msk.bf16.vlgmr.msra.gmra.mxu1 %vm261_vm2, %v3477_v62  ;;  %v3604_v62 = vld [vmem:[%s3680_s1 + $0x6] ss:$8 sm:$0x3] }
 0x366   : > { %2037 = vmatpush.bf16.msra.mxu1 %v2015_v41  ;;  %2669 = vmatmul.msk.bf16.vlgmr.msra.gmra.mxu3 %vm261_vm2, %v3512_v23  ;;  %v2272_v4 = vperm.slane %v3604_v62, 0 }
 0x367   : > { %v2143_v44 = vpop.f32.mrf.mxu0 }
 0x368   : > { %v2196_v35 = vadd.f32 %v2195_v63, %v2143_v44  ;;  %v2228_v56 = vpop.permute.xlu1 %2227 }
 0x369   : > { %v2231_v55 = vsel %vm2229_vm4, %v3516_v3, %v2228_v56 }
 0x36f   : > { %v2145_v6 = vpop.f32.mrf.mxu0 }
 0x375   : > { %2654 = vmatmul.msk.bf16.vlgmr.msrb.gmra.mxu1 %vm261_vm2, %v3499_v40  ;;  %v2239_v40 = vsel %vm238_vm0, %v2231_v55, 0 }
 0x376   : > { %2154 = vmatpush.bf16.msrb.mxu1 %v2132_v21 }
 0x377   : > { %v2250_v17 = vpop.f32.mrf.mxu0 }
 0x378   : > { %v2267_v15 = vadd.f32 %v2250_v17, %v2196_v35 }
 0x37a   : > { %v2276_v23 = vmul.f32 %v2272_v4, %v2267_v15 }
 0x37c   : > { %v2278_v61 = vadd.f32 %v2276_v23, %v2100_v9 }
 0x37e   : > { %v2286_v58 = vadd.f32 %v3610_v57, %v2278_v61  ;;  %v1952_v61 = vperm.slane %v3571_v29, 1 }
 0x37f   : > { %v2252_v19 = vpop.f32.mrf.mxu0 }
 0x380   : > { %v2288_v33 = vmul.f32 0.70710677, %v2286_v58  ;;  %v2362_v22 = vmul.f32 0.5, %v2286_v58 }
 0x382   : > { %v2294_v2 = vand.u32 2147483647, %v2288_v33  ;;  %vm2290_vm0 = vcmp.ge.f32.partialorder %v2288_v33, 0.0 }
 0x383   : > { %v2292_v0 = vsel %vm2290_vm0, 1.0, %v2796_v10 }
 0x384   : > { %v2296_v53 = vmul.f32 0.3275911, %v2294_v2  ;;  %v2348_v14 = vsub.f32 0.0, %v2294_v2 }
 0x385   : > { %2660 = vmatmul.msk.bf16.vlgmr.msra.gmra.mxu1 %vm261_vm2, %v3525_v43 }
 0x386   : > { %v2298_v18 = vadd.f32 1.0, %v2296_v53  ;;  %2261 = vmatpush.bf16.msra.mxu1 %v2239_v40  ;;  %v2350_v7 = vmul.f32 %v2348_v14, %v2294_v2 }
 0x388   : > { %2756 = vrcp.f32 %v2298_v18  ;;  %v2311_v11 = vand.u32 2147483648, %v2298_v18  ;;  %vm2305_vm10 = vweird.f32 %v2298_v18  ;;  %v2309_v27 = vand.u32 2147483647, %v2298_v18 }
 0x389   : > { %v2352_v36 = vmul.f32 1.442695, %v2350_v7 }
 0x38a   : > { %v2312_v46 = vor.u32 1.1754944e-38, %v2311_v11  ;;  %vm2310_vm13 = vcmp.eq.f32.partialorder %v2309_v27, 8.507059e+37 }
 0x38b   : > { %2758 = vpow2.f32 %v2352_v36 }
 0x38e   : > { %v2757_v38 = vpop.eup %2756 }
 0x38f   : > { %v2301_v12 = vmul.f32 %v2757_v38, %v2298_v18  ;;  %vm2306_vm11 = vweird.f32 %v2757_v38  ;;  %v2273_v18 = vperm.slane %v3604_v62, 1 }
 0x390   : > { %vm2307_vm12 = vmor %vm2305_vm10, %vm2306_vm11 }
 0x391   : > { %v2302_v26 = vsub.f32 1.0, %v2301_v12  ;;  %v2759_v1 = vpop.eup %2758 }
 0x393   : > { %v2303_v8 = vmul.f32 %v2757_v38, %v2302_v26 }
 0x395   : > { %v2304_v3 = vadd.f32 %v2757_v38, %v2303_v8  ;;  %2667 = vmatmul.msk.bf16.vlgmr.msrb.gmra.mxu1 %vm261_vm2, %v3533_v24 }
 0x397   : > { %v2308_v43 = vsel %vm2307_vm12, %v2757_v38, %v2304_v3 }
 0x398   : > { %v2313_v63 = vsel %vm2310_vm13, %v2312_v46, %v2308_v43 }
 0x399   : > { %v2330_v51 = vmul.f32 1.0614054, %v2313_v63 }
 0x39b   : > { %v2332_v20 = vadd.f32 -1.4531521, %v2330_v51  ;;  %v3644_v51 = vpop.permute.xlu0 %2417 }
 0x39d   : > { %v2334_v52 = vmul.f32 %v2332_v20, %v2313_v63 }
 0x39f   : > { %v2336_v37 = vadd.f32 1.4214138, %v2334_v52 }
 0x3a1   : > { %v2338_v34 = vmul.f32 %v2336_v37, %v2313_v63 }
 0x3a3   : > { %v2340_v48 = vadd.f32 -0.28449672, %v2338_v34 }
 0x3a5   : > { %v2342_v59 = vmul.f32 %v2340_v48, %v2313_v63  ;;  %2672 = vmatmul.msk.bf16.vlgmr.msra.gmra.mxu1 %vm261_vm2, %v3540_v31 }
 0x3a7   : > { %v2344_v24 = vadd.f32 0.2548296, %v2342_v59 }
 0x3a9   : > { %v2346_v5 = vmul.f32 %v2344_v24, %v2313_v63 }
 0x3ab   : > { %v2356_v60 = vmul.f32 %v2759_v1, %v2346_v5 }
 0x3ad   : > { %v2358_v39 = vsub.f32 1.0, %v2356_v60 }
 0x3ae   : > { %v1888_v31 = vpop.f32.mrf.mxu3 }
 0x3af   : > { %v2360_v9 = vmul.f32 %v2358_v39, %v2292_v0 }
 0x3b1   : > { %v2364_v45 = vadd.f32 1.0, %v2360_v9 }
 0x3b3   : > { %v2366_v47 = vmul.f32 %v2364_v45, %v2362_v22 }
 0x3b5   : > { %2388 = vmatpush.msrb.mxu2 %v2366_v47 }
 0x3b6   : > { %2675 = vmatmul.msk.f32.vlgmr.msrb.gmra.mxu2 %vm330_vm1, %v3627_v54  ;;  %v1890_v32 = vpop.f32.mrf.mxu3 }
 0x3be   : > { %v1987_v41 = vpop.f32.mrf.mxu3 }
 0x3c6   : > { %v1989_v25 = vpop.f32.mrf.mxu3 }
 0x3ca   : > { %v3646_v7 = vpop.permute.xlu1 %2423 }
 0x3ce   : > { %v2094_v28 = vpop.f32.mrf.mxu3 }
 0x3d6   : > { %v2096_v49 = vpop.f32.mrf.mxu3 }
 0x3da   : > { %v1779_v16 = vpop.f32.mrf.mxu1 }
 0x3db   : > { %v3632_v44 = vadd.f32 %v1779_v16, %v3520_v30 }
 0x3e2   : > { %v1837_v50 = vpop.f32.mrf.mxu1 }
 0x3e3   : > { %v1889_v15 = vadd.f32 %v1888_v31, %v1837_v50 }
 0x3e9   : > { %v2208_v35 = vpop.f32.mrf.mxu3 }
 0x3ea   : > { %v1839_v6 = vpop.f32.mrf.mxu1 }
 0x3f1   : > { %v2210_v17 = vpop.f32.mrf.mxu3 }
 0x3f2   : > { %v1943_v21 = vpop.f32.mrf.mxu1 }
 0x3f3   : > { %v1948_v23 = vadd.f32 %v1943_v21, %v1889_v15 }
 0x3f5   : > { %v1956_v33 = vmul.f32 %v1952_v61, %v1948_v23 }
 0x3fa   : > { %v1945_v4 = vpop.f32.mrf.mxu1 }
 0x402   : > { %v2039_v58 = vpop.f32.mrf.mxu1 }
 0x403   : > { %v2040_v19 = vadd.f32 %v2039_v58, %v1987_v41 }
 0x405   : > { %v2099_v56 = vadd.f32 %v2094_v28, %v2040_v19 }
 0x407   : > { %v2101_v2 = vadd.f32 %v2099_v56, %v1956_v33 }
 0x40a   : > { %v2041_v30 = vpop.f32.mrf.mxu1 }
 0x412   : > { %v2156_v55 = vpop.f32.mrf.mxu1 }
 0x413   : > { %v2209_v53 = vadd.f32 %v2208_v35, %v2156_v55 }
 0x41a   : > { %v2158_v40 = vpop.f32.mrf.mxu1 }
 0x422   : > { %v2263_v38 = vpop.f32.mrf.mxu1 }
 0x423   : > { %v2268_v12 = vadd.f32 %v2263_v38, %v2209_v53 }
 0x425   : > { %v2277_v11 = vmul.f32 %v2273_v18, %v2268_v12 }
 0x427   : > { %v2279_v26 = vadd.f32 %v2277_v11, %v2101_v2 }
 0x429   : > { %v3637_v27 = vadd.f32 %v3610_v57, %v2279_v26 }
 0x42a   : > { %v2265_v8 = vpop.f32.mrf.mxu1 }
 0x42b   : > { %v3640_v29 = vmul.f32 0.70710677, %v3637_v27  ;;  %v2363_v38 = vmul.f32 0.5, %v3637_v27 }
 0x42d   : > { %v2295_v46 = vand.u32 2147483647, %v3640_v29  ;;  %vm2291_vm7 = vcmp.ge.f32.partialorder %v3640_v29, 0.0 }
 0x42e   : > { %v2293_v55 = vsel %vm2291_vm7, 1.0, %v2796_v10 }
 0x42f   : > { %v2297_v3 = vmul.f32 0.3275911, %v2295_v46  ;;  %v2349_v60 = vsub.f32 0.0, %v2295_v46 }
 0x431   : > { %v2299_v14 = vadd.f32 1.0, %v2297_v3  ;;  %v2351_v45 = vmul.f32 %v2349_v60, %v2295_v46 }
 0x433   : > { %2760 = vrcp.f32 %v2299_v14  ;;  %v2326_v52 = vand.u32 2147483648, %v2299_v14  ;;  %v2324_v34 = vand.u32 2147483647, %v2299_v14  ;;  %vm2320_vm14 = vweird.f32 %v2299_v14 }
 0x434   : > { %v2354_v32 = vmul.f32 1.442695, %v2351_v45 }
 0x435   : > { %vm2325_vm3 = vcmp.eq.f32.partialorder %v2324_v34, 8.507059e+37 }
 0x439   : > { %v2761_v43 = vpop.eup %2760  ;;  %v2390_v13 = vpop.f32.mrf.mxu2 }
 0x43a   : > { %v2316_v63 = vmul.f32 %v2761_v43, %v2299_v14  ;;  %v2413_v62 = vadd.f32 %v2390_v13, %v3558_v42  ;;  %vm2321_vm2 = vweird.f32 %v2761_v43  ;;  %v2327_v42 = vor.u32 1.1754944e-38, %v2326_v52 }
 0x43b   : > { %vm2322_vm15 = vmor %vm2320_vm14, %vm2321_vm2 }
 0x43c   : > { %v2317_v57 = vsub.f32 1.0, %v2316_v63  ;;  %v2420_v20 = vadd.f32 %v3644_v51, %v2413_v62 }
 0x43e   : > { %v3650_v36 = vadd.f32 %v3646_v7, %v2420_v20  ;;  %v2318_v37 = vmul.f32 %v2761_v43, %v2317_v57 }
 0x440   : > { %v3653_v48 = vmul.f32 0.70710677, %v3650_v36  ;;  %v2319_v59 = vadd.f32 %v2761_v43, %v2318_v37  ;;  %v2502_v52 = vmul.f32 0.5, %v3650_v36 }
 0x442   : > { %v2434_v24 = vand.u32 2147483647, %v3653_v48  ;;  %v2323_v1 = vsel %vm2322_vm15, %v2761_v43, %v2319_v59  ;;  %vm2430_vm9 = vcmp.ge.f32.partialorder %v3653_v48, 0.0 }
 0x443   : > { %v2328_v5 = vsel %vm2325_vm3, %v2327_v42, %v2323_v1  ;;  %v2432_v57 = vsel %vm2430_vm9, 1.0, %v2796_v10 }
 0x444   : > { %v2436_v0 = vmul.f32 0.3275911, %v2434_v24  ;;  %v2331_v39 = vmul.f32 1.0614054, %v2328_v5  ;;  %v2488_v56 = vsub.f32 0.0, %v2434_v24 }
 0x446   : > { %v2438_v9 = vadd.f32 1.0, %v2436_v0  ;;  %v2333_v22 = vadd.f32 -1.4531521, %v2331_v39  ;;  %v2490_v18 = vmul.f32 %v2488_v56, %v2434_v24 }
 0x448   : > { %2762 = vrcp.f32 %v2438_v9  ;;  %v2335_v47 = vmul.f32 %v2333_v22, %v2328_v5  ;;  %v2451_v49 = vand.u32 2147483648, %v2438_v9  ;;  %v2449_v35 = vand.u32 2147483647, %v2438_v9 }
 0x449   : > { %2764 = vpow2.f32 %v2354_v32  ;;  %vm2445_vm5 = vweird.f32 %v2438_v9  ;;  %v2492_v29 = vmul.f32 1.442695, %v2490_v18 }
 0x44a   : > { %v2337_v31 = vadd.f32 1.4214138, %v2335_v47  ;;  %v2452_v61 = vor.u32 1.1754944e-38, %v2451_v49  ;;  %vm2450_vm8 = vcmp.eq.f32.partialorder %v2449_v35, 8.507059e+37 }
 0x44b   : > { %2766 = vpow2.f32 %v2492_v29 }
 0x44c   : > { %v2339_v41 = vmul.f32 %v2337_v31, %v2328_v5 }
 0x44e   : > { %v2763_v16 = vpop.eup %2762  ;;  %v2341_v50 = vadd.f32 -0.28449672, %v2339_v41 }
 0x44f   : > { %v2441_v25 = vmul.f32 %v2763_v16, %v2438_v9  ;;  %vm2446_vm4 = vweird.f32 %v2763_v16  ;;  %v2765_v23 = vpop.eup %2764 }
 0x450   : > { %v2343_v6 = vmul.f32 %v2341_v50, %v2328_v5  ;;  %vm2447_vm6 = vmor %vm2445_vm5, %vm2446_vm4 }
 0x451   : > { %v2442_v28 = vsub.f32 1.0, %v2441_v25  ;;  %v2767_v63 = vpop.eup %2766 }
 0x452   : > { %v2345_v4 = vadd.f32 0.2548296, %v2343_v6 }
 0x453   : > { %v2443_v21 = vmul.f32 %v2763_v16, %v2442_v28 }
 0x454   : > { %v2347_v15 = vmul.f32 %v2345_v4, %v2328_v5 }
 0x455   : > { %v2444_v17 = vadd.f32 %v2763_v16, %v2443_v21 }
 0x456   : > { %v2357_v19 = vmul.f32 %v2765_v23, %v2347_v15 }
 0x457   : > { %v2448_v58 = vsel %vm2447_vm6, %v2763_v16, %v2444_v17 }
 0x458   : > { %v2453_v33 = vsel %vm2450_vm8, %v2452_v61, %v2448_v58  ;;  %v2359_v30 = vsub.f32 1.0, %v2357_v19 }
 0x459   : > { %v2470_v2 = vmul.f32 1.0614054, %v2453_v33 }
 0x45a   : > { %v2361_v53 = vmul.f32 %v2359_v30, %v2293_v55 }
 0x45b   : > { %v2472_v40 = vadd.f32 -1.4531521, %v2470_v2 }
 0x45c   : > { %v2365_v11 = vadd.f32 1.0, %v2361_v53 }
 0x45d   : > { %v2474_v12 = vmul.f32 %v2472_v40, %v2453_v33 }
 0x45e   : > { %v2367_v8 = vmul.f32 %v2365_v11, %v2363_v38 }
 0x45f   : > { %v2476_v26 = vadd.f32 1.4214138, %v2474_v12 }
 0x460   : > { %2408 = vmatpush.msrb.mxu3 %v2367_v8 }
 0x461   : > { %v2478_v46 = vmul.f32 %v2476_v26, %v2453_v33  ;;  %2676 = vmatmul.msk.f32.vlgmr.msrb.gmra.mxu3 %vm330_vm1, %v3627_v54 }
 0x463   : > { %v2480_v3 = vadd.f32 -0.28449672, %v2478_v46 }
 0x465   : > { %v2482_v14 = vmul.f32 %v2480_v3, %v2453_v33 }
 0x467   : > { %v2484_v43 = vadd.f32 0.2548296, %v2482_v14 }
 0x469   : > { %v2486_v13 = vmul.f32 %v2484_v43, %v2453_v33 }
 0x46b   : > { %v2496_v27 = vmul.f32 %v2767_v63, %v2486_v13 }
 0x46d   : > { %v2498_v62 = vsub.f32 1.0, %v2496_v27 }
 0x46f   : > { %v2500_v20 = vmul.f32 %v2498_v62, %v2432_v57 }
 0x471   : > { %v2504_v37 = vadd.f32 1.0, %v2500_v20 }
 0x473   : > { %v2506_v54 = vmul.f32 %v2504_v37, %v2502_v52 }
 0x475   : > { %2508 = vst [vmem:[%s3668_s20] sm:$0xff] %v2506_v54 }
 0x4e4   : > { %v2410_v34 = vpop.f32.mrf.mxu3 }
 0x4e5   : > { %v2414_v48 = vadd.f32 %v2410_v34, %v3632_v44 }
 0x4e7   : > { %v2421_v59 = vadd.f32 %v3644_v51, %v2414_v48 }
 0x4e9   : > { %v2427_v42 = vadd.f32 %v3646_v7, %v2421_v59 }
 0x4eb   : > { %v2429_v24 = vmul.f32 0.70710677, %v2427_v42  ;;  %v2503_v19 = vmul.f32 0.5, %v2427_v42 }
 0x4ed   : > { %v2435_v1 = vand.u32 2147483647, %v2429_v24  ;;  %vm2431_vm13 = vcmp.ge.f32.partialorder %v2429_v24, 0.0 }
 0x4ee   : > { %v2433_v61 = vsel %vm2431_vm13, 1.0, %v2796_v10 }
 0x4ef   : > { %v2437_v5 = vmul.f32 0.3275911, %v2435_v1  ;;  %v2489_v7 = vsub.f32 0.0, %v2435_v1 }
 0x4f1   : > { %v2439_v36 = vadd.f32 1.0, %v2437_v5  ;;  %v2491_v16 = vmul.f32 %v2489_v7, %v2435_v1 }
 0x4f3   : > { %2768 = vrcp.f32 %v2439_v36  ;;  %v2466_v9 = vand.u32 2147483648, %v2439_v36  ;;  %v2464_v45 = vand.u32 2147483647, %v2439_v36  ;;  %vm2460_vm10 = vweird.f32 %v2439_v36 }
 0x4f4   : > { %v2494_v28 = vmul.f32 1.442695, %v2491_v16 }
 0x4f5   : > { %v2467_v44 = vor.u32 1.1754944e-38, %v2466_v9  ;;  %vm2465_vm12 = vcmp.eq.f32.partialorder %v2464_v45, 8.507059e+37 }
 0x4f6   : > { %2770 = vpow2.f32 %v2494_v28 }
 0x4f9   : > { %v2769_v60 = vpop.eup %2768 }
 0x4fa   : > { %v2456_v0 = vmul.f32 %v2769_v60, %v2439_v36  ;;  %vm2461_vm1 = vweird.f32 %v2769_v60 }
 0x4fb   : > { %vm2462_vm11 = vmor %vm2460_vm10, %vm2461_vm1 }
 0x4fc   : > { %v2457_v39 = vsub.f32 1.0, %v2456_v0  ;;  %v2771_v17 = vpop.eup %2770 }
 0x4fe   : > { %v2458_v22 = vmul.f32 %v2769_v60, %v2457_v39 }
 0x500   : > { %v2459_v47 = vadd.f32 %v2769_v60, %v2458_v22 }
 0x502   : > { %v2463_v31 = vsel %vm2462_vm11, %v2769_v60, %v2459_v47 }
 0x503   : > { %v2468_v51 = vsel %vm2465_vm12, %v2467_v44, %v2463_v31 }
 0x504   : > { %v2471_v32 = vmul.f32 1.0614054, %v2468_v51 }
 0x506   : > { %v2473_v41 = vadd.f32 -1.4531521, %v2471_v32 }
 0x508   : > { %v2475_v25 = vmul.f32 %v2473_v41, %v2468_v51 }
 0x50a   : > { %v2477_v50 = vadd.f32 1.4214138, %v2475_v25 }
 0x50c   : > { %v2479_v6 = vmul.f32 %v2477_v50, %v2468_v51 }
 0x50e   : > { %v2481_v49 = vadd.f32 -0.28449672, %v2479_v6 }
 0x510   : > { %v2483_v21 = vmul.f32 %v2481_v49, %v2468_v51 }
 0x512   : > { %v2485_v35 = vadd.f32 0.2548296, %v2483_v21 }
 0x514   : > { %v2487_v4 = vmul.f32 %v2485_v35, %v2468_v51 }
 0x516   : > { %v2497_v15 = vmul.f32 %v2771_v17, %v2487_v4 }
 0x518   : > { %v2499_v23 = vsub.f32 1.0, %v2497_v15 }
 0x51a   : > { %v2501_v58 = vmul.f32 %v2499_v23, %v2433_v61 }
 0x51c   : > { %v2505_v33 = vadd.f32 1.0, %v2501_v58 }
 0x51e   : > { %v2507_v56 = vmul.f32 %v2505_v33, %v2503_v19 }
 0x520   : > { %2509 = vst [vmem:[%s3668_s20 + $0x8] sm:$0xff] %v2507_v56 }
 0x521 PF: > { %s15_s18 = sadd.s32 1, %s2778_s18  }
 0x522   : > { %p12_p4 = scmp.ge.s32.totalorder %s15_s18, 4  }
 0x524   :  { %14 = sbr.rel (!%p12_p4) target bundleno = 1 (0x1), region = 106 }

</bundles_post_ra>
